<compile_context>
chip_gen: v6e
topology: v6e:2x2x1
jax: 0.10.0
libtpu: 0.0.40
codegen_flags: <defaults>
</compile_context>

<pallas_src>
import numpy as np
import jax
import jax.numpy as jnp
from jax.experimental import pallas as pl
from jax.experimental.pallas import tpu as pltpu


# ----------------------------- in-kernel helpers -----------------------------

def _rmsnorm(x, w, eps=1e-8):
    # torch.nn.RMSNorm(eps=1e-8): x * rsqrt(mean(x^2, -1) + eps) * weight
    ms = jnp.mean(x * x, axis=-1, keepdims=True)
    return x * jax.lax.rsqrt(ms + eps) * w


def _erf(x):
    # Abramowitz & Stegun 7.1.26, |err| < 1.5e-7 -> float32-exact GELU(erf) substitute.
    a1, a2, a3, a4, a5 = 0.254829592, -0.284496736, 1.421413741, -1.453152027, 1.061405429
    p = 0.3275911
    s = jnp.where(x >= 0.0, 1.0, -1.0)
    ax = jnp.abs(x)
    t = 1.0 / (1.0 + p * ax)
    poly = ((((a5 * t + a4) * t + a3) * t + a2) * t + a1) * t
    return s * (1.0 - poly * jnp.exp(-ax * ax))


def _gelu_exact(x):
    return 0.5 * x * (1.0 + _erf(x * 0.7071067811865476))


def _softmax_list(logits):
    # numerically-stable softmax over a *list* of [B, 1] columns
    # (avoids lane-dim concatenation inside the kernel).
    m = logits[0]
    for l in logits[1:]:
        m = jnp.maximum(m, l)
    exps = [jnp.exp(l - m) for l in logits]
    tot = exps[0]
    for e in exps[1:]:
        tot = tot + e
    inv = 1.0 / tot
    return [e * inv for e in exps]


# --------------------------------- the kernel --------------------------------

def est_layer_kernel(
    # batch-blocked inputs
    emb_ref, si_ref,
    # pre-packed weights (whole-array VMEM residents)
    wout_bd_ref, wq_cat_ref, wk_sup_ref, wv_sup_ref,
    alr_ref, win_rows_ref, w_bd_ref, sr_row_ref, bias_row_ref,
    sw_cat_ref,
    n1_ref, n2_ref, n3_ref,
    wred_ref, wred_b_ref, ffin_w_ref, ffin_b_ref, ffout_w_ref, ffout_b_ref,
    temp_ref,                         # SMEM scalar
    # outputs
    out_ref, si_new_ref,
):
    f32 = jnp.float32
    emb = emb_ref[...].astype(f32)                  # [B, D]
    state = si_ref[...].astype(f32)                 # [B, M*R]   (lane-dense carry)
    B, D = emb.shape
    MR = state.shape[1]
    MD = wq_cat_ref.shape[1]
    M = MD // D
    R = MR // M
    scale = 1.0 / float(D) ** 0.5

    # ---- previous-state readout for every unit in ONE matmul (block-diag Wout)
    sout_prev = jnp.dot(state, wout_bd_ref[...], preferred_element_type=f32)     # [B, M*D]

    # ---- cross attention: all Q / K / V in three matmuls
    q_cat = jnp.dot(emb, wq_cat_ref[...], preferred_element_type=f32)            # [B, M*D]
    k_sup = jnp.dot(sout_prev, wk_sup_ref[...], preferred_element_type=f32)      # [B, M*M*D]
    v_sup = jnp.dot(sout_prev, wv_sup_ref[...], preferred_element_type=f32)      # [B, M*M*D]

    n1 = n1_ref[...].astype(f32)                    # hoisted loop invariants
    inv_temp = 1.0 / temp_ref[0]

    # per-head attention + norm1; also assemble the reservoir feed (block-row
    # decomposition of the block-diagonal Win) and adaptive-leak-rate logits.
    feed = jnp.zeros((B, MR), dtype=f32)            # lands lane-dense [B, M*R]
    lr_logits = []
    for h in range(M):                              # h = attention head = memory unit
        q_h = q_cat[:, h * D:(h + 1) * D]
        logits = [
            jnp.sum(q_h * k_sup[:, (h * M + m) * D:(h * M + m + 1) * D],
                    axis=-1, keepdims=True) * scale
            for m in range(M)
        ]
        p = _softmax_list(logits)
        attn_h = p[0] * v_sup[:, (h * M) * D:(h * M + 1) * D]
        for m in range(1, M):
            attn_h = attn_h + p[m] * v_sup[:, (h * M + m) * D:(h * M + m + 1) * D]
        upd_h = _rmsnorm(attn_h + emb, n1)                                        # [B, D]
        lr_logits.append(
            jnp.sum(upd_h * alr_ref[h].astype(f32), axis=-1, keepdims=True) * inv_temp)
        # Win_rows[h] is [D, M*R] with Win[h] at lanes [h*R, (h+1)*R): the feed
        # for unit h lands directly at its lane block, summed over h.
        feed = feed + jnp.dot(upd_h, win_rows_ref[h].astype(f32),
                              preferred_element_type=f32)                         # [B, M*R]

    lr = _softmax_list(lr_logits)                   # adaptive leak rate per unit, [B, 1]

    # expand per-unit lr over each unit's R-lane block (no concatenation needed)
    col = jax.lax.broadcasted_iota(jnp.int32, (1, MR), 1)
    lr_full = jnp.zeros((B, MR), dtype=f32)
    for m in range(M):
        in_block = jnp.logical_and(col >= m * R, col < (m + 1) * R)
        lr_full = lr_full + lr[m] * in_block.astype(f32)                          # [B, M*R]

    # ---- reservoir update for every unit in ONE matmul; sr applied post-matmul
    echo = (jnp.dot(state, w_bd_ref[...], preferred_element_type=f32)
            * sr_row_ref[...].astype(f32) + bias_row_ref[...].astype(f32))        # [B, M*R]
    new_state = (1.0 - lr_full) * state + lr_full * jnp.tanh(feed + echo)
    si_new_ref[...] = new_state.astype(si_new_ref.dtype)      # single lane-dense store

    # ---- new-state readout + shared self-attention projections (SQ|SK|SV fused)
    sout_new = jnp.dot(new_state, wout_bd_ref[...], preferred_element_type=f32)   # [B, M*D]
    sqkv = jnp.dot(sout_new, sw_cat_ref[...], preferred_element_type=f32)         # [B, 3*M*D]
    n2 = n2_ref[...].astype(f32)

    # SUreduce = flatten_{m,d}(self_update) @ Wreduce + b  (block-row decomposition)
    sured = wred_b_ref[...].astype(f32)             # [1, D] (broadcasts to [B, D])
    for m in range(M):
        sq_m = sqkv[:, m * D:(m + 1) * D]
        logits = [
            jnp.sum(sq_m * sqkv[:, MD + n * D:MD + (n + 1) * D],
                    axis=-1, keepdims=True) * scale
            for n in range(M)
        ]
        p = _softmax_list(logits)
        sa_m = p[0] * sqkv[:, 2 * MD:2 * MD + D]
        for n in range(1, M):
            sa_m = sa_m + p[n] * sqkv[:, 2 * MD + n * D:2 * MD + (n + 1) * D]
        su_m = _rmsnorm(sa_m + sout_new[:, m * D:(m + 1) * D], n2)
        sured = sured + jnp.dot(su_m, wred_ref[m].astype(f32),
                                preferred_element_type=f32)

    # ---- feed-forward block + final RMSNorm
    z = jnp.dot(sured, ffin_w_ref[...].astype(f32), preferred_element_type=f32) \
        + ffin_b_ref[...].astype(f32)
    z = _gelu_exact(z)
    ffo = jnp.dot(z, ffout_w_ref[...].astype(f32), preferred_element_type=f32) \
        + ffout_b_ref[...].astype(f32)
    out_ref[...] = _rmsnorm(ffo + sured, n3_ref[...].astype(f32)).astype(out_ref.dtype)


# --------------------------------- wrapper -----------------------------------

def est_layer_forward(emb, si, params):
    """emb: [B, D] f32, si: [B, M, R] f32 -> (OUT [B, D], Si_new [B, M, R])."""
    B, D = emb.shape
    _, M, R = si.shape
    MR = M * R
    si2d = si.reshape(B, MR)                        # row-major flatten: no data movement

    TB = 8 if B % 8 == 0 else B                     # batch tile; grid shards the batch
    grid = (B // TB,)

    def row(width):
        return pl.BlockSpec((TB, width), lambda b: (b, 0))

    full_vmem = pl.BlockSpec(memory_space=pltpu.MemorySpace.VMEM)   # resident weights
    smem = pl.BlockSpec(memory_space=pltpu.MemorySpace.SMEM)

    # TODO(synk): at production sizes, stream per-unit weights via a grid axis over M
    # (v7x has only 64 MiB VMEM) instead of whole-array VMEM residency.
    weights = (
        params["Wout_bd"], params["Wq_cat"], params["Wk_sup"], params["Wv_sup"],
        params["adaptive_lr"], params["Win_rows"], params["W_bd"],
        params["sr_row"], params["bias_row"], params["SW_cat"],
        params["norm1_w"], params["norm2_w"], params["norm3_w"],
        params["Wreduce_w"], params["Wreduce_b"],
        params["ff_in_w"], params["ff_in_b"], params["ff_out_w"], params["ff_out_b"],
    )
    args = (emb, si2d) + weights + (params["temperature"],)
    in_specs = [row(D), row(MR)] + [full_vmem] * len(weights) + [smem]

    out, si_new2d = pl.pallas_call(
        est_layer_kernel,
        out_shape=(jax.ShapeDtypeStruct((B, D), jnp.float32),
                   jax.ShapeDtypeStruct((B, MR), jnp.float32)),
        grid=grid,
        in_specs=in_specs,
        out_specs=(row(D), row(MR)),
        compiler_params=pltpu.CompilerParams(dimension_semantics=("parallel",)),
    )(*args)
    return out, si_new2d.reshape(B, M, R)


# ---------------------------- deterministic init ------------------------------

def init_params(M, D, R, seed=0, connectivity=0.2):
    rng = np.random.RandomState(seed)

    def fixed_bernoulli(shape):
        H, L, C = shape
        nb = max(1, int(connectivity * L))
        m = np.zeros(shape, dtype=np.float32)
        for h in range(H):
            for c in range(C):
                idx = rng.permutation(L)[:nb]
                m[h, idx, c] = 1.0
        return m

    # reservoir recurrent weights, normalized by per-unit spectral radius (host numpy,
    # exactly as in Memory.__init__ -- init-time work, not part of the kernel)
    W = rng.normal(size=(M, R, R)).astype(np.float32) * fixed_bernoulli((M, R, R))
    sr0 = np.stack([np.max(np.abs(np.linalg.eigvals(W[m].astype(np.float64)))) for m in range(M)])
    W = (W / sr0[:, None, None]).astype(np.float32)

    Win = fixed_bernoulli((M, D, R))                                    # [M, D, R]
    bias = (rng.uniform(size=(M, R)) < 0.5).astype(np.float32)          # bernoulli(0.5)
    Wout = rng.normal(size=(M, R, D)).astype(np.float32)
    adaptive_lr = rng.uniform(size=(M, D)).astype(np.float32)           # torch uniform_ init
    sr = rng.uniform(size=(M,)).astype(np.float32)                      # torch.rand
    temperature = np.ones((1,), dtype=np.float32)

    def kunif(shape, fan_in):                                           # kaiming_uniform(a=sqrt(5))
        bound = 1.0 / np.sqrt(fan_in)
        return rng.uniform(-bound, bound, size=shape).astype(np.float32)

    Wq, Wk, Wv = (kunif((M, D, D), D * D) for _ in range(3))
    SWq, SWk, SWv = (kunif((D, D), D) for _ in range(3))

    Wreduce_w = kunif((M * D, D), M * D)        # stored [in, out]
    Wreduce_b = kunif((1, D), M * D)
    ff_in_w = kunif((D, 4 * D), D)
    ff_in_b = kunif((1, 4 * D), D)
    ff_out_w = kunif((4 * D, D), 4 * D)
    ff_out_b = kunif((1, D), 4 * D)
    norm_w = np.ones((1, D), dtype=np.float32)  # RMSNorm weights init to ones

    # ---------- fused / lane-dense layouts (pure data-layout prep, host-side) ----------
    MR, MD = M * R, M * D

    def block_diag(blocks):                      # [n, r, c] -> [n*r, n*c]
        n, r, c = blocks.shape
        out = np.zeros((n * r, n * c), dtype=np.float32)
        for i in range(n):
            out[i * r:(i + 1) * r, i * c:(i + 1) * c] = blocks[i]
        return out

    Wout_bd = block_diag(Wout)                                   # [M*R, M*D]
    W_bd = block_diag(W)                                         # [M*R, M*R]
    Wq_cat = np.concatenate(list(Wq), axis=1)                    # [D, M*D]

    Wk_sup = np.zeros((MD, M * MD), dtype=np.float32)            # [M*D, M*M*D]
    Wv_sup = np.zeros((MD, M * MD), dtype=np.float32)
    for h in range(M):
        for m in range(M):
            g = h * M + m
            Wk_sup[m * D:(m + 1) * D, g * D:(g + 1) * D] = Wk[h]
            Wv_sup[m * D:(m + 1) * D, g * D:(g + 1) * D] = Wv[h]

    Win_rows = np.zeros((M, D, MR), dtype=np.float32)            # feed placed per lane block
    for m in range(M):
        Win_rows[m, :, m * R:(m + 1) * R] = Win[m]

    sr_row = np.repeat(sr, R)[None, :].astype(np.float32)        # [1, M*R]
    bias_row = bias.reshape(1, MR).astype(np.float32)            # [1, M*R]

    eyeM = np.eye(M, dtype=np.float32)
    SW_cat = np.concatenate([np.kron(eyeM, SWq),
                             np.kron(eyeM, SWk),
                             np.kron(eyeM, SWv)], axis=1)        # [M*D, 3*M*D]

    np_params = dict(
        Wout_bd=Wout_bd, Wq_cat=Wq_cat, Wk_sup=Wk_sup, Wv_sup=Wv_sup,
        adaptive_lr=adaptive_lr.reshape(M, 1, D),
        Win_rows=Win_rows, W_bd=W_bd, sr_row=sr_row, bias_row=bias_row,
        SW_cat=SW_cat,
        norm1_w=norm_w, norm2_w=norm_w.copy(), norm3_w=norm_w.copy(),
        Wreduce_w=Wreduce_w.reshape(M, D, D), Wreduce_b=Wreduce_b,
        ff_in_w=ff_in_w, ff_in_b=ff_in_b, ff_out_w=ff_out_w, ff_out_b=ff_out_b,
        temperature=temperature,
    )
    return {k: jnp.asarray(v) for k, v in np_params.items()}


# ----------------------------------- main -------------------------------------

if __name__ == "__main__":
    B, M, D, R = 2, 4, 4, 32          # batch, memory_units, attention_dim, memory_dim

    params = init_params(M, D, R, seed=0)

    key = jax.random.PRNGKey(0)
    k1, k2 = jax.random.split(key)
    emb = jax.random.normal(k1, (B, D), dtype=jnp.float32)
    si = 0.1 * jax.random.normal(k2, (B, M, R), dtype=jnp.float32)

    out, si_new = est_layer_forward(emb, si, params)
    out = jax.block_until_ready(out)
    si_new = jax.block_until_ready(si_new)

    assert out.shape == (B, D) and si_new.shape == (B, M, R)
    assert bool(jnp.all(jnp.isfinite(out))) and bool(jnp.all(jnp.isfinite(si_new)))
    print("KERNEL_OK")
</pallas_src>

<mosaic_0001>
module attributes {stable_mosaic.version = 11 : i64} {
  func.func @est_layer_kernel(%arg0: i32, %arg1: memref<2x4xf32, #tpu.memory_space<vmem>>, %arg2: memref<2x128xf32, #tpu.memory_space<vmem>>, %arg3: memref<128x16xf32, #tpu.memory_space<vmem>>, %arg4: memref<4x16xf32, #tpu.memory_space<vmem>>, %arg5: memref<16x64xf32, #tpu.memory_space<vmem>>, %arg6: memref<16x64xf32, #tpu.memory_space<vmem>>, %arg7: memref<4x1x4xf32, #tpu.memory_space<vmem>>, %arg8: memref<4x4x128xf32, #tpu.memory_space<vmem>>, %arg9: memref<128x128xf32, #tpu.memory_space<vmem>>, %arg10: memref<1x128xf32, #tpu.memory_space<vmem>>, %arg11: memref<1x128xf32, #tpu.memory_space<vmem>>, %arg12: memref<16x48xf32, #tpu.memory_space<vmem>>, %arg13: memref<1x4xf32, #tpu.memory_space<vmem>>, %arg14: memref<1x4xf32, #tpu.memory_space<vmem>>, %arg15: memref<1x4xf32, #tpu.memory_space<vmem>>, %arg16: memref<4x4x4xf32, #tpu.memory_space<vmem>>, %arg17: memref<1x4xf32, #tpu.memory_space<vmem>>, %arg18: memref<4x16xf32, #tpu.memory_space<vmem>>, %arg19: memref<1x16xf32, #tpu.memory_space<vmem>>, %arg20: memref<16x4xf32, #tpu.memory_space<vmem>>, %arg21: memref<1x4xf32, #tpu.memory_space<vmem>>, %arg22: memref<1xf32, #tpu.memory_space<smem>>, %arg23: memref<2x4xf32, #tpu.memory_space<vmem>>, %arg24: memref<2x128xf32, #tpu.memory_space<vmem>>) attributes {dimension_semantics = [#tpu.dimension_semantics<parallel>], iteration_bounds = array<i64: 1>, scalar_prefetch = 0 : i64, scratch_operands = 0 : i64, tpu.core_type = #tpu.core_type<tc>, window_params = [{transform_indices = @transform_0, window_bounds = array<i64: 2, 4>}, {transform_indices = @transform_1, window_bounds = array<i64: 2, 128>}, {pipeline_mode = #tpu.pipeline_mode<synchronous>, transform_indices = @transform_2, window_bounds = array<i64: 128, 16>}, {pipeline_mode = #tpu.pipeline_mode<synchronous>, transform_indices = @transform_3, window_bounds = array<i64: 4, 16>}, {pipeline_mode = #tpu.pipeline_mode<synchronous>, transform_indices = @transform_4, window_bounds = array<i64: 16, 64>}, {pipeline_mode = #tpu.pipeline_mode<synchronous>, transform_indices = @transform_5, window_bounds = array<i64: 16, 64>}, {pipeline_mode = #tpu.pipeline_mode<synchronous>, transform_indices = @transform_6, window_bounds = array<i64: 4, 1, 4>}, {pipeline_mode = #tpu.pipeline_mode<synchronous>, transform_indices = @transform_7, window_bounds = array<i64: 4, 4, 128>}, {pipeline_mode = #tpu.pipeline_mode<synchronous>, transform_indices = @transform_8, window_bounds = array<i64: 128, 128>}, {pipeline_mode = #tpu.pipeline_mode<synchronous>, transform_indices = @transform_9, window_bounds = array<i64: 1, 128>}, {pipeline_mode = #tpu.pipeline_mode<synchronous>, transform_indices = @transform_10, window_bounds = array<i64: 1, 128>}, {pipeline_mode = #tpu.pipeline_mode<synchronous>, transform_indices = @transform_11, window_bounds = array<i64: 16, 48>}, {pipeline_mode = #tpu.pipeline_mode<synchronous>, transform_indices = @transform_12, window_bounds = array<i64: 1, 4>}, {pipeline_mode = #tpu.pipeline_mode<synchronous>, transform_indices = @transform_13, window_bounds = array<i64: 1, 4>}, {pipeline_mode = #tpu.pipeline_mode<synchronous>, transform_indices = @transform_14, window_bounds = array<i64: 1, 4>}, {pipeline_mode = #tpu.pipeline_mode<synchronous>, transform_indices = @transform_15, window_bounds = array<i64: 4, 4, 4>}, {pipeline_mode = #tpu.pipeline_mode<synchronous>, transform_indices = @transform_16, window_bounds = array<i64: 1, 4>}, {pipeline_mode = #tpu.pipeline_mode<synchronous>, transform_indices = @transform_17, window_bounds = array<i64: 4, 16>}, {pipeline_mode = #tpu.pipeline_mode<synchronous>, transform_indices = @transform_18, window_bounds = array<i64: 1, 16>}, {pipeline_mode = #tpu.pipeline_mode<synchronous>, transform_indices = @transform_19, window_bounds = array<i64: 16, 4>}, {pipeline_mode = #tpu.pipeline_mode<synchronous>, transform_indices = @transform_20, window_bounds = array<i64: 1, 4>}, {transform_indices = @transform_21, window_bounds = array<i64: 1>}, {transform_indices = @transform_22, window_bounds = array<i64: 2, 4>}, {transform_indices = @transform_23, window_bounds = array<i64: 2, 128>}]} {
    %c0 = arith.constant 0 : index
    %c0_0 = arith.constant 0 : index
    %0 = vector.load %arg1[%c0, %c0_0] : memref<2x4xf32, #tpu.memory_space<vmem>>, vector<2x4xf32>
    %c0_1 = arith.constant 0 : index
    %c0_2 = arith.constant 0 : index
    %1 = vector.load %arg2[%c0_1, %c0_2] : memref<2x128xf32, #tpu.memory_space<vmem>>, vector<2x128xf32>
    %c0_3 = arith.constant 0 : index
    %c0_4 = arith.constant 0 : index
    %2 = vector.load %arg3[%c0_3, %c0_4] : memref<128x16xf32, #tpu.memory_space<vmem>>, vector<128x16xf32>
    %cst = arith.constant dense<0.000000e+00> : vector<2x16xf32>
    %3 = tpu.matmul %1, %2, %cst {dimension_numbers = #tpu.dot_dimension_numbers<[1], [0], [0], [1], [0, 0, 1, 1], [], []>} : vector<2x128xf32>, vector<128x16xf32>, vector<2x16xf32> -> vector<2x16xf32>
    %c0_5 = arith.constant 0 : index
    %c0_6 = arith.constant 0 : index
    %4 = vector.load %arg4[%c0_5, %c0_6] : memref<4x16xf32, #tpu.memory_space<vmem>>, vector<4x16xf32>
    %cst_7 = arith.constant dense<0.000000e+00> : vector<2x16xf32>
    %5 = tpu.matmul %0, %4, %cst_7 {dimension_numbers = #tpu.dot_dimension_numbers<[1], [0], [0], [1], [0, 0, 1, 1], [], []>} : vector<2x4xf32>, vector<4x16xf32>, vector<2x16xf32> -> vector<2x16xf32>
    %c0_8 = arith.constant 0 : index
    %c0_9 = arith.constant 0 : index
    %6 = vector.load %arg5[%c0_8, %c0_9] : memref<16x64xf32, #tpu.memory_space<vmem>>, vector<16x64xf32>
    %cst_10 = arith.constant dense<0.000000e+00> : vector<2x64xf32>
    %7 = tpu.matmul %3, %6, %cst_10 {dimension_numbers = #tpu.dot_dimension_numbers<[1], [0], [0], [1], [0, 0, 1, 1], [], []>} : vector<2x16xf32>, vector<16x64xf32>, vector<2x64xf32> -> vector<2x64xf32>
    %c0_11 = arith.constant 0 : index
    %c0_12 = arith.constant 0 : index
    %8 = vector.load %arg6[%c0_11, %c0_12] : memref<16x64xf32, #tpu.memory_space<vmem>>, vector<16x64xf32>
    %cst_13 = arith.constant dense<0.000000e+00> : vector<2x64xf32>
    %9 = tpu.matmul %3, %8, %cst_13 {dimension_numbers = #tpu.dot_dimension_numbers<[1], [0], [0], [1], [0, 0, 1, 1], [], []>} : vector<2x16xf32>, vector<16x64xf32>, vector<2x64xf32> -> vector<2x64xf32>
    %c0_14 = arith.constant 0 : index
    %c0_15 = arith.constant 0 : index
    %10 = vector.load %arg13[%c0_14, %c0_15] : memref<1x4xf32, #tpu.memory_space<vmem>>, vector<1x4xf32>
    %c0_16 = arith.constant 0 : index
    %11 = memref.load %arg22[%c0_16] : memref<1xf32, #tpu.memory_space<smem>>
    %cst_17 = arith.constant 1.000000e+00 : f32
    %12 = arith.divf %cst_17, %11 : f32
    %cst_18 = arith.constant 0.000000e+00 : f32
    %13 = vector.broadcast %cst_18 : f32 to vector<2x128xf32>
    %14 = vector.extract_strided_slice %5 {offsets = [0, 0], sizes = [2, 4], strides = [1, 1]} : vector<2x16xf32> to vector<2x4xf32>
    %15 = vector.extract_strided_slice %7 {offsets = [0, 0], sizes = [2, 4], strides = [1, 1]} : vector<2x64xf32> to vector<2x4xf32>
    %16 = arith.mulf %14, %15 : vector<2x4xf32>
    %cst_19 = arith.constant dense<0.000000e+00> : vector<2xf32>
    %17 = vector.multi_reduction <add>, %16, %cst_19 [1] : vector<2x4xf32> to vector<2xf32>
    %18 = vector.shape_cast %17 : vector<2xf32> to vector<2x1xf32>
    %cst_20 = arith.constant 5.000000e-01 : f32
    %19 = vector.broadcast %cst_20 : f32 to vector<2x1xf32>
    %20 = arith.mulf %18, %19 : vector<2x1xf32>
    %21 = vector.extract_strided_slice %7 {offsets = [0, 4], sizes = [2, 4], strides = [1, 1]} : vector<2x64xf32> to vector<2x4xf32>
    %22 = arith.mulf %14, %21 : vector<2x4xf32>
    %cst_21 = arith.constant dense<0.000000e+00> : vector<2xf32>
    %23 = vector.multi_reduction <add>, %22, %cst_21 [1] : vector<2x4xf32> to vector<2xf32>
    %24 = vector.shape_cast %23 : vector<2xf32> to vector<2x1xf32>
    %cst_22 = arith.constant 5.000000e-01 : f32
    %25 = vector.broadcast %cst_22 : f32 to vector<2x1xf32>
    %26 = arith.mulf %24, %25 : vector<2x1xf32>
    %27 = vector.extract_strided_slice %7 {offsets = [0, 8], sizes = [2, 4], strides = [1, 1]} : vector<2x64xf32> to vector<2x4xf32>
    %28 = arith.mulf %14, %27 : vector<2x4xf32>
    %cst_23 = arith.constant dense<0.000000e+00> : vector<2xf32>
    %29 = vector.multi_reduction <add>, %28, %cst_23 [1] : vector<2x4xf32> to vector<2xf32>
    %30 = vector.shape_cast %29 : vector<2xf32> to vector<2x1xf32>
    %cst_24 = arith.constant 5.000000e-01 : f32
    %31 = vector.broadcast %cst_24 : f32 to vector<2x1xf32>
    %32 = arith.mulf %30, %31 : vector<2x1xf32>
    %33 = vector.extract_strided_slice %7 {offsets = [0, 12], sizes = [2, 4], strides = [1, 1]} : vector<2x64xf32> to vector<2x4xf32>
    %34 = arith.mulf %14, %33 : vector<2x4xf32>
    %cst_25 = arith.constant dense<0.000000e+00> : vector<2xf32>
    %35 = vector.multi_reduction <add>, %34, %cst_25 [1] : vector<2x4xf32> to vector<2xf32>
    %36 = vector.shape_cast %35 : vector<2xf32> to vector<2x1xf32>
    %cst_26 = arith.constant 5.000000e-01 : f32
    %37 = vector.broadcast %cst_26 : f32 to vector<2x1xf32>
    %38 = arith.mulf %36, %37 : vector<2x1xf32>
    %39 = arith.maximumf %20, %26 : vector<2x1xf32>
    %40 = arith.maximumf %39, %32 : vector<2x1xf32>
    %41 = arith.maximumf %40, %38 : vector<2x1xf32>
    %42 = arith.subf %20, %41 : vector<2x1xf32>
    %43 = math.exp %42 : vector<2x1xf32>
    %44 = arith.subf %26, %41 : vector<2x1xf32>
    %45 = math.exp %44 : vector<2x1xf32>
    %46 = arith.subf %32, %41 : vector<2x1xf32>
    %47 = math.exp %46 : vector<2x1xf32>
    %48 = arith.subf %38, %41 : vector<2x1xf32>
    %49 = math.exp %48 : vector<2x1xf32>
    %50 = arith.addf %43, %45 : vector<2x1xf32>
    %51 = arith.addf %50, %47 : vector<2x1xf32>
    %52 = arith.addf %51, %49 : vector<2x1xf32>
    %cst_27 = arith.constant 1.000000e+00 : f32
    %53 = vector.broadcast %cst_27 : f32 to vector<2x1xf32>
    %54 = arith.divf %53, %52 : vector<2x1xf32>
    %55 = arith.mulf %43, %54 : vector<2x1xf32>
    %56 = arith.mulf %45, %54 : vector<2x1xf32>
    %57 = arith.mulf %47, %54 : vector<2x1xf32>
    %58 = arith.mulf %49, %54 : vector<2x1xf32>
    %59 = vector.extract_strided_slice %9 {offsets = [0, 0], sizes = [2, 4], strides = [1, 1]} : vector<2x64xf32> to vector<2x4xf32>
    %60 = vector.broadcast %55 : vector<2x1xf32> to vector<2x4xf32>
    %61 = arith.mulf %60, %59 : vector<2x4xf32>
    %62 = vector.extract_strided_slice %9 {offsets = [0, 4], sizes = [2, 4], strides = [1, 1]} : vector<2x64xf32> to vector<2x4xf32>
    %63 = vector.broadcast %56 : vector<2x1xf32> to vector<2x4xf32>
    %64 = arith.mulf %63, %62 : vector<2x4xf32>
    %65 = arith.addf %61, %64 : vector<2x4xf32>
    %66 = vector.extract_strided_slice %9 {offsets = [0, 8], sizes = [2, 4], strides = [1, 1]} : vector<2x64xf32> to vector<2x4xf32>
    %67 = vector.broadcast %57 : vector<2x1xf32> to vector<2x4xf32>
    %68 = arith.mulf %67, %66 : vector<2x4xf32>
    %69 = arith.addf %65, %68 : vector<2x4xf32>
    %70 = vector.extract_strided_slice %9 {offsets = [0, 12], sizes = [2, 4], strides = [1, 1]} : vector<2x64xf32> to vector<2x4xf32>
    %71 = vector.broadcast %58 : vector<2x1xf32> to vector<2x4xf32>
    %72 = arith.mulf %71, %70 : vector<2x4xf32>
    %73 = arith.addf %69, %72 : vector<2x4xf32>
    %74 = arith.addf %73, %0 : vector<2x4xf32>
    %75 = arith.mulf %74, %74 : vector<2x4xf32>
    %cst_28 = arith.constant dense<0.000000e+00> : vector<2xf32>
    %76 = vector.multi_reduction <add>, %75, %cst_28 [1] : vector<2x4xf32> to vector<2xf32>
    %77 = vector.shape_cast %76 : vector<2xf32> to vector<2x1xf32>
    %cst_29 = arith.constant 4.000000e+00 : f32
    %78 = vector.broadcast %cst_29 : f32 to vector<2x1xf32>
    %79 = arith.divf %77, %78 : vector<2x1xf32>
    %cst_30 = arith.constant 9.99999993E-9 : f32
    %80 = vector.broadcast %cst_30 : f32 to vector<2x1xf32>
    %81 = arith.addf %79, %80 : vector<2x1xf32>
    %82 = math.rsqrt %81 : vector<2x1xf32>
    %83 = vector.broadcast %82 : vector<2x1xf32> to vector<2x4xf32>
    %84 = arith.mulf %74, %83 : vector<2x4xf32>
    %85 = vector.broadcast %10 : vector<1x4xf32> to vector<2x4xf32>
    %86 = arith.mulf %84, %85 : vector<2x4xf32>
    %c0_31 = arith.constant 0 : index
    %c0_32 = arith.constant 0 : index
    %c0_33 = arith.constant 0 : index
    %87 = vector.load %arg7[%c0_31, %c0_32, %c0_33] : memref<4x1x4xf32, #tpu.memory_space<vmem>>, vector<1x1x4xf32>
    %88 = vector.shape_cast %87 : vector<1x1x4xf32> to vector<1x4xf32>
    %89 = vector.broadcast %88 : vector<1x4xf32> to vector<2x4xf32>
    %90 = arith.mulf %86, %89 : vector<2x4xf32>
    %cst_34 = arith.constant dense<0.000000e+00> : vector<2xf32>
    %91 = vector.multi_reduction <add>, %90, %cst_34 [1] : vector<2x4xf32> to vector<2xf32>
    %92 = vector.shape_cast %91 : vector<2xf32> to vector<2x1xf32>
    %93 = vector.broadcast %12 : f32 to vector<2x1xf32>
    %94 = arith.mulf %92, %93 : vector<2x1xf32>
    %c0_35 = arith.constant 0 : index
    %c0_36 = arith.constant 0 : index
    %c0_37 = arith.constant 0 : index
    %95 = vector.load %arg8[%c0_35, %c0_36, %c0_37] : memref<4x4x128xf32, #tpu.memory_space<vmem>>, vector<1x4x128xf32>
    %96 = vector.shape_cast %95 : vector<1x4x128xf32> to vector<4x128xf32>
    %cst_38 = arith.constant dense<0.000000e+00> : vector<2x128xf32>
    %97 = tpu.matmul %86, %96, %cst_38 {dimension_numbers = #tpu.dot_dimension_numbers<[1], [0], [0], [1], [0, 0, 1, 1], [], []>} : vector<2x4xf32>, vector<4x128xf32>, vector<2x128xf32> -> vector<2x128xf32>
    %98 = arith.addf %13, %97 : vector<2x128xf32>
    %99 = vector.extract_strided_slice %5 {offsets = [0, 4], sizes = [2, 4], strides = [1, 1]} : vector<2x16xf32> to vector<2x4xf32>
    %100 = vector.extract_strided_slice %7 {offsets = [0, 16], sizes = [2, 4], strides = [1, 1]} : vector<2x64xf32> to vector<2x4xf32>
    %101 = arith.mulf %99, %100 : vector<2x4xf32>
    %cst_39 = arith.constant dense<0.000000e+00> : vector<2xf32>
    %102 = vector.multi_reduction <add>, %101, %cst_39 [1] : vector<2x4xf32> to vector<2xf32>
    %103 = vector.shape_cast %102 : vector<2xf32> to vector<2x1xf32>
    %cst_40 = arith.constant 5.000000e-01 : f32
    %104 = vector.broadcast %cst_40 : f32 to vector<2x1xf32>
    %105 = arith.mulf %103, %104 : vector<2x1xf32>
    %106 = vector.extract_strided_slice %7 {offsets = [0, 20], sizes = [2, 4], strides = [1, 1]} : vector<2x64xf32> to vector<2x4xf32>
    %107 = arith.mulf %99, %106 : vector<2x4xf32>
    %cst_41 = arith.constant dense<0.000000e+00> : vector<2xf32>
    %108 = vector.multi_reduction <add>, %107, %cst_41 [1] : vector<2x4xf32> to vector<2xf32>
    %109 = vector.shape_cast %108 : vector<2xf32> to vector<2x1xf32>
    %cst_42 = arith.constant 5.000000e-01 : f32
    %110 = vector.broadcast %cst_42 : f32 to vector<2x1xf32>
    %111 = arith.mulf %109, %110 : vector<2x1xf32>
    %112 = vector.extract_strided_slice %7 {offsets = [0, 24], sizes = [2, 4], strides = [1, 1]} : vector<2x64xf32> to vector<2x4xf32>
    %113 = arith.mulf %99, %112 : vector<2x4xf32>
    %cst_43 = arith.constant dense<0.000000e+00> : vector<2xf32>
    %114 = vector.multi_reduction <add>, %113, %cst_43 [1] : vector<2x4xf32> to vector<2xf32>
    %115 = vector.shape_cast %114 : vector<2xf32> to vector<2x1xf32>
    %cst_44 = arith.constant 5.000000e-01 : f32
    %116 = vector.broadcast %cst_44 : f32 to vector<2x1xf32>
    %117 = arith.mulf %115, %116 : vector<2x1xf32>
    %118 = vector.extract_strided_slice %7 {offsets = [0, 28], sizes = [2, 4], strides = [1, 1]} : vector<2x64xf32> to vector<2x4xf32>
    %119 = arith.mulf %99, %118 : vector<2x4xf32>
    %cst_45 = arith.constant dense<0.000000e+00> : vector<2xf32>
    %120 = vector.multi_reduction <add>, %119, %cst_45 [1] : vector<2x4xf32> to vector<2xf32>
    %121 = vector.shape_cast %120 : vector<2xf32> to vector<2x1xf32>
    %cst_46 = arith.constant 5.000000e-01 : f32
    %122 = vector.broadcast %cst_46 : f32 to vector<2x1xf32>
    %123 = arith.mulf %121, %122 : vector<2x1xf32>
    %124 = arith.maximumf %105, %111 : vector<2x1xf32>
    %125 = arith.maximumf %124, %117 : vector<2x1xf32>
    %126 = arith.maximumf %125, %123 : vector<2x1xf32>
    %127 = arith.subf %105, %126 : vector<2x1xf32>
    %128 = math.exp %127 : vector<2x1xf32>
    %129 = arith.subf %111, %126 : vector<2x1xf32>
    %130 = math.exp %129 : vector<2x1xf32>
    %131 = arith.subf %117, %126 : vector<2x1xf32>
    %132 = math.exp %131 : vector<2x1xf32>
    %133 = arith.subf %123, %126 : vector<2x1xf32>
    %134 = math.exp %133 : vector<2x1xf32>
    %135 = arith.addf %128, %130 : vector<2x1xf32>
    %136 = arith.addf %135, %132 : vector<2x1xf32>
    %137 = arith.addf %136, %134 : vector<2x1xf32>
    %cst_47 = arith.constant 1.000000e+00 : f32
    %138 = vector.broadcast %cst_47 : f32 to vector<2x1xf32>
    %139 = arith.divf %138, %137 : vector<2x1xf32>
    %140 = arith.mulf %128, %139 : vector<2x1xf32>
    %141 = arith.mulf %130, %139 : vector<2x1xf32>
    %142 = arith.mulf %132, %139 : vector<2x1xf32>
    %143 = arith.mulf %134, %139 : vector<2x1xf32>
    %144 = vector.extract_strided_slice %9 {offsets = [0, 16], sizes = [2, 4], strides = [1, 1]} : vector<2x64xf32> to vector<2x4xf32>
    %145 = vector.broadcast %140 : vector<2x1xf32> to vector<2x4xf32>
    %146 = arith.mulf %145, %144 : vector<2x4xf32>
    %147 = vector.extract_strided_slice %9 {offsets = [0, 20], sizes = [2, 4], strides = [1, 1]} : vector<2x64xf32> to vector<2x4xf32>
    %148 = vector.broadcast %141 : vector<2x1xf32> to vector<2x4xf32>
    %149 = arith.mulf %148, %147 : vector<2x4xf32>
    %150 = arith.addf %146, %149 : vector<2x4xf32>
    %151 = vector.extract_strided_slice %9 {offsets = [0, 24], sizes = [2, 4], strides = [1, 1]} : vector<2x64xf32> to vector<2x4xf32>
    %152 = vector.broadcast %142 : vector<2x1xf32> to vector<2x4xf32>
    %153 = arith.mulf %152, %151 : vector<2x4xf32>
    %154 = arith.addf %150, %153 : vector<2x4xf32>
    %155 = vector.extract_strided_slice %9 {offsets = [0, 28], sizes = [2, 4], strides = [1, 1]} : vector<2x64xf32> to vector<2x4xf32>
    %156 = vector.broadcast %143 : vector<2x1xf32> to vector<2x4xf32>
    %157 = arith.mulf %156, %155 : vector<2x4xf32>
    %158 = arith.addf %154, %157 : vector<2x4xf32>
    %159 = arith.addf %158, %0 : vector<2x4xf32>
    %160 = arith.mulf %159, %159 : vector<2x4xf32>
    %cst_48 = arith.constant dense<0.000000e+00> : vector<2xf32>
    %161 = vector.multi_reduction <add>, %160, %cst_48 [1] : vector<2x4xf32> to vector<2xf32>
    %162 = vector.shape_cast %161 : vector<2xf32> to vector<2x1xf32>
    %cst_49 = arith.constant 4.000000e+00 : f32
    %163 = vector.broadcast %cst_49 : f32 to vector<2x1xf32>
    %164 = arith.divf %162, %163 : vector<2x1xf32>
    %cst_50 = arith.constant 9.99999993E-9 : f32
    %165 = vector.broadcast %cst_50 : f32 to vector<2x1xf32>
    %166 = arith.addf %164, %165 : vector<2x1xf32>
    %167 = math.rsqrt %166 : vector<2x1xf32>
    %168 = vector.broadcast %167 : vector<2x1xf32> to vector<2x4xf32>
    %169 = arith.mulf %159, %168 : vector<2x4xf32>
    %170 = vector.broadcast %10 : vector<1x4xf32> to vector<2x4xf32>
    %171 = arith.mulf %169, %170 : vector<2x4xf32>
    %c1 = arith.constant 1 : index
    %c0_51 = arith.constant 0 : index
    %c0_52 = arith.constant 0 : index
    %172 = vector.load %arg7[%c1, %c0_51, %c0_52] : memref<4x1x4xf32, #tpu.memory_space<vmem>>, vector<1x1x4xf32>
    %173 = vector.shape_cast %172 : vector<1x1x4xf32> to vector<1x4xf32>
    %174 = vector.broadcast %173 : vector<1x4xf32> to vector<2x4xf32>
    %175 = arith.mulf %171, %174 : vector<2x4xf32>
    %cst_53 = arith.constant dense<0.000000e+00> : vector<2xf32>
    %176 = vector.multi_reduction <add>, %175, %cst_53 [1] : vector<2x4xf32> to vector<2xf32>
    %177 = vector.shape_cast %176 : vector<2xf32> to vector<2x1xf32>
    %178 = vector.broadcast %12 : f32 to vector<2x1xf32>
    %179 = arith.mulf %177, %178 : vector<2x1xf32>
    %c1_54 = arith.constant 1 : index
    %c0_55 = arith.constant 0 : index
    %c0_56 = arith.constant 0 : index
    %180 = vector.load %arg8[%c1_54, %c0_55, %c0_56] : memref<4x4x128xf32, #tpu.memory_space<vmem>>, vector<1x4x128xf32>
    %181 = vector.shape_cast %180 : vector<1x4x128xf32> to vector<4x128xf32>
    %cst_57 = arith.constant dense<0.000000e+00> : vector<2x128xf32>
    %182 = tpu.matmul %171, %181, %cst_57 {dimension_numbers = #tpu.dot_dimension_numbers<[1], [0], [0], [1], [0, 0, 1, 1], [], []>} : vector<2x4xf32>, vector<4x128xf32>, vector<2x128xf32> -> vector<2x128xf32>
    %183 = arith.addf %98, %182 : vector<2x128xf32>
    %184 = vector.extract_strided_slice %5 {offsets = [0, 8], sizes = [2, 4], strides = [1, 1]} : vector<2x16xf32> to vector<2x4xf32>
    %185 = vector.extract_strided_slice %7 {offsets = [0, 32], sizes = [2, 4], strides = [1, 1]} : vector<2x64xf32> to vector<2x4xf32>
    %186 = arith.mulf %184, %185 : vector<2x4xf32>
    %cst_58 = arith.constant dense<0.000000e+00> : vector<2xf32>
    %187 = vector.multi_reduction <add>, %186, %cst_58 [1] : vector<2x4xf32> to vector<2xf32>
    %188 = vector.shape_cast %187 : vector<2xf32> to vector<2x1xf32>
    %cst_59 = arith.constant 5.000000e-01 : f32
    %189 = vector.broadcast %cst_59 : f32 to vector<2x1xf32>
    %190 = arith.mulf %188, %189 : vector<2x1xf32>
    %191 = vector.extract_strided_slice %7 {offsets = [0, 36], sizes = [2, 4], strides = [1, 1]} : vector<2x64xf32> to vector<2x4xf32>
    %192 = arith.mulf %184, %191 : vector<2x4xf32>
    %cst_60 = arith.constant dense<0.000000e+00> : vector<2xf32>
    %193 = vector.multi_reduction <add>, %192, %cst_60 [1] : vector<2x4xf32> to vector<2xf32>
    %194 = vector.shape_cast %193 : vector<2xf32> to vector<2x1xf32>
    %cst_61 = arith.constant 5.000000e-01 : f32
    %195 = vector.broadcast %cst_61 : f32 to vector<2x1xf32>
    %196 = arith.mulf %194, %195 : vector<2x1xf32>
    %197 = vector.extract_strided_slice %7 {offsets = [0, 40], sizes = [2, 4], strides = [1, 1]} : vector<2x64xf32> to vector<2x4xf32>
    %198 = arith.mulf %184, %197 : vector<2x4xf32>
    %cst_62 = arith.constant dense<0.000000e+00> : vector<2xf32>
    %199 = vector.multi_reduction <add>, %198, %cst_62 [1] : vector<2x4xf32> to vector<2xf32>
    %200 = vector.shape_cast %199 : vector<2xf32> to vector<2x1xf32>
    %cst_63 = arith.constant 5.000000e-01 : f32
    %201 = vector.broadcast %cst_63 : f32 to vector<2x1xf32>
    %202 = arith.mulf %200, %201 : vector<2x1xf32>
    %203 = vector.extract_strided_slice %7 {offsets = [0, 44], sizes = [2, 4], strides = [1, 1]} : vector<2x64xf32> to vector<2x4xf32>
    %204 = arith.mulf %184, %203 : vector<2x4xf32>
    %cst_64 = arith.constant dense<0.000000e+00> : vector<2xf32>
    %205 = vector.multi_reduction <add>, %204, %cst_64 [1] : vector<2x4xf32> to vector<2xf32>
    %206 = vector.shape_cast %205 : vector<2xf32> to vector<2x1xf32>
    %cst_65 = arith.constant 5.000000e-01 : f32
    %207 = vector.broadcast %cst_65 : f32 to vector<2x1xf32>
    %208 = arith.mulf %206, %207 : vector<2x1xf32>
    %209 = arith.maximumf %190, %196 : vector<2x1xf32>
    %210 = arith.maximumf %209, %202 : vector<2x1xf32>
    %211 = arith.maximumf %210, %208 : vector<2x1xf32>
    %212 = arith.subf %190, %211 : vector<2x1xf32>
    %213 = math.exp %212 : vector<2x1xf32>
    %214 = arith.subf %196, %211 : vector<2x1xf32>
    %215 = math.exp %214 : vector<2x1xf32>
    %216 = arith.subf %202, %211 : vector<2x1xf32>
    %217 = math.exp %216 : vector<2x1xf32>
    %218 = arith.subf %208, %211 : vector<2x1xf32>
    %219 = math.exp %218 : vector<2x1xf32>
    %220 = arith.addf %213, %215 : vector<2x1xf32>
    %221 = arith.addf %220, %217 : vector<2x1xf32>
    %222 = arith.addf %221, %219 : vector<2x1xf32>
    %cst_66 = arith.constant 1.000000e+00 : f32
    %223 = vector.broadcast %cst_66 : f32 to vector<2x1xf32>
    %224 = arith.divf %223, %222 : vector<2x1xf32>
    %225 = arith.mulf %213, %224 : vector<2x1xf32>
    %226 = arith.mulf %215, %224 : vector<2x1xf32>
    %227 = arith.mulf %217, %224 : vector<2x1xf32>
    %228 = arith.mulf %219, %224 : vector<2x1xf32>
    %229 = vector.extract_strided_slice %9 {offsets = [0, 32], sizes = [2, 4], strides = [1, 1]} : vector<2x64xf32> to vector<2x4xf32>
    %230 = vector.broadcast %225 : vector<2x1xf32> to vector<2x4xf32>
    %231 = arith.mulf %230, %229 : vector<2x4xf32>
    %232 = vector.extract_strided_slice %9 {offsets = [0, 36], sizes = [2, 4], strides = [1, 1]} : vector<2x64xf32> to vector<2x4xf32>
    %233 = vector.broadcast %226 : vector<2x1xf32> to vector<2x4xf32>
    %234 = arith.mulf %233, %232 : vector<2x4xf32>
    %235 = arith.addf %231, %234 : vector<2x4xf32>
    %236 = vector.extract_strided_slice %9 {offsets = [0, 40], sizes = [2, 4], strides = [1, 1]} : vector<2x64xf32> to vector<2x4xf32>
    %237 = vector.broadcast %227 : vector<2x1xf32> to vector<2x4xf32>
    %238 = arith.mulf %237, %236 : vector<2x4xf32>
    %239 = arith.addf %235, %238 : vector<2x4xf32>
    %240 = vector.extract_strided_slice %9 {offsets = [0, 44], sizes = [2, 4], strides = [1, 1]} : vector<2x64xf32> to vector<2x4xf32>
    %241 = vector.broadcast %228 : vector<2x1xf32> to vector<2x4xf32>
    %242 = arith.mulf %241, %240 : vector<2x4xf32>
    %243 = arith.addf %239, %242 : vector<2x4xf32>
    %244 = arith.addf %243, %0 : vector<2x4xf32>
    %245 = arith.mulf %244, %244 : vector<2x4xf32>
    %cst_67 = arith.constant dense<0.000000e+00> : vector<2xf32>
    %246 = vector.multi_reduction <add>, %245, %cst_67 [1] : vector<2x4xf32> to vector<2xf32>
    %247 = vector.shape_cast %246 : vector<2xf32> to vector<2x1xf32>
    %cst_68 = arith.constant 4.000000e+00 : f32
    %248 = vector.broadcast %cst_68 : f32 to vector<2x1xf32>
    %249 = arith.divf %247, %248 : vector<2x1xf32>
    %cst_69 = arith.constant 9.99999993E-9 : f32
    %250 = vector.broadcast %cst_69 : f32 to vector<2x1xf32>
    %251 = arith.addf %249, %250 : vector<2x1xf32>
    %252 = math.rsqrt %251 : vector<2x1xf32>
    %253 = vector.broadcast %252 : vector<2x1xf32> to vector<2x4xf32>
    %254 = arith.mulf %244, %253 : vector<2x4xf32>
    %255 = vector.broadcast %10 : vector<1x4xf32> to vector<2x4xf32>
    %256 = arith.mulf %254, %255 : vector<2x4xf32>
    %c2 = arith.constant 2 : index
    %c0_70 = arith.constant 0 : index
    %c0_71 = arith.constant 0 : index
    %257 = vector.load %arg7[%c2, %c0_70, %c0_71] : memref<4x1x4xf32, #tpu.memory_space<vmem>>, vector<1x1x4xf32>
    %258 = vector.shape_cast %257 : vector<1x1x4xf32> to vector<1x4xf32>
    %259 = vector.broadcast %258 : vector<1x4xf32> to vector<2x4xf32>
    %260 = arith.mulf %256, %259 : vector<2x4xf32>
    %cst_72 = arith.constant dense<0.000000e+00> : vector<2xf32>
    %261 = vector.multi_reduction <add>, %260, %cst_72 [1] : vector<2x4xf32> to vector<2xf32>
    %262 = vector.shape_cast %261 : vector<2xf32> to vector<2x1xf32>
    %263 = vector.broadcast %12 : f32 to vector<2x1xf32>
    %264 = arith.mulf %262, %263 : vector<2x1xf32>
    %c2_73 = arith.constant 2 : index
    %c0_74 = arith.constant 0 : index
    %c0_75 = arith.constant 0 : index
    %265 = vector.load %arg8[%c2_73, %c0_74, %c0_75] : memref<4x4x128xf32, #tpu.memory_space<vmem>>, vector<1x4x128xf32>
    %266 = vector.shape_cast %265 : vector<1x4x128xf32> to vector<4x128xf32>
    %cst_76 = arith.constant dense<0.000000e+00> : vector<2x128xf32>
    %267 = tpu.matmul %256, %266, %cst_76 {dimension_numbers = #tpu.dot_dimension_numbers<[1], [0], [0], [1], [0, 0, 1, 1], [], []>} : vector<2x4xf32>, vector<4x128xf32>, vector<2x128xf32> -> vector<2x128xf32>
    %268 = arith.addf %183, %267 : vector<2x128xf32>
    %269 = vector.extract_strided_slice %5 {offsets = [0, 12], sizes = [2, 4], strides = [1, 1]} : vector<2x16xf32> to vector<2x4xf32>
    %270 = vector.extract_strided_slice %7 {offsets = [0, 48], sizes = [2, 4], strides = [1, 1]} : vector<2x64xf32> to vector<2x4xf32>
    %271 = arith.mulf %269, %270 : vector<2x4xf32>
    %cst_77 = arith.constant dense<0.000000e+00> : vector<2xf32>
    %272 = vector.multi_reduction <add>, %271, %cst_77 [1] : vector<2x4xf32> to vector<2xf32>
    %273 = vector.shape_cast %272 : vector<2xf32> to vector<2x1xf32>
    %cst_78 = arith.constant 5.000000e-01 : f32
    %274 = vector.broadcast %cst_78 : f32 to vector<2x1xf32>
    %275 = arith.mulf %273, %274 : vector<2x1xf32>
    %276 = vector.extract_strided_slice %7 {offsets = [0, 52], sizes = [2, 4], strides = [1, 1]} : vector<2x64xf32> to vector<2x4xf32>
    %277 = arith.mulf %269, %276 : vector<2x4xf32>
    %cst_79 = arith.constant dense<0.000000e+00> : vector<2xf32>
    %278 = vector.multi_reduction <add>, %277, %cst_79 [1] : vector<2x4xf32> to vector<2xf32>
    %279 = vector.shape_cast %278 : vector<2xf32> to vector<2x1xf32>
    %cst_80 = arith.constant 5.000000e-01 : f32
    %280 = vector.broadcast %cst_80 : f32 to vector<2x1xf32>
    %281 = arith.mulf %279, %280 : vector<2x1xf32>
    %282 = vector.extract_strided_slice %7 {offsets = [0, 56], sizes = [2, 4], strides = [1, 1]} : vector<2x64xf32> to vector<2x4xf32>
    %283 = arith.mulf %269, %282 : vector<2x4xf32>
    %cst_81 = arith.constant dense<0.000000e+00> : vector<2xf32>
    %284 = vector.multi_reduction <add>, %283, %cst_81 [1] : vector<2x4xf32> to vector<2xf32>
    %285 = vector.shape_cast %284 : vector<2xf32> to vector<2x1xf32>
    %cst_82 = arith.constant 5.000000e-01 : f32
    %286 = vector.broadcast %cst_82 : f32 to vector<2x1xf32>
    %287 = arith.mulf %285, %286 : vector<2x1xf32>
    %288 = vector.extract_strided_slice %7 {offsets = [0, 60], sizes = [2, 4], strides = [1, 1]} : vector<2x64xf32> to vector<2x4xf32>
    %289 = arith.mulf %269, %288 : vector<2x4xf32>
    %cst_83 = arith.constant dense<0.000000e+00> : vector<2xf32>
    %290 = vector.multi_reduction <add>, %289, %cst_83 [1] : vector<2x4xf32> to vector<2xf32>
    %291 = vector.shape_cast %290 : vector<2xf32> to vector<2x1xf32>
    %cst_84 = arith.constant 5.000000e-01 : f32
    %292 = vector.broadcast %cst_84 : f32 to vector<2x1xf32>
    %293 = arith.mulf %291, %292 : vector<2x1xf32>
    %294 = arith.maximumf %275, %281 : vector<2x1xf32>
    %295 = arith.maximumf %294, %287 : vector<2x1xf32>
    %296 = arith.maximumf %295, %293 : vector<2x1xf32>
    %297 = arith.subf %275, %296 : vector<2x1xf32>
    %298 = math.exp %297 : vector<2x1xf32>
    %299 = arith.subf %281, %296 : vector<2x1xf32>
    %300 = math.exp %299 : vector<2x1xf32>
    %301 = arith.subf %287, %296 : vector<2x1xf32>
    %302 = math.exp %301 : vector<2x1xf32>
    %303 = arith.subf %293, %296 : vector<2x1xf32>
    %304 = math.exp %303 : vector<2x1xf32>
    %305 = arith.addf %298, %300 : vector<2x1xf32>
    %306 = arith.addf %305, %302 : vector<2x1xf32>
    %307 = arith.addf %306, %304 : vector<2x1xf32>
    %cst_85 = arith.constant 1.000000e+00 : f32
    %308 = vector.broadcast %cst_85 : f32 to vector<2x1xf32>
    %309 = arith.divf %308, %307 : vector<2x1xf32>
    %310 = arith.mulf %298, %309 : vector<2x1xf32>
    %311 = arith.mulf %300, %309 : vector<2x1xf32>
    %312 = arith.mulf %302, %309 : vector<2x1xf32>
    %313 = arith.mulf %304, %309 : vector<2x1xf32>
    %314 = vector.extract_strided_slice %9 {offsets = [0, 48], sizes = [2, 4], strides = [1, 1]} : vector<2x64xf32> to vector<2x4xf32>
    %315 = vector.broadcast %310 : vector<2x1xf32> to vector<2x4xf32>
    %316 = arith.mulf %315, %314 : vector<2x4xf32>
    %317 = vector.extract_strided_slice %9 {offsets = [0, 52], sizes = [2, 4], strides = [1, 1]} : vector<2x64xf32> to vector<2x4xf32>
    %318 = vector.broadcast %311 : vector<2x1xf32> to vector<2x4xf32>
    %319 = arith.mulf %318, %317 : vector<2x4xf32>
    %320 = arith.addf %316, %319 : vector<2x4xf32>
    %321 = vector.extract_strided_slice %9 {offsets = [0, 56], sizes = [2, 4], strides = [1, 1]} : vector<2x64xf32> to vector<2x4xf32>
    %322 = vector.broadcast %312 : vector<2x1xf32> to vector<2x4xf32>
    %323 = arith.mulf %322, %321 : vector<2x4xf32>
    %324 = arith.addf %320, %323 : vector<2x4xf32>
    %325 = vector.extract_strided_slice %9 {offsets = [0, 60], sizes = [2, 4], strides = [1, 1]} : vector<2x64xf32> to vector<2x4xf32>
    %326 = vector.broadcast %313 : vector<2x1xf32> to vector<2x4xf32>
    %327 = arith.mulf %326, %325 : vector<2x4xf32>
    %328 = arith.addf %324, %327 : vector<2x4xf32>
    %329 = arith.addf %328, %0 : vector<2x4xf32>
    %330 = arith.mulf %329, %329 : vector<2x4xf32>
    %cst_86 = arith.constant dense<0.000000e+00> : vector<2xf32>
    %331 = vector.multi_reduction <add>, %330, %cst_86 [1] : vector<2x4xf32> to vector<2xf32>
    %332 = vector.shape_cast %331 : vector<2xf32> to vector<2x1xf32>
    %cst_87 = arith.constant 4.000000e+00 : f32
    %333 = vector.broadcast %cst_87 : f32 to vector<2x1xf32>
    %334 = arith.divf %332, %333 : vector<2x1xf32>
    %cst_88 = arith.constant 9.99999993E-9 : f32
    %335 = vector.broadcast %cst_88 : f32 to vector<2x1xf32>
    %336 = arith.addf %334, %335 : vector<2x1xf32>
    %337 = math.rsqrt %336 : vector<2x1xf32>
    %338 = vector.broadcast %337 : vector<2x1xf32> to vector<2x4xf32>
    %339 = arith.mulf %329, %338 : vector<2x4xf32>
    %340 = vector.broadcast %10 : vector<1x4xf32> to vector<2x4xf32>
    %341 = arith.mulf %339, %340 : vector<2x4xf32>
    %c3 = arith.constant 3 : index
    %c0_89 = arith.constant 0 : index
    %c0_90 = arith.constant 0 : index
    %342 = vector.load %arg7[%c3, %c0_89, %c0_90] : memref<4x1x4xf32, #tpu.memory_space<vmem>>, vector<1x1x4xf32>
    %343 = vector.shape_cast %342 : vector<1x1x4xf32> to vector<1x4xf32>
    %344 = vector.broadcast %343 : vector<1x4xf32> to vector<2x4xf32>
    %345 = arith.mulf %341, %344 : vector<2x4xf32>
    %cst_91 = arith.constant dense<0.000000e+00> : vector<2xf32>
    %346 = vector.multi_reduction <add>, %345, %cst_91 [1] : vector<2x4xf32> to vector<2xf32>
    %347 = vector.shape_cast %346 : vector<2xf32> to vector<2x1xf32>
    %348 = vector.broadcast %12 : f32 to vector<2x1xf32>
    %349 = arith.mulf %347, %348 : vector<2x1xf32>
    %c3_92 = arith.constant 3 : index
    %c0_93 = arith.constant 0 : index
    %c0_94 = arith.constant 0 : index
    %350 = vector.load %arg8[%c3_92, %c0_93, %c0_94] : memref<4x4x128xf32, #tpu.memory_space<vmem>>, vector<1x4x128xf32>
    %351 = vector.shape_cast %350 : vector<1x4x128xf32> to vector<4x128xf32>
    %cst_95 = arith.constant dense<0.000000e+00> : vector<2x128xf32>
    %352 = tpu.matmul %341, %351, %cst_95 {dimension_numbers = #tpu.dot_dimension_numbers<[1], [0], [0], [1], [0, 0, 1, 1], [], []>} : vector<2x4xf32>, vector<4x128xf32>, vector<2x128xf32> -> vector<2x128xf32>
    %353 = arith.addf %268, %352 : vector<2x128xf32>
    %354 = arith.maximumf %94, %179 : vector<2x1xf32>
    %355 = arith.maximumf %354, %264 : vector<2x1xf32>
    %356 = arith.maximumf %355, %349 : vector<2x1xf32>
    %357 = arith.subf %94, %356 : vector<2x1xf32>
    %358 = math.exp %357 : vector<2x1xf32>
    %359 = arith.subf %179, %356 : vector<2x1xf32>
    %360 = math.exp %359 : vector<2x1xf32>
    %361 = arith.subf %264, %356 : vector<2x1xf32>
    %362 = math.exp %361 : vector<2x1xf32>
    %363 = arith.subf %349, %356 : vector<2x1xf32>
    %364 = math.exp %363 : vector<2x1xf32>
    %365 = arith.addf %358, %360 : vector<2x1xf32>
    %366 = arith.addf %365, %362 : vector<2x1xf32>
    %367 = arith.addf %366, %364 : vector<2x1xf32>
    %cst_96 = arith.constant 1.000000e+00 : f32
    %368 = vector.broadcast %cst_96 : f32 to vector<2x1xf32>
    %369 = arith.divf %368, %367 : vector<2x1xf32>
    %370 = arith.mulf %358, %369 : vector<2x1xf32>
    %371 = arith.mulf %360, %369 : vector<2x1xf32>
    %372 = arith.mulf %362, %369 : vector<2x1xf32>
    %373 = arith.mulf %364, %369 : vector<2x1xf32>
    %374 = tpu.iota {dimensions = array<i32: 1>} : vector<1x128xi32>
    %cst_97 = arith.constant 0.000000e+00 : f32
    %375 = vector.broadcast %cst_97 : f32 to vector<2x128xf32>
    %c0_i32 = arith.constant 0 : i32
    %376 = vector.broadcast %c0_i32 : i32 to vector<1x128xi32>
    %377 = arith.cmpi sge, %374, %376 : vector<1x128xi32>
    %c32_i32 = arith.constant 32 : i32
    %378 = vector.broadcast %c32_i32 : i32 to vector<1x128xi32>
    %379 = arith.cmpi slt, %374, %378 : vector<1x128xi32>
    %380 = arith.andi %377, %379 : vector<1x128xi1>
    %381 = arith.extui %380 : vector<1x128xi1> to vector<1x128xi32>
    %382 = arith.sitofp %381 : vector<1x128xi32> to vector<1x128xf32>
    %383 = vector.broadcast %370 : vector<2x1xf32> to vector<2x128xf32>
    %384 = vector.broadcast %382 : vector<1x128xf32> to vector<2x128xf32>
    %385 = arith.mulf %383, %384 : vector<2x128xf32>
    %386 = arith.addf %375, %385 : vector<2x128xf32>
    %c32_i32_98 = arith.constant 32 : i32
    %387 = vector.broadcast %c32_i32_98 : i32 to vector<1x128xi32>
    %388 = arith.cmpi sge, %374, %387 : vector<1x128xi32>
    %c64_i32 = arith.constant 64 : i32
    %389 = vector.broadcast %c64_i32 : i32 to vector<1x128xi32>
    %390 = arith.cmpi slt, %374, %389 : vector<1x128xi32>
    %391 = arith.andi %388, %390 : vector<1x128xi1>
    %392 = arith.extui %391 : vector<1x128xi1> to vector<1x128xi32>
    %393 = arith.sitofp %392 : vector<1x128xi32> to vector<1x128xf32>
    %394 = vector.broadcast %371 : vector<2x1xf32> to vector<2x128xf32>
    %395 = vector.broadcast %393 : vector<1x128xf32> to vector<2x128xf32>
    %396 = arith.mulf %394, %395 : vector<2x128xf32>
    %397 = arith.addf %386, %396 : vector<2x128xf32>
    %c64_i32_99 = arith.constant 64 : i32
    %398 = vector.broadcast %c64_i32_99 : i32 to vector<1x128xi32>
    %399 = arith.cmpi sge, %374, %398 : vector<1x128xi32>
    %c96_i32 = arith.constant 96 : i32
    %400 = vector.broadcast %c96_i32 : i32 to vector<1x128xi32>
    %401 = arith.cmpi slt, %374, %400 : vector<1x128xi32>
    %402 = arith.andi %399, %401 : vector<1x128xi1>
    %403 = arith.extui %402 : vector<1x128xi1> to vector<1x128xi32>
    %404 = arith.sitofp %403 : vector<1x128xi32> to vector<1x128xf32>
    %405 = vector.broadcast %372 : vector<2x1xf32> to vector<2x128xf32>
    %406 = vector.broadcast %404 : vector<1x128xf32> to vector<2x128xf32>
    %407 = arith.mulf %405, %406 : vector<2x128xf32>
    %408 = arith.addf %397, %407 : vector<2x128xf32>
    %c96_i32_100 = arith.constant 96 : i32
    %409 = vector.broadcast %c96_i32_100 : i32 to vector<1x128xi32>
    %410 = arith.cmpi sge, %374, %409 : vector<1x128xi32>
    %c128_i32 = arith.constant 128 : i32
    %411 = vector.broadcast %c128_i32 : i32 to vector<1x128xi32>
    %412 = arith.cmpi slt, %374, %411 : vector<1x128xi32>
    %413 = arith.andi %410, %412 : vector<1x128xi1>
    %414 = arith.extui %413 : vector<1x128xi1> to vector<1x128xi32>
    %415 = arith.sitofp %414 : vector<1x128xi32> to vector<1x128xf32>
    %416 = vector.broadcast %373 : vector<2x1xf32> to vector<2x128xf32>
    %417 = vector.broadcast %415 : vector<1x128xf32> to vector<2x128xf32>
    %418 = arith.mulf %416, %417 : vector<2x128xf32>
    %419 = arith.addf %408, %418 : vector<2x128xf32>
    %c0_101 = arith.constant 0 : index
    %c0_102 = arith.constant 0 : index
    %420 = vector.load %arg9[%c0_101, %c0_102] : memref<128x128xf32, #tpu.memory_space<vmem>>, vector<128x128xf32>
    %cst_103 = arith.constant dense<0.000000e+00> : vector<2x128xf32>
    %421 = tpu.matmul %1, %420, %cst_103 {dimension_numbers = #tpu.dot_dimension_numbers<[1], [0], [0], [1], [0, 0, 1, 1], [], []>} : vector<2x128xf32>, vector<128x128xf32>, vector<2x128xf32> -> vector<2x128xf32>
    %c0_104 = arith.constant 0 : index
    %c0_105 = arith.constant 0 : index
    %422 = vector.load %arg10[%c0_104, %c0_105] : memref<1x128xf32, #tpu.memory_space<vmem>>, vector<1x128xf32>
    %423 = vector.broadcast %422 : vector<1x128xf32> to vector<2x128xf32>
    %424 = arith.mulf %421, %423 : vector<2x128xf32>
    %c0_106 = arith.constant 0 : index
    %c0_107 = arith.constant 0 : index
    %425 = vector.load %arg11[%c0_106, %c0_107] : memref<1x128xf32, #tpu.memory_space<vmem>>, vector<1x128xf32>
    %426 = vector.broadcast %425 : vector<1x128xf32> to vector<2x128xf32>
    %427 = arith.addf %424, %426 : vector<2x128xf32>
    %cst_108 = arith.constant 1.000000e+00 : f32
    %428 = vector.broadcast %cst_108 : f32 to vector<2x128xf32>
    %429 = arith.subf %428, %419 : vector<2x128xf32>
    %430 = arith.mulf %429, %1 : vector<2x128xf32>
    %431 = arith.addf %353, %427 : vector<2x128xf32>
    %432 = math.tanh %431 : vector<2x128xf32>
    %433 = arith.mulf %419, %432 : vector<2x128xf32>
    %434 = arith.addf %430, %433 : vector<2x128xf32>
    %c0_109 = arith.constant 0 : index
    %c0_110 = arith.constant 0 : index
    %435 = vector.load %arg24[%c0_109, %c0_110] : memref<2x128xf32, #tpu.memory_space<vmem>>, vector<2x128xf32>
    tpu.vector_store %arg24[%c0_109, %c0_110], %434 {strides = array<i32>} : memref<2x128xf32, #tpu.memory_space<vmem>>, vector<2x128xf32>,
    %c0_111 = arith.constant 0 : index
    %c0_112 = arith.constant 0 : index
    %436 = vector.load %arg3[%c0_111, %c0_112] : memref<128x16xf32, #tpu.memory_space<vmem>>, vector<128x16xf32>
    %cst_113 = arith.constant dense<0.000000e+00> : vector<2x16xf32>
    %437 = tpu.matmul %434, %436, %cst_113 {dimension_numbers = #tpu.dot_dimension_numbers<[1], [0], [0], [1], [0, 0, 1, 1], [], []>} : vector<2x128xf32>, vector<128x16xf32>, vector<2x16xf32> -> vector<2x16xf32>
    %c0_114 = arith.constant 0 : index
    %c0_115 = arith.constant 0 : index
    %438 = vector.load %arg12[%c0_114, %c0_115] : memref<16x48xf32, #tpu.memory_space<vmem>>, vector<16x48xf32>
    %cst_116 = arith.constant dense<0.000000e+00> : vector<2x48xf32>
    %439 = tpu.matmul %437, %438, %cst_116 {dimension_numbers = #tpu.dot_dimension_numbers<[1], [0], [0], [1], [0, 0, 1, 1], [], []>} : vector<2x16xf32>, vector<16x48xf32>, vector<2x48xf32> -> vector<2x48xf32>
    %c0_117 = arith.constant 0 : index
    %c0_118 = arith.constant 0 : index
    %440 = vector.load %arg14[%c0_117, %c0_118] : memref<1x4xf32, #tpu.memory_space<vmem>>, vector<1x4xf32>
    %c0_119 = arith.constant 0 : index
    %c0_120 = arith.constant 0 : index
    %441 = vector.load %arg17[%c0_119, %c0_120] : memref<1x4xf32, #tpu.memory_space<vmem>>, vector<1x4xf32>
    %442 = vector.extract_strided_slice %439 {offsets = [0, 0], sizes = [2, 4], strides = [1, 1]} : vector<2x48xf32> to vector<2x4xf32>
    %443 = vector.extract_strided_slice %439 {offsets = [0, 16], sizes = [2, 4], strides = [1, 1]} : vector<2x48xf32> to vector<2x4xf32>
    %444 = arith.mulf %442, %443 : vector<2x4xf32>
    %cst_121 = arith.constant dense<0.000000e+00> : vector<2xf32>
    %445 = vector.multi_reduction <add>, %444, %cst_121 [1] : vector<2x4xf32> to vector<2xf32>
    %446 = vector.shape_cast %445 : vector<2xf32> to vector<2x1xf32>
    %cst_122 = arith.constant 5.000000e-01 : f32
    %447 = vector.broadcast %cst_122 : f32 to vector<2x1xf32>
    %448 = arith.mulf %446, %447 : vector<2x1xf32>
    %449 = vector.extract_strided_slice %439 {offsets = [0, 20], sizes = [2, 4], strides = [1, 1]} : vector<2x48xf32> to vector<2x4xf32>
    %450 = arith.mulf %442, %449 : vector<2x4xf32>
    %cst_123 = arith.constant dense<0.000000e+00> : vector<2xf32>
    %451 = vector.multi_reduction <add>, %450, %cst_123 [1] : vector<2x4xf32> to vector<2xf32>
    %452 = vector.shape_cast %451 : vector<2xf32> to vector<2x1xf32>
    %cst_124 = arith.constant 5.000000e-01 : f32
    %453 = vector.broadcast %cst_124 : f32 to vector<2x1xf32>
    %454 = arith.mulf %452, %453 : vector<2x1xf32>
    %455 = vector.extract_strided_slice %439 {offsets = [0, 24], sizes = [2, 4], strides = [1, 1]} : vector<2x48xf32> to vector<2x4xf32>
    %456 = arith.mulf %442, %455 : vector<2x4xf32>
    %cst_125 = arith.constant dense<0.000000e+00> : vector<2xf32>
    %457 = vector.multi_reduction <add>, %456, %cst_125 [1] : vector<2x4xf32> to vector<2xf32>
    %458 = vector.shape_cast %457 : vector<2xf32> to vector<2x1xf32>
    %cst_126 = arith.constant 5.000000e-01 : f32
    %459 = vector.broadcast %cst_126 : f32 to vector<2x1xf32>
    %460 = arith.mulf %458, %459 : vector<2x1xf32>
    %461 = vector.extract_strided_slice %439 {offsets = [0, 28], sizes = [2, 4], strides = [1, 1]} : vector<2x48xf32> to vector<2x4xf32>
    %462 = arith.mulf %442, %461 : vector<2x4xf32>
    %cst_127 = arith.constant dense<0.000000e+00> : vector<2xf32>
    %463 = vector.multi_reduction <add>, %462, %cst_127 [1] : vector<2x4xf32> to vector<2xf32>
    %464 = vector.shape_cast %463 : vector<2xf32> to vector<2x1xf32>
    %cst_128 = arith.constant 5.000000e-01 : f32
    %465 = vector.broadcast %cst_128 : f32 to vector<2x1xf32>
    %466 = arith.mulf %464, %465 : vector<2x1xf32>
    %467 = arith.maximumf %448, %454 : vector<2x1xf32>
    %468 = arith.maximumf %467, %460 : vector<2x1xf32>
    %469 = arith.maximumf %468, %466 : vector<2x1xf32>
    %470 = arith.subf %448, %469 : vector<2x1xf32>
    %471 = math.exp %470 : vector<2x1xf32>
    %472 = arith.subf %454, %469 : vector<2x1xf32>
    %473 = math.exp %472 : vector<2x1xf32>
    %474 = arith.subf %460, %469 : vector<2x1xf32>
    %475 = math.exp %474 : vector<2x1xf32>
    %476 = arith.subf %466, %469 : vector<2x1xf32>
    %477 = math.exp %476 : vector<2x1xf32>
    %478 = arith.addf %471, %473 : vector<2x1xf32>
    %479 = arith.addf %478, %475 : vector<2x1xf32>
    %480 = arith.addf %479, %477 : vector<2x1xf32>
    %cst_129 = arith.constant 1.000000e+00 : f32
    %481 = vector.broadcast %cst_129 : f32 to vector<2x1xf32>
    %482 = arith.divf %481, %480 : vector<2x1xf32>
    %483 = arith.mulf %471, %482 : vector<2x1xf32>
    %484 = arith.mulf %473, %482 : vector<2x1xf32>
    %485 = arith.mulf %475, %482 : vector<2x1xf32>
    %486 = arith.mulf %477, %482 : vector<2x1xf32>
    %487 = vector.extract_strided_slice %439 {offsets = [0, 32], sizes = [2, 4], strides = [1, 1]} : vector<2x48xf32> to vector<2x4xf32>
    %488 = vector.broadcast %483 : vector<2x1xf32> to vector<2x4xf32>
    %489 = arith.mulf %488, %487 : vector<2x4xf32>
    %490 = vector.extract_strided_slice %439 {offsets = [0, 36], sizes = [2, 4], strides = [1, 1]} : vector<2x48xf32> to vector<2x4xf32>
    %491 = vector.broadcast %484 : vector<2x1xf32> to vector<2x4xf32>
    %492 = arith.mulf %491, %490 : vector<2x4xf32>
    %493 = arith.addf %489, %492 : vector<2x4xf32>
    %494 = vector.extract_strided_slice %439 {offsets = [0, 40], sizes = [2, 4], strides = [1, 1]} : vector<2x48xf32> to vector<2x4xf32>
    %495 = vector.broadcast %485 : vector<2x1xf32> to vector<2x4xf32>
    %496 = arith.mulf %495, %494 : vector<2x4xf32>
    %497 = arith.addf %493, %496 : vector<2x4xf32>
    %498 = vector.extract_strided_slice %439 {offsets = [0, 44], sizes = [2, 4], strides = [1, 1]} : vector<2x48xf32> to vector<2x4xf32>
    %499 = vector.broadcast %486 : vector<2x1xf32> to vector<2x4xf32>
    %500 = arith.mulf %499, %498 : vector<2x4xf32>
    %501 = arith.addf %497, %500 : vector<2x4xf32>
    %502 = vector.extract_strided_slice %437 {offsets = [0, 0], sizes = [2, 4], strides = [1, 1]} : vector<2x16xf32> to vector<2x4xf32>
    %503 = arith.addf %501, %502 : vector<2x4xf32>
    %504 = arith.mulf %503, %503 : vector<2x4xf32>
    %cst_130 = arith.constant dense<0.000000e+00> : vector<2xf32>
    %505 = vector.multi_reduction <add>, %504, %cst_130 [1] : vector<2x4xf32> to vector<2xf32>
    %506 = vector.shape_cast %505 : vector<2xf32> to vector<2x1xf32>
    %cst_131 = arith.constant 4.000000e+00 : f32
    %507 = vector.broadcast %cst_131 : f32 to vector<2x1xf32>
    %508 = arith.divf %506, %507 : vector<2x1xf32>
    %cst_132 = arith.constant 9.99999993E-9 : f32
    %509 = vector.broadcast %cst_132 : f32 to vector<2x1xf32>
    %510 = arith.addf %508, %509 : vector<2x1xf32>
    %511 = math.rsqrt %510 : vector<2x1xf32>
    %512 = vector.broadcast %511 : vector<2x1xf32> to vector<2x4xf32>
    %513 = arith.mulf %503, %512 : vector<2x4xf32>
    %514 = vector.broadcast %440 : vector<1x4xf32> to vector<2x4xf32>
    %515 = arith.mulf %513, %514 : vector<2x4xf32>
    %c0_133 = arith.constant 0 : index
    %c0_134 = arith.constant 0 : index
    %c0_135 = arith.constant 0 : index
    %516 = vector.load %arg16[%c0_133, %c0_134, %c0_135] : memref<4x4x4xf32, #tpu.memory_space<vmem>>, vector<1x4x4xf32>
    %517 = vector.shape_cast %516 : vector<1x4x4xf32> to vector<4x4xf32>
    %cst_136 = arith.constant dense<0.000000e+00> : vector<2x4xf32>
    %518 = tpu.matmul %515, %517, %cst_136 {dimension_numbers = #tpu.dot_dimension_numbers<[1], [0], [0], [1], [0, 0, 1, 1], [], []>} : vector<2x4xf32>, vector<4x4xf32>, vector<2x4xf32> -> vector<2x4xf32>
    %519 = vector.broadcast %441 : vector<1x4xf32> to vector<2x4xf32>
    %520 = arith.addf %519, %518 : vector<2x4xf32>
    %521 = vector.extract_strided_slice %439 {offsets = [0, 4], sizes = [2, 4], strides = [1, 1]} : vector<2x48xf32> to vector<2x4xf32>
    %522 = vector.extract_strided_slice %439 {offsets = [0, 16], sizes = [2, 4], strides = [1, 1]} : vector<2x48xf32> to vector<2x4xf32>
    %523 = arith.mulf %521, %522 : vector<2x4xf32>
    %cst_137 = arith.constant dense<0.000000e+00> : vector<2xf32>
    %524 = vector.multi_reduction <add>, %523, %cst_137 [1] : vector<2x4xf32> to vector<2xf32>
    %525 = vector.shape_cast %524 : vector<2xf32> to vector<2x1xf32>
    %cst_138 = arith.constant 5.000000e-01 : f32
    %526 = vector.broadcast %cst_138 : f32 to vector<2x1xf32>
    %527 = arith.mulf %525, %526 : vector<2x1xf32>
    %528 = vector.extract_strided_slice %439 {offsets = [0, 20], sizes = [2, 4], strides = [1, 1]} : vector<2x48xf32> to vector<2x4xf32>
    %529 = arith.mulf %521, %528 : vector<2x4xf32>
    %cst_139 = arith.constant dense<0.000000e+00> : vector<2xf32>
    %530 = vector.multi_reduction <add>, %529, %cst_139 [1] : vector<2x4xf32> to vector<2xf32>
    %531 = vector.shape_cast %530 : vector<2xf32> to vector<2x1xf32>
    %cst_140 = arith.constant 5.000000e-01 : f32
    %532 = vector.broadcast %cst_140 : f32 to vector<2x1xf32>
    %533 = arith.mulf %531, %532 : vector<2x1xf32>
    %534 = vector.extract_strided_slice %439 {offsets = [0, 24], sizes = [2, 4], strides = [1, 1]} : vector<2x48xf32> to vector<2x4xf32>
    %535 = arith.mulf %521, %534 : vector<2x4xf32>
    %cst_141 = arith.constant dense<0.000000e+00> : vector<2xf32>
    %536 = vector.multi_reduction <add>, %535, %cst_141 [1] : vector<2x4xf32> to vector<2xf32>
    %537 = vector.shape_cast %536 : vector<2xf32> to vector<2x1xf32>
    %cst_142 = arith.constant 5.000000e-01 : f32
    %538 = vector.broadcast %cst_142 : f32 to vector<2x1xf32>
    %539 = arith.mulf %537, %538 : vector<2x1xf32>
    %540 = vector.extract_strided_slice %439 {offsets = [0, 28], sizes = [2, 4], strides = [1, 1]} : vector<2x48xf32> to vector<2x4xf32>
    %541 = arith.mulf %521, %540 : vector<2x4xf32>
    %cst_143 = arith.constant dense<0.000000e+00> : vector<2xf32>
    %542 = vector.multi_reduction <add>, %541, %cst_143 [1] : vector<2x4xf32> to vector<2xf32>
    %543 = vector.shape_cast %542 : vector<2xf32> to vector<2x1xf32>
    %cst_144 = arith.constant 5.000000e-01 : f32
    %544 = vector.broadcast %cst_144 : f32 to vector<2x1xf32>
    %545 = arith.mulf %543, %544 : vector<2x1xf32>
    %546 = arith.maximumf %527, %533 : vector<2x1xf32>
    %547 = arith.maximumf %546, %539 : vector<2x1xf32>
    %548 = arith.maximumf %547, %545 : vector<2x1xf32>
    %549 = arith.subf %527, %548 : vector<2x1xf32>
    %550 = math.exp %549 : vector<2x1xf32>
    %551 = arith.subf %533, %548 : vector<2x1xf32>
    %552 = math.exp %551 : vector<2x1xf32>
    %553 = arith.subf %539, %548 : vector<2x1xf32>
    %554 = math.exp %553 : vector<2x1xf32>
    %555 = arith.subf %545, %548 : vector<2x1xf32>
    %556 = math.exp %555 : vector<2x1xf32>
    %557 = arith.addf %550, %552 : vector<2x1xf32>
    %558 = arith.addf %557, %554 : vector<2x1xf32>
    %559 = arith.addf %558, %556 : vector<2x1xf32>
    %cst_145 = arith.constant 1.000000e+00 : f32
    %560 = vector.broadcast %cst_145 : f32 to vector<2x1xf32>
    %561 = arith.divf %560, %559 : vector<2x1xf32>
    %562 = arith.mulf %550, %561 : vector<2x1xf32>
    %563 = arith.mulf %552, %561 : vector<2x1xf32>
    %564 = arith.mulf %554, %561 : vector<2x1xf32>
    %565 = arith.mulf %556, %561 : vector<2x1xf32>
    %566 = vector.extract_strided_slice %439 {offsets = [0, 32], sizes = [2, 4], strides = [1, 1]} : vector<2x48xf32> to vector<2x4xf32>
    %567 = vector.broadcast %562 : vector<2x1xf32> to vector<2x4xf32>
    %568 = arith.mulf %567, %566 : vector<2x4xf32>
    %569 = vector.extract_strided_slice %439 {offsets = [0, 36], sizes = [2, 4], strides = [1, 1]} : vector<2x48xf32> to vector<2x4xf32>
    %570 = vector.broadcast %563 : vector<2x1xf32> to vector<2x4xf32>
    %571 = arith.mulf %570, %569 : vector<2x4xf32>
    %572 = arith.addf %568, %571 : vector<2x4xf32>
    %573 = vector.extract_strided_slice %439 {offsets = [0, 40], sizes = [2, 4], strides = [1, 1]} : vector<2x48xf32> to vector<2x4xf32>
    %574 = vector.broadcast %564 : vector<2x1xf32> to vector<2x4xf32>
    %575 = arith.mulf %574, %573 : vector<2x4xf32>
    %576 = arith.addf %572, %575 : vector<2x4xf32>
    %577 = vector.extract_strided_slice %439 {offsets = [0, 44], sizes = [2, 4], strides = [1, 1]} : vector<2x48xf32> to vector<2x4xf32>
    %578 = vector.broadcast %565 : vector<2x1xf32> to vector<2x4xf32>
    %579 = arith.mulf %578, %577 : vector<2x4xf32>
    %580 = arith.addf %576, %579 : vector<2x4xf32>
    %581 = vector.extract_strided_slice %437 {offsets = [0, 4], sizes = [2, 4], strides = [1, 1]} : vector<2x16xf32> to vector<2x4xf32>
    %582 = arith.addf %580, %581 : vector<2x4xf32>
    %583 = arith.mulf %582, %582 : vector<2x4xf32>
    %cst_146 = arith.constant dense<0.000000e+00> : vector<2xf32>
    %584 = vector.multi_reduction <add>, %583, %cst_146 [1] : vector<2x4xf32> to vector<2xf32>
    %585 = vector.shape_cast %584 : vector<2xf32> to vector<2x1xf32>
    %cst_147 = arith.constant 4.000000e+00 : f32
    %586 = vector.broadcast %cst_147 : f32 to vector<2x1xf32>
    %587 = arith.divf %585, %586 : vector<2x1xf32>
    %cst_148 = arith.constant 9.99999993E-9 : f32
    %588 = vector.broadcast %cst_148 : f32 to vector<2x1xf32>
    %589 = arith.addf %587, %588 : vector<2x1xf32>
    %590 = math.rsqrt %589 : vector<2x1xf32>
    %591 = vector.broadcast %590 : vector<2x1xf32> to vector<2x4xf32>
    %592 = arith.mulf %582, %591 : vector<2x4xf32>
    %593 = vector.broadcast %440 : vector<1x4xf32> to vector<2x4xf32>
    %594 = arith.mulf %592, %593 : vector<2x4xf32>
    %c1_149 = arith.constant 1 : index
    %c0_150 = arith.constant 0 : index
    %c0_151 = arith.constant 0 : index
    %595 = vector.load %arg16[%c1_149, %c0_150, %c0_151] : memref<4x4x4xf32, #tpu.memory_space<vmem>>, vector<1x4x4xf32>
    %596 = vector.shape_cast %595 : vector<1x4x4xf32> to vector<4x4xf32>
    %cst_152 = arith.constant dense<0.000000e+00> : vector<2x4xf32>
    %597 = tpu.matmul %594, %596, %cst_152 {dimension_numbers = #tpu.dot_dimension_numbers<[1], [0], [0], [1], [0, 0, 1, 1], [], []>} : vector<2x4xf32>, vector<4x4xf32>, vector<2x4xf32> -> vector<2x4xf32>
    %598 = arith.addf %520, %597 : vector<2x4xf32>
    %599 = vector.extract_strided_slice %439 {offsets = [0, 8], sizes = [2, 4], strides = [1, 1]} : vector<2x48xf32> to vector<2x4xf32>
    %600 = vector.extract_strided_slice %439 {offsets = [0, 16], sizes = [2, 4], strides = [1, 1]} : vector<2x48xf32> to vector<2x4xf32>
    %601 = arith.mulf %599, %600 : vector<2x4xf32>
    %cst_153 = arith.constant dense<0.000000e+00> : vector<2xf32>
    %602 = vector.multi_reduction <add>, %601, %cst_153 [1] : vector<2x4xf32> to vector<2xf32>
    %603 = vector.shape_cast %602 : vector<2xf32> to vector<2x1xf32>
    %cst_154 = arith.constant 5.000000e-01 : f32
    %604 = vector.broadcast %cst_154 : f32 to vector<2x1xf32>
    %605 = arith.mulf %603, %604 : vector<2x1xf32>
    %606 = vector.extract_strided_slice %439 {offsets = [0, 20], sizes = [2, 4], strides = [1, 1]} : vector<2x48xf32> to vector<2x4xf32>
    %607 = arith.mulf %599, %606 : vector<2x4xf32>
    %cst_155 = arith.constant dense<0.000000e+00> : vector<2xf32>
    %608 = vector.multi_reduction <add>, %607, %cst_155 [1] : vector<2x4xf32> to vector<2xf32>
    %609 = vector.shape_cast %608 : vector<2xf32> to vector<2x1xf32>
    %cst_156 = arith.constant 5.000000e-01 : f32
    %610 = vector.broadcast %cst_156 : f32 to vector<2x1xf32>
    %611 = arith.mulf %609, %610 : vector<2x1xf32>
    %612 = vector.extract_strided_slice %439 {offsets = [0, 24], sizes = [2, 4], strides = [1, 1]} : vector<2x48xf32> to vector<2x4xf32>
    %613 = arith.mulf %599, %612 : vector<2x4xf32>
    %cst_157 = arith.constant dense<0.000000e+00> : vector<2xf32>
    %614 = vector.multi_reduction <add>, %613, %cst_157 [1] : vector<2x4xf32> to vector<2xf32>
    %615 = vector.shape_cast %614 : vector<2xf32> to vector<2x1xf32>
    %cst_158 = arith.constant 5.000000e-01 : f32
    %616 = vector.broadcast %cst_158 : f32 to vector<2x1xf32>
    %617 = arith.mulf %615, %616 : vector<2x1xf32>
    %618 = vector.extract_strided_slice %439 {offsets = [0, 28], sizes = [2, 4], strides = [1, 1]} : vector<2x48xf32> to vector<2x4xf32>
    %619 = arith.mulf %599, %618 : vector<2x4xf32>
    %cst_159 = arith.constant dense<0.000000e+00> : vector<2xf32>
    %620 = vector.multi_reduction <add>, %619, %cst_159 [1] : vector<2x4xf32> to vector<2xf32>
    %621 = vector.shape_cast %620 : vector<2xf32> to vector<2x1xf32>
    %cst_160 = arith.constant 5.000000e-01 : f32
    %622 = vector.broadcast %cst_160 : f32 to vector<2x1xf32>
    %623 = arith.mulf %621, %622 : vector<2x1xf32>
    %624 = arith.maximumf %605, %611 : vector<2x1xf32>
    %625 = arith.maximumf %624, %617 : vector<2x1xf32>
    %626 = arith.maximumf %625, %623 : vector<2x1xf32>
    %627 = arith.subf %605, %626 : vector<2x1xf32>
    %628 = math.exp %627 : vector<2x1xf32>
    %629 = arith.subf %611, %626 : vector<2x1xf32>
    %630 = math.exp %629 : vector<2x1xf32>
    %631 = arith.subf %617, %626 : vector<2x1xf32>
    %632 = math.exp %631 : vector<2x1xf32>
    %633 = arith.subf %623, %626 : vector<2x1xf32>
    %634 = math.exp %633 : vector<2x1xf32>
    %635 = arith.addf %628, %630 : vector<2x1xf32>
    %636 = arith.addf %635, %632 : vector<2x1xf32>
    %637 = arith.addf %636, %634 : vector<2x1xf32>
    %cst_161 = arith.constant 1.000000e+00 : f32
    %638 = vector.broadcast %cst_161 : f32 to vector<2x1xf32>
    %639 = arith.divf %638, %637 : vector<2x1xf32>
    %640 = arith.mulf %628, %639 : vector<2x1xf32>
    %641 = arith.mulf %630, %639 : vector<2x1xf32>
    %642 = arith.mulf %632, %639 : vector<2x1xf32>
    %643 = arith.mulf %634, %639 : vector<2x1xf32>
    %644 = vector.extract_strided_slice %439 {offsets = [0, 32], sizes = [2, 4], strides = [1, 1]} : vector<2x48xf32> to vector<2x4xf32>
    %645 = vector.broadcast %640 : vector<2x1xf32> to vector<2x4xf32>
    %646 = arith.mulf %645, %644 : vector<2x4xf32>
    %647 = vector.extract_strided_slice %439 {offsets = [0, 36], sizes = [2, 4], strides = [1, 1]} : vector<2x48xf32> to vector<2x4xf32>
    %648 = vector.broadcast %641 : vector<2x1xf32> to vector<2x4xf32>
    %649 = arith.mulf %648, %647 : vector<2x4xf32>
    %650 = arith.addf %646, %649 : vector<2x4xf32>
    %651 = vector.extract_strided_slice %439 {offsets = [0, 40], sizes = [2, 4], strides = [1, 1]} : vector<2x48xf32> to vector<2x4xf32>
    %652 = vector.broadcast %642 : vector<2x1xf32> to vector<2x4xf32>
    %653 = arith.mulf %652, %651 : vector<2x4xf32>
    %654 = arith.addf %650, %653 : vector<2x4xf32>
    %655 = vector.extract_strided_slice %439 {offsets = [0, 44], sizes = [2, 4], strides = [1, 1]} : vector<2x48xf32> to vector<2x4xf32>
    %656 = vector.broadcast %643 : vector<2x1xf32> to vector<2x4xf32>
    %657 = arith.mulf %656, %655 : vector<2x4xf32>
    %658 = arith.addf %654, %657 : vector<2x4xf32>
    %659 = vector.extract_strided_slice %437 {offsets = [0, 8], sizes = [2, 4], strides = [1, 1]} : vector<2x16xf32> to vector<2x4xf32>
    %660 = arith.addf %658, %659 : vector<2x4xf32>
    %661 = arith.mulf %660, %660 : vector<2x4xf32>
    %cst_162 = arith.constant dense<0.000000e+00> : vector<2xf32>
    %662 = vector.multi_reduction <add>, %661, %cst_162 [1] : vector<2x4xf32> to vector<2xf32>
    %663 = vector.shape_cast %662 : vector<2xf32> to vector<2x1xf32>
    %cst_163 = arith.constant 4.000000e+00 : f32
    %664 = vector.broadcast %cst_163 : f32 to vector<2x1xf32>
    %665 = arith.divf %663, %664 : vector<2x1xf32>
    %cst_164 = arith.constant 9.99999993E-9 : f32
    %666 = vector.broadcast %cst_164 : f32 to vector<2x1xf32>
    %667 = arith.addf %665, %666 : vector<2x1xf32>
    %668 = math.rsqrt %667 : vector<2x1xf32>
    %669 = vector.broadcast %668 : vector<2x1xf32> to vector<2x4xf32>
    %670 = arith.mulf %660, %669 : vector<2x4xf32>
    %671 = vector.broadcast %440 : vector<1x4xf32> to vector<2x4xf32>
    %672 = arith.mulf %670, %671 : vector<2x4xf32>
    %c2_165 = arith.constant 2 : index
    %c0_166 = arith.constant 0 : index
    %c0_167 = arith.constant 0 : index
    %673 = vector.load %arg16[%c2_165, %c0_166, %c0_167] : memref<4x4x4xf32, #tpu.memory_space<vmem>>, vector<1x4x4xf32>
    %674 = vector.shape_cast %673 : vector<1x4x4xf32> to vector<4x4xf32>
    %cst_168 = arith.constant dense<0.000000e+00> : vector<2x4xf32>
    %675 = tpu.matmul %672, %674, %cst_168 {dimension_numbers = #tpu.dot_dimension_numbers<[1], [0], [0], [1], [0, 0, 1, 1], [], []>} : vector<2x4xf32>, vector<4x4xf32>, vector<2x4xf32> -> vector<2x4xf32>
    %676 = arith.addf %598, %675 : vector<2x4xf32>
    %677 = vector.extract_strided_slice %439 {offsets = [0, 12], sizes = [2, 4], strides = [1, 1]} : vector<2x48xf32> to vector<2x4xf32>
    %678 = vector.extract_strided_slice %439 {offsets = [0, 16], sizes = [2, 4], strides = [1, 1]} : vector<2x48xf32> to vector<2x4xf32>
    %679 = arith.mulf %677, %678 : vector<2x4xf32>
    %cst_169 = arith.constant dense<0.000000e+00> : vector<2xf32>
    %680 = vector.multi_reduction <add>, %679, %cst_169 [1] : vector<2x4xf32> to vector<2xf32>
    %681 = vector.shape_cast %680 : vector<2xf32> to vector<2x1xf32>
    %cst_170 = arith.constant 5.000000e-01 : f32
    %682 = vector.broadcast %cst_170 : f32 to vector<2x1xf32>
    %683 = arith.mulf %681, %682 : vector<2x1xf32>
    %684 = vector.extract_strided_slice %439 {offsets = [0, 20], sizes = [2, 4], strides = [1, 1]} : vector<2x48xf32> to vector<2x4xf32>
    %685 = arith.mulf %677, %684 : vector<2x4xf32>
    %cst_171 = arith.constant dense<0.000000e+00> : vector<2xf32>
    %686 = vector.multi_reduction <add>, %685, %cst_171 [1] : vector<2x4xf32> to vector<2xf32>
    %687 = vector.shape_cast %686 : vector<2xf32> to vector<2x1xf32>
    %cst_172 = arith.constant 5.000000e-01 : f32
    %688 = vector.broadcast %cst_172 : f32 to vector<2x1xf32>
    %689 = arith.mulf %687, %688 : vector<2x1xf32>
    %690 = vector.extract_strided_slice %439 {offsets = [0, 24], sizes = [2, 4], strides = [1, 1]} : vector<2x48xf32> to vector<2x4xf32>
    %691 = arith.mulf %677, %690 : vector<2x4xf32>
    %cst_173 = arith.constant dense<0.000000e+00> : vector<2xf32>
    %692 = vector.multi_reduction <add>, %691, %cst_173 [1] : vector<2x4xf32> to vector<2xf32>
    %693 = vector.shape_cast %692 : vector<2xf32> to vector<2x1xf32>
    %cst_174 = arith.constant 5.000000e-01 : f32
    %694 = vector.broadcast %cst_174 : f32 to vector<2x1xf32>
    %695 = arith.mulf %693, %694 : vector<2x1xf32>
    %696 = vector.extract_strided_slice %439 {offsets = [0, 28], sizes = [2, 4], strides = [1, 1]} : vector<2x48xf32> to vector<2x4xf32>
    %697 = arith.mulf %677, %696 : vector<2x4xf32>
    %cst_175 = arith.constant dense<0.000000e+00> : vector<2xf32>
    %698 = vector.multi_reduction <add>, %697, %cst_175 [1] : vector<2x4xf32> to vector<2xf32>
    %699 = vector.shape_cast %698 : vector<2xf32> to vector<2x1xf32>
    %cst_176 = arith.constant 5.000000e-01 : f32
    %700 = vector.broadcast %cst_176 : f32 to vector<2x1xf32>
    %701 = arith.mulf %699, %700 : vector<2x1xf32>
    %702 = arith.maximumf %683, %689 : vector<2x1xf32>
    %703 = arith.maximumf %702, %695 : vector<2x1xf32>
    %704 = arith.maximumf %703, %701 : vector<2x1xf32>
    %705 = arith.subf %683, %704 : vector<2x1xf32>
    %706 = math.exp %705 : vector<2x1xf32>
    %707 = arith.subf %689, %704 : vector<2x1xf32>
    %708 = math.exp %707 : vector<2x1xf32>
    %709 = arith.subf %695, %704 : vector<2x1xf32>
    %710 = math.exp %709 : vector<2x1xf32>
    %711 = arith.subf %701, %704 : vector<2x1xf32>
    %712 = math.exp %711 : vector<2x1xf32>
    %713 = arith.addf %706, %708 : vector<2x1xf32>
    %714 = arith.addf %713, %710 : vector<2x1xf32>
    %715 = arith.addf %714, %712 : vector<2x1xf32>
    %cst_177 = arith.constant 1.000000e+00 : f32
    %716 = vector.broadcast %cst_177 : f32 to vector<2x1xf32>
    %717 = arith.divf %716, %715 : vector<2x1xf32>
    %718 = arith.mulf %706, %717 : vector<2x1xf32>
    %719 = arith.mulf %708, %717 : vector<2x1xf32>
    %720 = arith.mulf %710, %717 : vector<2x1xf32>
    %721 = arith.mulf %712, %717 : vector<2x1xf32>
    %722 = vector.extract_strided_slice %439 {offsets = [0, 32], sizes = [2, 4], strides = [1, 1]} : vector<2x48xf32> to vector<2x4xf32>
    %723 = vector.broadcast %718 : vector<2x1xf32> to vector<2x4xf32>
    %724 = arith.mulf %723, %722 : vector<2x4xf32>
    %725 = vector.extract_strided_slice %439 {offsets = [0, 36], sizes = [2, 4], strides = [1, 1]} : vector<2x48xf32> to vector<2x4xf32>
    %726 = vector.broadcast %719 : vector<2x1xf32> to vector<2x4xf32>
    %727 = arith.mulf %726, %725 : vector<2x4xf32>
    %728 = arith.addf %724, %727 : vector<2x4xf32>
    %729 = vector.extract_strided_slice %439 {offsets = [0, 40], sizes = [2, 4], strides = [1, 1]} : vector<2x48xf32> to vector<2x4xf32>
    %730 = vector.broadcast %720 : vector<2x1xf32> to vector<2x4xf32>
    %731 = arith.mulf %730, %729 : vector<2x4xf32>
    %732 = arith.addf %728, %731 : vector<2x4xf32>
    %733 = vector.extract_strided_slice %439 {offsets = [0, 44], sizes = [2, 4], strides = [1, 1]} : vector<2x48xf32> to vector<2x4xf32>
    %734 = vector.broadcast %721 : vector<2x1xf32> to vector<2x4xf32>
    %735 = arith.mulf %734, %733 : vector<2x4xf32>
    %736 = arith.addf %732, %735 : vector<2x4xf32>
    %737 = vector.extract_strided_slice %437 {offsets = [0, 12], sizes = [2, 4], strides = [1, 1]} : vector<2x16xf32> to vector<2x4xf32>
    %738 = arith.addf %736, %737 : vector<2x4xf32>
    %739 = arith.mulf %738, %738 : vector<2x4xf32>
    %cst_178 = arith.constant dense<0.000000e+00> : vector<2xf32>
    %740 = vector.multi_reduction <add>, %739, %cst_178 [1] : vector<2x4xf32> to vector<2xf32>
    %741 = vector.shape_cast %740 : vector<2xf32> to vector<2x1xf32>
    %cst_179 = arith.constant 4.000000e+00 : f32
    %742 = vector.broadcast %cst_179 : f32 to vector<2x1xf32>
    %743 = arith.divf %741, %742 : vector<2x1xf32>
    %cst_180 = arith.constant 9.99999993E-9 : f32
    %744 = vector.broadcast %cst_180 : f32 to vector<2x1xf32>
    %745 = arith.addf %743, %744 : vector<2x1xf32>
    %746 = math.rsqrt %745 : vector<2x1xf32>
    %747 = vector.broadcast %746 : vector<2x1xf32> to vector<2x4xf32>
    %748 = arith.mulf %738, %747 : vector<2x4xf32>
    %749 = vector.broadcast %440 : vector<1x4xf32> to vector<2x4xf32>
    %750 = arith.mulf %748, %749 : vector<2x4xf32>
    %c3_181 = arith.constant 3 : index
    %c0_182 = arith.constant 0 : index
    %c0_183 = arith.constant 0 : index
    %751 = vector.load %arg16[%c3_181, %c0_182, %c0_183] : memref<4x4x4xf32, #tpu.memory_space<vmem>>, vector<1x4x4xf32>
    %752 = vector.shape_cast %751 : vector<1x4x4xf32> to vector<4x4xf32>
    %cst_184 = arith.constant dense<0.000000e+00> : vector<2x4xf32>
    %753 = tpu.matmul %750, %752, %cst_184 {dimension_numbers = #tpu.dot_dimension_numbers<[1], [0], [0], [1], [0, 0, 1, 1], [], []>} : vector<2x4xf32>, vector<4x4xf32>, vector<2x4xf32> -> vector<2x4xf32>
    %754 = arith.addf %676, %753 : vector<2x4xf32>
    %c0_185 = arith.constant 0 : index
    %c0_186 = arith.constant 0 : index
    %755 = vector.load %arg18[%c0_185, %c0_186] : memref<4x16xf32, #tpu.memory_space<vmem>>, vector<4x16xf32>
    %cst_187 = arith.constant dense<0.000000e+00> : vector<2x16xf32>
    %756 = tpu.matmul %754, %755, %cst_187 {dimension_numbers = #tpu.dot_dimension_numbers<[1], [0], [0], [1], [0, 0, 1, 1], [], []>} : vector<2x4xf32>, vector<4x16xf32>, vector<2x16xf32> -> vector<2x16xf32>
    %c0_188 = arith.constant 0 : index
    %c0_189 = arith.constant 0 : index
    %757 = vector.load %arg19[%c0_188, %c0_189] : memref<1x16xf32, #tpu.memory_space<vmem>>, vector<1x16xf32>
    %758 = vector.broadcast %757 : vector<1x16xf32> to vector<2x16xf32>
    %759 = arith.addf %756, %758 : vector<2x16xf32>
    %cst_190 = arith.constant 5.000000e-01 : f32
    %760 = vector.broadcast %cst_190 : f32 to vector<2x16xf32>
    %761 = arith.mulf %760, %759 : vector<2x16xf32>
    %cst_191 = arith.constant 0.707106769 : f32
    %762 = vector.broadcast %cst_191 : f32 to vector<2x16xf32>
    %763 = arith.mulf %759, %762 : vector<2x16xf32>
    %cst_192 = arith.constant 0.000000e+00 : f32
    %764 = vector.broadcast %cst_192 : f32 to vector<2x16xf32>
    %765 = arith.cmpf oge, %763, %764 : vector<2x16xf32>
    %cst_193 = arith.constant 1.000000e+00 : f32
    %cst_194 = arith.constant -1.000000e+00 : f32
    %766 = vector.broadcast %cst_193 : f32 to vector<2x16xf32>
    %767 = vector.broadcast %cst_194 : f32 to vector<2x16xf32>
    %768 = arith.select %765, %766, %767 : vector<2x16xi1>, vector<2x16xf32>
    %769 = math.absf %763 : vector<2x16xf32>
    %cst_195 = arith.constant 0.327591091 : f32
    %770 = vector.broadcast %cst_195 : f32 to vector<2x16xf32>
    %771 = arith.mulf %770, %769 : vector<2x16xf32>
    %cst_196 = arith.constant 1.000000e+00 : f32
    %772 = vector.broadcast %cst_196 : f32 to vector<2x16xf32>
    %773 = arith.addf %772, %771 : vector<2x16xf32>
    %cst_197 = arith.constant 1.000000e+00 : f32
    %774 = vector.broadcast %cst_197 : f32 to vector<2x16xf32>
    %775 = arith.divf %774, %773 : vector<2x16xf32>
    %cst_198 = arith.constant 1.06140542 : f32
    %776 = vector.broadcast %cst_198 : f32 to vector<2x16xf32>
    %777 = arith.mulf %776, %775 : vector<2x16xf32>
    %cst_199 = arith.constant -1.45315206 : f32
    %778 = vector.broadcast %cst_199 : f32 to vector<2x16xf32>
    %779 = arith.addf %777, %778 : vector<2x16xf32>
    %780 = arith.mulf %779, %775 : vector<2x16xf32>
    %cst_200 = arith.constant 1.42141378 : f32
    %781 = vector.broadcast %cst_200 : f32 to vector<2x16xf32>
    %782 = arith.addf %780, %781 : vector<2x16xf32>
    %783 = arith.mulf %782, %775 : vector<2x16xf32>
    %cst_201 = arith.constant -0.284496725 : f32
    %784 = vector.broadcast %cst_201 : f32 to vector<2x16xf32>
    %785 = arith.addf %783, %784 : vector<2x16xf32>
    %786 = arith.mulf %785, %775 : vector<2x16xf32>
    %cst_202 = arith.constant 0.254829586 : f32
    %787 = vector.broadcast %cst_202 : f32 to vector<2x16xf32>
    %788 = arith.addf %786, %787 : vector<2x16xf32>
    %789 = arith.mulf %788, %775 : vector<2x16xf32>
    %cst_203 = arith.constant 0.000000e+00 : f32
    %790 = vector.broadcast %cst_203 : f32 to vector<2x16xf32>
    %791 = arith.subf %790, %769 : vector<2x16xf32>
    %792 = arith.mulf %791, %769 : vector<2x16xf32>
    %793 = math.exp %792 : vector<2x16xf32>
    %794 = arith.mulf %789, %793 : vector<2x16xf32>
    %cst_204 = arith.constant 1.000000e+00 : f32
    %795 = vector.broadcast %cst_204 : f32 to vector<2x16xf32>
    %796 = arith.subf %795, %794 : vector<2x16xf32>
    %797 = arith.mulf %768, %796 : vector<2x16xf32>
    %cst_205 = arith.constant 1.000000e+00 : f32
    %798 = vector.broadcast %cst_205 : f32 to vector<2x16xf32>
    %799 = arith.addf %798, %797 : vector<2x16xf32>
    %800 = arith.mulf %761, %799 : vector<2x16xf32>
    %c0_206 = arith.constant 0 : index
    %c0_207 = arith.constant 0 : index
    %801 = vector.load %arg20[%c0_206, %c0_207] : memref<16x4xf32, #tpu.memory_space<vmem>>, vector<16x4xf32>
    %cst_208 = arith.constant dense<0.000000e+00> : vector<2x4xf32>
    %802 = tpu.matmul %800, %801, %cst_208 {dimension_numbers = #tpu.dot_dimension_numbers<[1], [0], [0], [1], [0, 0, 1, 1], [], []>} : vector<2x16xf32>, vector<16x4xf32>, vector<2x4xf32> -> vector<2x4xf32>
    %c0_209 = arith.constant 0 : index
    %c0_210 = arith.constant 0 : index
    %803 = vector.load %arg21[%c0_209, %c0_210] : memref<1x4xf32, #tpu.memory_space<vmem>>, vector<1x4xf32>
    %804 = vector.broadcast %803 : vector<1x4xf32> to vector<2x4xf32>
    %805 = arith.addf %802, %804 : vector<2x4xf32>
    %806 = arith.addf %805, %754 : vector<2x4xf32>
    %c0_211 = arith.constant 0 : index
    %c0_212 = arith.constant 0 : index
    %807 = vector.load %arg15[%c0_211, %c0_212] : memref<1x4xf32, #tpu.memory_space<vmem>>, vector<1x4xf32>
    %808 = arith.mulf %806, %806 : vector<2x4xf32>
    %cst_213 = arith.constant dense<0.000000e+00> : vector<2xf32>
    %809 = vector.multi_reduction <add>, %808, %cst_213 [1] : vector<2x4xf32> to vector<2xf32>
    %810 = vector.shape_cast %809 : vector<2xf32> to vector<2x1xf32>
    %cst_214 = arith.constant 4.000000e+00 : f32
    %811 = vector.broadcast %cst_214 : f32 to vector<2x1xf32>
    %812 = arith.divf %810, %811 : vector<2x1xf32>
    %cst_215 = arith.constant 9.99999993E-9 : f32
    %813 = vector.broadcast %cst_215 : f32 to vector<2x1xf32>
    %814 = arith.addf %812, %813 : vector<2x1xf32>
    %815 = math.rsqrt %814 : vector<2x1xf32>
    %816 = vector.broadcast %815 : vector<2x1xf32> to vector<2x4xf32>
    %817 = arith.mulf %806, %816 : vector<2x4xf32>
    %818 = vector.broadcast %807 : vector<1x4xf32> to vector<2x4xf32>
    %819 = arith.mulf %817, %818 : vector<2x4xf32>
    %c0_216 = arith.constant 0 : index
    %c0_217 = arith.constant 0 : index
    %820 = vector.load %arg23[%c0_216, %c0_217] : memref<2x4xf32, #tpu.memory_space<vmem>>, vector<2x4xf32>
    tpu.vector_store %arg23[%c0_216, %c0_217], %819 {strides = array<i32>} : memref<2x4xf32, #tpu.memory_space<vmem>>, vector<2x4xf32>,
    return
  }
  func.func @transform_0(%arg0: i32) -> (i32, i32) {
    %c0_i32 = arith.constant 0 : i32
    %c0_i32_0 = arith.constant 0 : i32
    return %arg0, %c0_i32 : i32, i32
  }
  func.func @transform_1(%arg0: i32) -> (i32, i32) {
    %c0_i32 = arith.constant 0 : i32
    %c0_i32_0 = arith.constant 0 : i32
    return %arg0, %c0_i32 : i32, i32
  }
  func.func @transform_2(%arg0: i32) -> (i32, i32) {
    %c0_i32 = arith.constant 0 : i32
    %c0_i32_0 = arith.constant 0 : i32
    %c0_i32_1 = arith.constant 0 : i32
    return %c0_i32, %c0_i32_0 : i32, i32
  }
  func.func @transform_3(%arg0: i32) -> (i32, i32) {
    %c0_i32 = arith.constant 0 : i32
    %c0_i32_0 = arith.constant 0 : i32
    %c0_i32_1 = arith.constant 0 : i32
    return %c0_i32, %c0_i32_0 : i32, i32
  }
  func.func @transform_4(%arg0: i32) -> (i32, i32) {
    %c0_i32 = arith.constant 0 : i32
    %c0_i32_0 = arith.constant 0 : i32
    %c0_i32_1 = arith.constant 0 : i32
    return %c0_i32, %c0_i32_0 : i32, i32
  }
  func.func @transform_5(%arg0: i32) -> (i32, i32) {
    %c0_i32 = arith.constant 0 : i32
    %c0_i32_0 = arith.constant 0 : i32
    %c0_i32_1 = arith.constant 0 : i32
    return %c0_i32, %c0_i32_0 : i32, i32
  }
  func.func @transform_6(%arg0: i32) -> (i32, i32, i32) {
    %c0_i32 = arith.constant 0 : i32
    %c0_i32_0 = arith.constant 0 : i32
    %c0_i32_1 = arith.constant 0 : i32
    %c0_i32_2 = arith.constant 0 : i32
    return %c0_i32, %c0_i32_0, %c0_i32_1 : i32, i32, i32
  }
  func.func @transform_7(%arg0: i32) -> (i32, i32, i32) {
    %c0_i32 = arith.constant 0 : i32
    %c0_i32_0 = arith.constant 0 : i32
    %c0_i32_1 = arith.constant 0 : i32
    %c0_i32_2 = arith.constant 0 : i32
    return %c0_i32, %c0_i32_0, %c0_i32_1 : i32, i32, i32
  }
  func.func @transform_8(%arg0: i32) -> (i32, i32) {
    %c0_i32 = arith.constant 0 : i32
    %c0_i32_0 = arith.constant 0 : i32
    %c0_i32_1 = arith.constant 0 : i32
    return %c0_i32, %c0_i32_0 : i32, i32
  }
  func.func @transform_9(%arg0: i32) -> (i32, i32) {
    %c0_i32 = arith.constant 0 : i32
    %c0_i32_0 = arith.constant 0 : i32
    %c0_i32_1 = arith.constant 0 : i32
    return %c0_i32, %c0_i32_0 : i32, i32
  }
  func.func @transform_10(%arg0: i32) -> (i32, i32) {
    %c0_i32 = arith.constant 0 : i32
    %c0_i32_0 = arith.constant 0 : i32
    %c0_i32_1 = arith.constant 0 : i32
    return %c0_i32, %c0_i32_0 : i32, i32
  }
  func.func @transform_11(%arg0: i32) -> (i32, i32) {
    %c0_i32 = arith.constant 0 : i32
    %c0_i32_0 = arith.constant 0 : i32
    %c0_i32_1 = arith.constant 0 : i32
    return %c0_i32, %c0_i32_0 : i32, i32
  }
  func.func @transform_12(%arg0: i32) -> (i32, i32) {
    %c0_i32 = arith.constant 0 : i32
    %c0_i32_0 = arith.constant 0 : i32
    %c0_i32_1 = arith.constant 0 : i32
    return %c0_i32, %c0_i32_0 : i32, i32
  }
  func.func @transform_13(%arg0: i32) -> (i32, i32) {
    %c0_i32 = arith.constant 0 : i32
    %c0_i32_0 = arith.constant 0 : i32
    %c0_i32_1 = arith.constant 0 : i32
    return %c0_i32, %c0_i32_0 : i32, i32
  }
  func.func @transform_14(%arg0: i32) -> (i32, i32) {
    %c0_i32 = arith.constant 0 : i32
    %c0_i32_0 = arith.constant 0 : i32
    %c0_i32_1 = arith.constant 0 : i32
    return %c0_i32, %c0_i32_0 : i32, i32
  }
  func.func @transform_15(%arg0: i32) -> (i32, i32, i32) {
    %c0_i32 = arith.constant 0 : i32
    %c0_i32_0 = arith.constant 0 : i32
    %c0_i32_1 = arith.constant 0 : i32
    %c0_i32_2 = arith.constant 0 : i32
    return %c0_i32, %c0_i32_0, %c0_i32_1 : i32, i32, i32
  }
  func.func @transform_16(%arg0: i32) -> (i32, i32) {
    %c0_i32 = arith.constant 0 : i32
    %c0_i32_0 = arith.constant 0 : i32
    %c0_i32_1 = arith.constant 0 : i32
    return %c0_i32, %c0_i32_0 : i32, i32
  }
  func.func @transform_17(%arg0: i32) -> (i32, i32) {
    %c0_i32 = arith.constant 0 : i32
    %c0_i32_0 = arith.constant 0 : i32
    %c0_i32_1 = arith.constant 0 : i32
    return %c0_i32, %c0_i32_0 : i32, i32
  }
  func.func @transform_18(%arg0: i32) -> (i32, i32) {
    %c0_i32 = arith.constant 0 : i32
    %c0_i32_0 = arith.constant 0 : i32
    %c0_i32_1 = arith.constant 0 : i32
    return %c0_i32, %c0_i32_0 : i32, i32
  }
  func.func @transform_19(%arg0: i32) -> (i32, i32) {
    %c0_i32 = arith.constant 0 : i32
    %c0_i32_0 = arith.constant 0 : i32
    %c0_i32_1 = arith.constant 0 : i32
    return %c0_i32, %c0_i32_0 : i32, i32
  }
  func.func @transform_20(%arg0: i32) -> (i32, i32) {
    %c0_i32 = arith.constant 0 : i32
    %c0_i32_0 = arith.constant 0 : i32
    %c0_i32_1 = arith.constant 0 : i32
    return %c0_i32, %c0_i32_0 : i32, i32
  }
  func.func @transform_21(%arg0: i32) -> i32 {
    %c0_i32 = arith.constant 0 : i32
    %c0_i32_0 = arith.constant 0 : i32
    return %c0_i32 : i32
  }
  func.func @transform_22(%arg0: i32) -> (i32, i32) {
    %c0_i32 = arith.constant 0 : i32
    %c0_i32_0 = arith.constant 0 : i32
    return %arg0, %c0_i32 : i32, i32
  }
  func.func @transform_23(%arg0: i32) -> (i32, i32) {
    %c0_i32 = arith.constant 0 : i32
    %c0_i32_0 = arith.constant 0 : i32
    return %arg0, %c0_i32 : i32, i32
  }
}

</mosaic_0001>

<bundles_post_ra>
// kernel: tpu_custom_call.1
= control target key start
LH: loop header
LB: loop body
LE: loop exit
PB: predicated region body
PF: predicated region fallthrough
CT: control target
= control target key end

     0   :  { %s4044_s0 = inlined_call_operand.hbm [shape: f32[2,4], index: 0, kind: input, shape index: {}]   ;;  %s4045_s1 = inlined_call_operand.hbm [shape: f32[2,128], index: 1, kind: input, shape index: {}]   ;;  %s4046_s2 = inlined_call_operand.vmem [shape: f32[128,16], index: 2, kind: input, shape index: {}]   ;;  %s4047_s3 = inlined_call_operand.hbm [shape: f32[4,16], index: 3, kind: input, shape index: {}]   ;;  %s4048_s4 = inlined_call_operand.vmem [shape: f32[16,64], index: 4, kind: input, shape index: {}]   ;;  %s4049_s5 = inlined_call_operand.vmem [shape: f32[16,64], index: 5, kind: input, shape index: {}]   ;;  %s4050_s6 = inlined_call_operand.hbm [shape: f32[4,1,4], index: 6, kind: input, shape index: {}]   ;;  %s4051_s7 = inlined_call_operand.vmem [shape: f32[4,4,128], index: 7, kind: input, shape index: {}]   ;;  %s4052_s8 = inlined_call_operand.vmem [shape: f32[128,128], index: 8, kind: input, shape index: {}]   ;;  %s4053_s9 = inlined_call_operand.hbm [shape: f32[1,128], index: 9, kind: input, shape index: {}]   ;;  %s4054_s10 = inlined_call_operand.hbm [shape: f32[1,128], index: 10, kind: input, shape index: {}]   ;;  %s4055_s11 = inlined_call_operand.hbm [shape: f32[16,48], index: 11, kind: input, shape index: {}]   ;;  %s4056_s12 = inlined_call_operand.vmem [shape: f32[1,4], index: 12, kind: input, shape index: {}]   ;;  %s4057_s13 = inlined_call_operand.vmem [shape: f32[1,4], index: 13, kind: input, shape index: {}]   ;;  %s4058_s14 = inlined_call_operand.vmem [shape: f32[1,4], index: 14, kind: input, shape index: {}]   ;;  %s4059_s15 = inlined_call_operand.hbm [shape: f32[4,4,4], index: 15, kind: input, shape index: {}]   ;;  %s4060_s16 = inlined_call_operand.vmem [shape: f32[1,4], index: 16, kind: input, shape index: {}]   ;;  %s4061_s17 = inlined_call_operand.vmem [shape: f32[4,16], index: 17, kind: input, shape index: {}]   ;;  %s4062_s18 = inlined_call_operand.vmem [shape: f32[1,16], index: 18, kind: input, shape index: {}]   ;;  %s4063_s19 = inlined_call_operand.vmem [shape: f32[16,4], index: 19, kind: input, shape index: {}]   ;;  %s4064_s20 = inlined_call_operand.vmem [shape: f32[1,4], index: 20, kind: input, shape index: {}]   ;;  %s4065_s21 = inlined_call_operand.<no memory space> [shape: f32[1], index: 21, kind: input, shape index: {}]   ;;  %s4066_s22 = inlined_call_operand.hbm [shape: f32[2,4], index: 22, kind: output, shape index: {0}]   ;;  %s4067_s23 = inlined_call_operand.hbm [shape: f32[2,128], index: 23, kind: output, shape index: {1}]  }
   0x1   :  { %4072 = sst [smem:[#allocation27_spill]] %s4044_s0 }
   0x2   :  { %4073 = sst [smem:[#allocation28_spill]] %s4045_s1 }
   0x3   :  { %4074 = sst [smem:[#allocation29_spill]] %s4046_s2 }
   0x4   :  { %4075 = sst [smem:[#allocation30_spill]] %s4047_s3 }
   0x5   :  { %4076 = sst [smem:[#allocation31_spill]] %s4048_s4 }
   0x6   :  { %4077 = sst [smem:[#allocation32_spill]] %s4049_s5 }
   0x7   :  { %4078 = sst [smem:[#allocation33_spill]] %s4050_s6 }
   0x8   :  { %4079 = sst [smem:[#allocation34_spill]] %s4051_s7 }
   0x9   :  { %30 = vsyncpa [#allocation4], 0 }
   0xa   :  { %31 = vsyncpa [#allocation7], 0 }
   0xb   :  { %32 = vsyncpa [#allocation10], 0 }
   0xc   :  { %33 = vsyncpa [#allocation13], 0 }
   0xd   :  { %34 = vsyncpa [#allocation16], 0 }
   0xe   :  { %35 = vsyncpa [#allocation5], 0 }
   0xf   :  { %36 = vsyncpa [#allocation19], 0  ;;  %s3254_s4 = smov [#allocation6]   ;;  %s3255_s24 = smov [#allocation9]  }
  0x10   :  { %s53_s30 = sshll.u32 %s3254_s4, 4  ;;  %s78_s25 = sshll.u32 %s3255_s24, 4  ;;  %s54_s30 = int_to_ptr.vmem [resolvable:$true] %s53_s30  ;;  %s79_s25 = int_to_ptr.vmem [resolvable:$true] %s78_s25 }
  0x11   :  { %s3048_s5 = scalar_lea.vmem %s54_s30, 32  ;;  %p3053_p1 = scmp.lt.s32.totalorder %s54_s30, %s54_s30 }
  0x12   :  { %p3049_p0 = scmp.ne.s32.totalorder %s54_s30, %s3048_s5  ;;  %p3054_p2 = scmp.lt.s32.totalorder %s3048_s5, %s3048_s5 }
  0x14   :  { %p3055_p3 = por %p3054_p2, %p3053_p1 }
  0x16   :  { %p3056_p4 = pnand %p3055_p3, %p3049_p0 }
  0x18   :  { %3059 = shalt.err (!%p3056_p4)
}
  0x19   :  { %s4080_s2 = sld [smem:[#allocation28_spill]]  ;;  %s3068_s6 = scalar_lea.vmem %s79_s25, 64 }
  0x1a   :  { %p3069_p5 = scmp.ne.s32.totalorder %s79_s25, %s3068_s6  ;;  %p3073_p6 = scmp.lt.s32.totalorder %s79_s25, %s79_s25 }
  0x1b   :  { %p3074_p7 = scmp.lt.s32.totalorder %s3068_s6, %s3068_s6 }
  0x1d   :  { %p3075_p8 = por %p3074_p7, %p3073_p6 }
  0x1f   :  { %56 = dma.hbm_to_vmem [thread:$0]  %s4080_s2, 32, %s54_s30, [#allocation7]  }
  0x20   :  { %p3076_p9 = pnand %p3075_p8, %p3069_p5 }
  0x22   :  { %3079 = shalt.err (!%p3076_p9)
}
  0x23   :  { %s3256_s27 = smov 16   ;;  %s3257_s7 = smov 1  }
  0x24   :  { %s4081_s3 = sld [smem:[#allocation33_spill]]  ;;  %s3258_s0 = smov [#allocation12]  }
  0x25   :  { %s105_s4 = sshll.u32 %s3258_s0, 4  ;;  %s3259_s24 = smov [#allocation3]   ;;  %s106_s4 = int_to_ptr.vmem [resolvable:$true] %s105_s4 }
  0x26   :  { %s43_s5 = sshll.u32 %s3259_s24, 4  ;;  %s3088_s30 = scalar_lea.vmem %s106_s4, 16  ;;  %s44_s5 = int_to_ptr.vmem [resolvable:$true] %s43_s5 }
  0x27   :  { %p3089_p10 = scmp.ne.s32.totalorder %s106_s4, %s3088_s30  ;;  %s3092_s1 = scalar_lea.vmem %s106_s4, 32 }
  0x28   :  { %p3093_p11 = scmp.lt.s32.totalorder %s106_s4, %s106_s4  ;;  %p3094_p12 = scmp.lt.s32.totalorder %s3092_s1, %s3088_s30 }
  0x2a   :  { %84 = dma.hbm_to_vmem [thread:$0]  %s4081_s3, 64, %s79_s25, [#allocation10], %s3256_s27, %s3256_s27, %s3257_s7  }
  0x2b   :  { %p3095_p13 = por %p3094_p12, %p3093_p11 }
  0x2d   :  { %p3096_p0 = pnand %p3095_p13, %p3089_p10 }
  0x2f   :  { %3099 = shalt.err (!%p3096_p0)
}
  0x30   :  { %108 = dma.hbm_to_vmem [thread:$0]  %s4054_s10, 16, %s106_s4, [#allocation13]  }
  0x31   :  { %s3108_s6 = scalar_lea.vmem %s44_s5, 32  ;;  %p3113_p2 = scmp.lt.s32.totalorder %s44_s5, %s44_s5 }
  0x32   :  { %p3109_p1 = scmp.ne.s32.totalorder %s44_s5, %s3108_s6  ;;  %p3114_p3 = scmp.lt.s32.totalorder %s3108_s6, %s3108_s6 }
  0x34   :  { %p3115_p4 = por %p3114_p3, %p3113_p2 }
  0x36   :  { %p3116_p5 = pnand %p3115_p4, %p3109_p1 }
  0x38   :  { %3119 = shalt.err (!%p3116_p5)
}
  0x39   :  { %s4082_s28 = sld [smem:[#allocation27_spill]]  ;;  %s3260_s29 = smov [#allocation8]  }
  0x3a   :  { %s65_s3 = sshll.u32 %s3260_s29, 4  ;;  %s3261_s0 = smov [#allocation11]   ;;  %s66_s3 = int_to_ptr.vmem [resolvable:$true] %s65_s3 }
  0x3b   :  { %s95_s24 = sshll.u32 %s3261_s0, 4  ;;  %s3128_s30 = scalar_lea.vmem %s66_s3, 64  ;;  %s96_s24 = int_to_ptr.vmem [resolvable:$true] %s95_s24 }
  0x3c   :  { %p3129_p6 = scmp.ne.s32.totalorder %s66_s3, %s3128_s30  ;;  %p3133_p7 = scmp.lt.s32.totalorder %s66_s3, %s66_s3 }
  0x3d   :  { %p3134_p8 = scmp.lt.s32.totalorder %s3128_s30, %s3128_s30 }
  0x3f   :  { %46 = dma.hbm_to_vmem [thread:$0]  %s4082_s28, 32, %s44_s5, [#allocation4]  }
  0x40   :  { %p3135_p9 = por %p3134_p8, %p3133_p7 }
  0x42   :  { %p3136_p10 = pnand %p3135_p9, %p3129_p6 }
  0x44   :  { %3139 = shalt.err (!%p3136_p10)
}
  0x45   :  { %s4083_s1 = sld [smem:[#allocation30_spill]]  ;;  %s3148_s26 = scalar_lea.vmem %s96_s24, 16 }
  0x46   :  { %p3149_p11 = scmp.ne.s32.totalorder %s96_s24, %s3148_s26  ;;  %s3152_s5 = scalar_lea.vmem %s96_s24, 32 }
  0x47   :  { %p3153_p12 = scmp.lt.s32.totalorder %s96_s24, %s96_s24  ;;  %p3154_p13 = scmp.lt.s32.totalorder %s3152_s5, %s3148_s26 }
  0x49   :  { %p3155_p0 = por %p3154_p13, %p3153_p12 }
  0x4b   :  { %68 = dma.hbm_to_vmem [thread:$0]  %s4083_s1, 64, %s66_s3, [#allocation7]  }
  0x4c   :  { %p3156_p1 = pnand %p3155_p0, %p3149_p11 }
  0x4e   :  { %3159 = shalt.err (!%p3156_p1)
}
  0x4f   :  { %98 = dma.hbm_to_vmem [thread:$0]  %s4053_s9, 16, %s96_s24, [#allocation10]  }
  0x50   :  { %s3262_s25 = smov [#allocation14]  }
  0x51   :  { %s114_s7 = sshll.u32 %s3262_s25, 4  ;;  %s115_s7 = int_to_ptr.vmem [resolvable:$true] %s114_s7 }
  0x52   :  { %s3168_s28 = scalar_lea.vmem %s115_s7, 256  ;;  %p3173_p3 = scmp.lt.s32.totalorder %s115_s7, %s115_s7 }
  0x53   :  { %p3169_p2 = scmp.ne.s32.totalorder %s115_s7, %s3168_s28  ;;  %p3174_p4 = scmp.lt.s32.totalorder %s3168_s28, %s3168_s28 }
  0x55   :  { %p3175_p5 = por %p3174_p4, %p3173_p3 }
  0x57   :  { %p3176_p6 = pnand %p3175_p5, %p3169_p2 }
  0x59   :  { %3179 = shalt.err (!%p3176_p6)
}
  0x5a   :  { %s3263_s29 = smov 128   ;;  %s3264_s3 = smov 8  }
  0x5b   :  { %120 = dma.hbm_to_vmem [thread:$0]  %s4055_s11, 256, %s115_s7, [#allocation13], %s3263_s29, %s3263_s29, %s3264_s3  }
  0x5c   :  { %s3265_s10 = smov [#allocation15]  }
  0x5d   :  { %s132_s4 = sshll.u32 %s3265_s10, 4  ;;  %s133_s4 = int_to_ptr.vmem [resolvable:$true] %s132_s4 }
  0x5e   :  { %s3188_s9 = scalar_lea.vmem %s133_s4, 256  ;;  %p3193_p8 = scmp.lt.s32.totalorder %s133_s4, %s133_s4 }
  0x5f   :  { %p3189_p7 = scmp.ne.s32.totalorder %s133_s4, %s3188_s9  ;;  %p3194_p9 = scmp.lt.s32.totalorder %s3188_s9, %s3188_s9 }
  0x61   :  { %p3195_p10 = por %p3194_p9, %p3193_p8 }
  0x63   :  { %p3196_p11 = pnand %p3195_p10, %p3189_p7 }
  0x65   :  { %3199 = shalt.err (!%p3196_p11)
}
  0x66   :  { %s3266_s24 = smov 64   ;;  %s3267_s1 = smov 4  }
  0x67   :  { %138 = dma.hbm_to_vmem [thread:$0]  %s4059_s15, 256, %s133_s4, [#allocation16], %s3266_s24, %s3266_s24, %s3267_s1  }
  0x68   :  { %3240 = dma.done.wait [#allocation4], 32  }
  0x69   :  { %3241 = vsyncadd [#allocation4], 4294967264 }
  0x6a   :  { %3242 = dma.done.wait [#allocation7], 96  }
  0x6b   :  { %3243 = vsyncadd [#allocation7], 4294967200 }
  0x6c   :  { %3244 = dma.done.wait [#allocation10], 80  }
  0x6d   :  { %3245 = vsyncadd [#allocation10], 4294967216 }
  0x6e   :  { %3246 = dma.done.wait [#allocation13], 272  }
  0x6f   :  { %3247 = vsyncadd [#allocation13], 4294967024 }
  0x70   :  { %3248 = dma.done.wait [#allocation16], 256  }
  0x71   :  { %3249 = vsyncadd [#allocation16], 4294967040  ;;  %v3268_v0 = vmov 0.0   ;;  %vm3269_vm0 = vmmov 0   ;;  %s4084_s2 = sld [smem:[#allocation29_spill]]  ;;  %vm268_vm1 = vcmask 1043456  }
  0x72   :  { %2702 = vmatprep.subr.mxu0 %v3268_v0  ;;  %2734 = vmatprep.mubr.msk.f32.mxu0 %vm3269_vm0, %v3268_v0  ;;  %vm264_vm2 = vcmask 31744   ;;  %v263_v5 = vld [vmem:[#allocation8] sm:$0xf]  ;;  %v3461_v7 = vld [vmem:[#allocation3] sm:$0x3]  ;;  %s4085_s9 = sld [smem:[#allocation31_spill]] }
  0x73   :  { %2737 = vmatprep.subr.mxu1 %v3268_v0  ;;  %2739 = vmatprep.mubr.msk.f32.mxu1 %vm3269_vm0, %v3268_v0  ;;  %v3520_v21 = vld [vmem:[#allocation6] sm:$0x3]  ;;  %vm344_vm3 = vcmask 130048   ;;  %s4086_s28 = sld [smem:[#allocation32_spill]]  ;;  %s3270_s0 = smov 108   ;;  %vm496_vm4 = vcmask 25600  }
  0x74   :  { %2738 = vmatpush3.msk.msra.mxu1 %vm268_vm1, %v263_v5  ;;  %s3271_s30 = smov 116   ;;  %s3272_s10 = smov 104  }
  0x75   :  { %2740 = vmatmul.mubr.msk.f32.vlgmr.msra.gmra.mxu1 %vm264_vm2, %v3461_v7  ;;  %2742 = vmatprep.subr.mxu1 %v3268_v0  ;;  %s3273_s4 = smov 112   ;;  %s3275_s24 = smov 100  }
  0x76   :  { %2746 = vmatprep.mubr.msk.f32.mxu1 %vm3269_vm0, %v3268_v0  ;;  %s3276_s1 = smov 88   ;;  %s3277_s26 = smov 92  }
  0x77   :  { %v192_v1 = vld [vmem:[%s4084_s2 + $0x78] sm:$0xff]  ;;  %v191_v2 = vld [vmem:[%s4084_s2 + $0x70] sm:$0xff]  ;;  %v190_v3 = vld [vmem:[%s4084_s2 + $0x68] sm:$0xff]  ;;  %s3278_s5 = smov 80   ;;  %s3279_s11 = smov 84  }
  0x78   :  { %2703 = vmatpush3.msra.mxu0 %v192_v1  ;;  %v189_v4 = vld [vmem:[%s4084_s2 + $0x60] sm:$0xff]  ;;  %v188_v6 = vld [vmem:[%s4084_s2 + $0x58] sm:$0xff]  ;;  %v343_v8 = vld [vmem:[%s4085_s9 + $0x8] sm:$0xff]  ;;  %s3280_s15 = smov 124   ;;  %s3281_s6 = smov 120  }
  0x79   :  { %2704 = vmatprep.subr.mxu0 %v3268_v0  ;;  %v187_v9 = vld [vmem:[%s4084_s2 + $0x50] sm:$0xff]  ;;  %v342_v10 = vld [vmem:[%s4085_s9] sm:$0xff]  ;;  %2743 = vmatpush3.msra.mxu1 %v343_v8  ;;  %v186_v11 = vld [vmem:[%s4084_s2 + $0x48] sm:$0xff]  ;;  %s3274_s9 = smov 96   ;;  %s3282_s25 = smov 32  }
  0x7a   :  { %2705 = vmatpush3.msra.mxu0 %v191_v2  ;;  %2744 = vmatprep.subr.mxu1 %v3268_v0  ;;  %v185_v12 = vld [vmem:[%s4084_s2 + $0x40] sm:$0xff]  ;;  %v184_v13 = vld [vmem:[%s4084_s2 + $0x38] sm:$0xff]  ;;  %v183_v14 = vld [vmem:[%s4084_s2 + $0x30] sm:$0xff]  ;;  %s3283_s7 = smov 48   ;;  %s3288_s3 = smov [#allocation18]  }
  0x7b   :  { %2706 = vmatprep.subr.mxu0 %v3268_v0  ;;  %2745 = vmatpush3.msra.mxu1 %v342_v10  ;;  %v182_v15 = vld [vmem:[%s4084_s2 + $0x28] sm:$0xff]  ;;  %v181_v16 = vld [vmem:[%s4084_s2 + $0x20] sm:$0xff]  ;;  %v180_v17 = vld [vmem:[%s4084_s2 + $0x18] sm:$0xff] }
  0x7c   :  { %2707 = vmatpush3.msra.mxu0 %v190_v3  ;;  %2749 = vmatprep.subr.mxu1 %v3268_v0  ;;  %v179_v18 = vld [vmem:[%s4084_s2 + $0x10] sm:$0xff]  ;;  %v178_v19 = vld [vmem:[%s4084_s2 + $0x8] sm:$0xff]  ;;  %v177_v20 = vld [vmem:[%s4084_s2] sm:$0xff] }
  0x7d   :  { %2708 = vmatprep.subr.mxu0 %v3268_v0  ;;  %v419_v24 = vld [vmem:[%s4086_s28 + $0x8] sm:$0xff]  ;;  %v418_v26 = vld [vmem:[%s4086_s28] sm:$0xff] }
  0x7e   :  { %2709 = vmatpush3.msra.mxu0 %v189_v4 }
  0x7f   :  { %2710 = vmatprep.subr.mxu0 %v3268_v0 }
  0x80   :  { %2711 = vmatpush3.msra.mxu0 %v188_v6 }
  0x81   :  { %2712 = vmatprep.subr.mxu0 %v3268_v0 }
  0x82   :  { %2713 = vmatpush3.msra.mxu0 %v187_v9 }
  0x83   :  { %2714 = vmatprep.subr.mxu0 %v3268_v0 }
  0x84   :  { %2715 = vmatpush3.msra.mxu0 %v186_v11 }
  0x85   :  { %2716 = vmatprep.subr.mxu0 %v3268_v0 }
  0x86   :  { %2717 = vmatpush3.msra.mxu0 %v185_v12 }
  0x87   :  { %2718 = vmatprep.subr.mxu0 %v3268_v0 }
  0x88   :  { %2719 = vmatpush3.msra.mxu0 %v184_v13 }
  0x89   :  { %2720 = vmatprep.subr.mxu0 %v3268_v0 }
  0x8a   :  { %2721 = vmatpush3.msra.mxu0 %v183_v14 }
  0x8b   :  { %2722 = vmatprep.subr.mxu0 %v3268_v0 }
  0x8c   :  { %2723 = vmatpush3.msra.mxu0 %v182_v15 }
  0x8d   :  { %2724 = vmatprep.subr.mxu0 %v3268_v0 }
  0x8e   :  { %2725 = vmatpush3.msra.mxu0 %v181_v16 }
  0x8f   :  { %2726 = vmatprep.subr.mxu0 %v3268_v0 }
  0x90   :  { %2727 = vmatpush3.msra.mxu0 %v180_v17 }
  0x91   :  { %2728 = vmatprep.subr.mxu0 %v3268_v0 }
  0x92   :  { %2729 = vmatpush3.msra.mxu0 %v179_v18 }
  0x93   :  { %2730 = vmatprep.subr.mxu0 %v3268_v0 }
  0x94   :  { %2731 = vmatpush3.msra.mxu0 %v178_v19 }
  0x95   :  { %2732 = vmatprep.subr.mxu0 %v3268_v0 }
  0x96   :  { %2733 = vmatpush3.msra.mxu0 %v177_v20 }
  0x97   :  { %2735 = vmatmul.mubr.f32.vlgmr.msra.gmra.mxu0 %v3520_v21  ;;  %2811 = vmatprep.subr.mxu0 %v3268_v0 }
  0x98   :  { %2843 = vmatprep.mubr.msk.f32.mxu0 %vm3269_vm0, %v3268_v0 }
 0x135   :  { %v3527_v22 = vpop.f32.mrf.mxu1 }
 0x137   :  { %v2741_v23 = vpop.f32.mrf.mxu1 }
 0x157   :  { %v259_v25 = vpop.f32.mrf.mxu0 }
 0x158   :  { %2747 = vmatmul.mubr.msk.f32.vlgmr.msra.gmra.mxu1 %vm344_vm3, %v259_v25 }
 0x159   :  { %v2736_v27 = vpop.f32.mrf.mxu0  ;;  %2750 = vmatpush3.msra.mxu1 %v419_v24  ;;  %2753 = vmatprep.mubr.msk.f32.mxu1 %vm3269_vm0, %v3268_v0 }
 0x15a   :  { %2751 = vmatprep.subr.mxu1 %v3268_v0 }
 0x15b   :  { %2752 = vmatpush3.msra.mxu1 %v418_v26 }
 0x15c   :  { %2754 = vmatmul.mubr.msk.f32.vlgmr.msra.gmra.mxu1 %vm344_vm3, %v259_v25  ;;  %2756 = vmatprep.subr.mxu1 %v3268_v0 }
 0x15d   :  { %2758 = vmatprep.mubr.msk.f32.mxu1 %vm3269_vm0, %v3268_v0 }
 0x218   :  { %v3543_v28 = vpop.f32.mrf.mxu1 }
 0x219   :  { %620 = vrot.lane.b32.xlu1 %v3543_v28, %s3270_s0  ;;  %518 = vrot.lane.b32.xlu0 %v3543_v28, %s3271_s30  ;;  %v495_v14 = vmul.f32 %v3543_v28, %v3527_v22 }
 0x21a   :  { %v2748_v29 = vpop.f32.mrf.mxu1 }
 0x21b   :  { %v497_v15 = vsel %vm496_vm4, %v495_v14, 0.0 }
 0x21c   :  { %v3549_v30 = vpop.f32.mrf.mxu1 }
 0x21d   :  { %632 = vrot.lane.b32.xlu1 %v3543_v28, %s3272_s10  ;;  %608 = vrot.lane.b32.xlu0 %v3543_v28, %s3273_s4 }
 0x21e   :  { %v2755_v31 = vpop.f32.mrf.mxu1 }
 0x221   :  { %901 = vrot.lane.b32.xlu1 %v3543_v28, %s3274_s9  ;;  %889 = vrot.lane.b32.xlu0 %v3543_v28, %s3275_s24 }
 0x225   :  { %1095 = vrot.lane.b32.xlu1 %v3543_v28, %s3276_s1  ;;  %913 = vrot.lane.b32.xlu0 %v3543_v28, %s3277_s26  ;;  %s4087_s1 = sld [smem:[#allocation34_spill]] }
 0x229   :  { %1119 = vrot.lane.b32.xlu1 %v3543_v28, %s3278_s5  ;;  %1107 = vrot.lane.b32.xlu0 %v3543_v28, %s3279_s11 }
 0x28b   :  { %v621_v32 = vpop.permute.xlu1 %620  ;;  %v519_v33 = vpop.permute.xlu0 %518 }
 0x28c   :  { %v3565_v34 = vmul.f32 %v519_v33, %v3527_v22  ;;  %v623_v37 = vmul.f32 %v621_v32, %v3527_v22 }
 0x28e   :  { %601 = vrot.lane.b32.xlu0 %v3565_v34, %s3280_s15 }
 0x28f   :  { %v633_v35 = vpop.permute.xlu1 %632  ;;  %v609_v36 = vpop.permute.xlu0 %608 }
 0x290   :  { %v611_v38 = vmul.f32 %v609_v36, %v3527_v22  ;;  %v635_v40 = vmul.f32 %v633_v35, %v3527_v22 }
 0x292   :  { %625 = vrot.lane.b32.xlu0 %v623_v37, %s3280_s15  ;;  %613 = vrot.lane.b32.xlu1 %v611_v38, %s3280_s15 }
 0x293   :  { %v890_v39 = vpop.permute.xlu0 %889  ;;  %v902_v41 = vpop.permute.xlu1 %901 }
 0x294   :  { %v904_v43 = vmul.f32 %v902_v41, %v3527_v22  ;;  %v892_v44 = vmul.f32 %v890_v39, %v3527_v22 }
 0x296   :  { %882 = vrot.lane.b32.xlu0 %v635_v40, %s3281_s6  ;;  %637 = vrot.lane.b32.xlu1 %v635_v40, %s3280_s15 }
 0x297   :  { %v914_v42 = vpop.permute.xlu0 %913  ;;  %v1096_v45 = vpop.permute.xlu1 %1095 }
 0x298   :  { %v916_v46 = vmul.f32 %v914_v42, %v3527_v22  ;;  %v1098_v48 = vmul.f32 %v1096_v45, %v3527_v22 }
 0x29a   :  { %906 = vrot.lane.b32.xlu0 %v904_v43, %s3281_s6  ;;  %894 = vrot.lane.b32.xlu1 %v892_v44, %s3281_s6 }
 0x29b   :  { %v1108_v47 = vpop.permute.xlu0 %1107  ;;  %v1120_v50 = vpop.permute.xlu1 %1119 }
 0x29c   :  { %v1110_v49 = vmul.f32 %v1108_v47, %v3527_v22  ;;  %v1122_v51 = vmul.f32 %v1120_v50, %v3527_v22 }
 0x29e   :  { %1088 = vrot.lane.b32.xlu0 %v916_v46, %s3271_s30  ;;  %918 = vrot.lane.b32.xlu1 %v916_v46, %s3281_s6 }
 0x2a2   :  { %1100 = vrot.lane.b32.xlu1 %v1098_v48, %s3271_s30  ;;  %1112 = vrot.lane.b32.xlu0 %v1110_v49, %s3271_s30 }
 0x2a6   :  { %1124 = vrot.lane.b32.xlu1 %v1122_v51, %s3271_s30 }
 0x300   :  { %v602_v52 = vpop.permute.xlu0 %601 }
 0x301   :  { %v604_v53 = vsel %vm496_vm4, %v602_v52, 0.0 }
 0x302   :  { %605 = vadd.xlane.f32.xlu0 %v604_v53 }
 0x304   :  { %v614_v54 = vpop.permute.xlu1 %613  ;;  %v626_v55 = vpop.permute.xlu0 %625 }
 0x305   :  { %v616_v56 = vsel %vm496_vm4, %v614_v54, 0.0  ;;  %v628_v57 = vsel %vm496_vm4, %v626_v55, 0.0 }
 0x306   :  { %617 = vadd.xlane.f32.xlu1 %v616_v56  ;;  %629 = vadd.xlane.f32.xlu0 %v628_v57 }
 0x308   :  { %v638_v58 = vpop.permute.xlu1 %637  ;;  %v883_v59 = vpop.permute.xlu0 %882 }
 0x309   :  { %v640_v60 = vsel %vm496_vm4, %v638_v58, 0.0  ;;  %v885_v61 = vsel %vm496_vm4, %v883_v59, 0.0 }
 0x30a   :  { %641 = vadd.xlane.f32.xlu0 %v640_v60  ;;  %886 = vadd.xlane.f32.xlu1 %v885_v61 }
 0x30c   :  { %v895_v62 = vpop.permute.xlu1 %894  ;;  %v907_v63 = vpop.permute.xlu0 %906 }
 0x30d   :  { %v897_v1 = vsel %vm496_vm4, %v895_v62, 0.0  ;;  %v909_v2 = vsel %vm496_vm4, %v907_v63, 0.0 }
 0x30e   :  { %898 = vadd.xlane.f32.xlu0 %v897_v1  ;;  %910 = vadd.xlane.f32.xlu1 %v909_v2 }
 0x310   :  { %v919_v3 = vpop.permute.xlu1 %918  ;;  %v1089_v4 = vpop.permute.xlu0 %1088 }
 0x311   :  { %v921_v5 = vsel %vm496_vm4, %v919_v3, 0.0  ;;  %v1091_v6 = vsel %vm496_vm4, %v1089_v4, 0.0 }
 0x312   :  { %922 = vadd.xlane.f32.xlu0 %v921_v5  ;;  %1092 = vadd.xlane.f32.xlu1 %v1091_v6 }
 0x314   :  { %v1101_v8 = vpop.permute.xlu1 %1100  ;;  %v1113_v9 = vpop.permute.xlu0 %1112 }
 0x315   :  { %v1103_v10 = vsel %vm496_vm4, %v1101_v8, 0.0  ;;  %v1115_v11 = vsel %vm496_vm4, %v1113_v9, 0.0 }
 0x316   :  { %1104 = vadd.xlane.f32.xlu0 %v1103_v10  ;;  %1116 = vadd.xlane.f32.xlu1 %v1115_v11 }
 0x318   :  { %v1125_v12 = vpop.permute.xlu1 %1124 }
 0x319   :  { %v1127_v13 = vsel %vm496_vm4, %v1125_v12, 0.0 }
 0x31a   :  { %1128 = vadd.xlane.f32.xlu0 %v1127_v13 }
 0x327   :  { %502 = vrot.lane.b32.xlu1 %v3543_v28, %s3280_s15 }
 0x330   :  { %510 = vrot.lane.b32.xlu0 %v3543_v28, %s3281_s6 }
 0x34b   :  { %498 = vadd.xlane.f32.xlu1 %v497_v15 }
 0x38b   :  { %v606_v16 = vpop.xlane.xlu0 %605 }
 0x38c   :  { %v607_v19 = vmul.f32 0.5, %v606_v16 }
 0x38f   :  { %v618_v17 = vpop.xlane.xlu1 %617  ;;  %v630_v18 = vpop.xlane.xlu0 %629 }
 0x390   :  { %v619_v20 = vmul.f32 0.5, %v618_v17  ;;  %v631_v24 = vmul.f32 0.5, %v630_v18 }
 0x392   :  { %v644_v23 = vmax.f32 %v607_v19, %v619_v20 }
 0x393   :  { %v887_v25 = vpop.xlane.xlu1 %886  ;;  %v642_v26 = vpop.xlane.xlu0 %641 }
 0x394   :  { %v645_v27 = vmax.f32 %v644_v23, %v631_v24  ;;  %v643_v29 = vmul.f32 0.5, %v642_v26  ;;  %v888_v37 = vmul.f32 0.5, %v887_v25 }
 0x396   :  { %v646_v31 = vmax.f32 %v645_v27, %v643_v29 }
 0x397   :  { %v911_v32 = vpop.xlane.xlu1 %910  ;;  %v899_v33 = vpop.xlane.xlu0 %898 }
 0x398   :  { %v647_v35 = vsub.f32 %v607_v19, %v646_v31  ;;  %v650_v36 = vsub.f32 %v619_v20, %v646_v31  ;;  %v653_v28 = vsub.f32 %v631_v24, %v646_v31  ;;  %v656_v38 = vsub.f32 %v643_v29, %v646_v31 }
 0x399   :  { %v900_v39 = vmul.f32 0.5, %v899_v33  ;;  %v912_v43 = vmul.f32 0.5, %v911_v32 }
 0x39a   :  { %v648_v40 = vmul.f32 1.442695, %v647_v35  ;;  %v651_v41 = vmul.f32 1.442695, %v650_v36  ;;  %v654_v42 = vmul.f32 1.442695, %v653_v28 }
 0x39b   :  { %v925_v44 = vmax.f32 %v888_v37, %v900_v39  ;;  %v1093_v45 = vpop.xlane.xlu1 %1092  ;;  %v923_v46 = vpop.xlane.xlu0 %922  ;;  %v657_v48 = vmul.f32 1.442695, %v656_v38 }
 0x39c   :  { %2923 = vpow2.f32 %v648_v40  ;;  %v924_v47 = vmul.f32 0.5, %v923_v46  ;;  %v1094_v53 = vmul.f32 0.5, %v1093_v45 }
 0x39d   :  { %2925 = vpow2.f32 %v651_v41  ;;  %v926_v49 = vmax.f32 %v925_v44, %v912_v43 }
 0x39e   :  { %2927 = vpow2.f32 %v654_v42 }
 0x39f   :  { %v927_v50 = vmax.f32 %v926_v49, %v924_v47  ;;  %v1117_v51 = vpop.xlane.xlu1 %1116  ;;  %v1105_v52 = vpop.xlane.xlu0 %1104  ;;  %2929 = vpow2.f32 %v657_v48 }
 0x3a0   :  { %v1106_v54 = vmul.f32 0.5, %v1105_v52  ;;  %v1118_v59 = vmul.f32 0.5, %v1117_v51 }
 0x3a1   :  { %v928_v55 = vsub.f32 %v888_v37, %v927_v50  ;;  %v931_v56 = vsub.f32 %v900_v39, %v927_v50  ;;  %v934_v57 = vsub.f32 %v912_v43, %v927_v50  ;;  %v937_v58 = vsub.f32 %v924_v47, %v927_v50 }
 0x3a2   :  { %v1131_v60 = vmax.f32 %v1094_v53, %v1106_v54 }
 0x3a3   :  { %v929_v61 = vmul.f32 1.442695, %v928_v55  ;;  %v932_v62 = vmul.f32 1.442695, %v931_v56  ;;  %v503_v63 = vpop.permute.xlu1 %502  ;;  %v1129_v1 = vpop.xlane.xlu0 %1128  ;;  %v935_v2 = vmul.f32 1.442695, %v934_v57 }
 0x3a4   :  { %v505_v3 = vmul.f32 %v503_v63, %v3527_v22  ;;  %v1132_v4 = vmax.f32 %v1131_v60, %v1118_v59  ;;  %v1130_v5 = vmul.f32 0.5, %v1129_v1  ;;  %v938_v6 = vmul.f32 1.442695, %v937_v58 }
 0x3a5   :  { %2931 = vpow2.f32 %v929_v61 }
 0x3a6   :  { %2933 = vpow2.f32 %v932_v62  ;;  %v1133_v8 = vmax.f32 %v1132_v4, %v1130_v5  ;;  %v506_v9 = vsel %vm496_vm4, %v505_v3, 0.0  ;;  %v522_v4 = vsel %vm496_vm4, %v3565_v34, 0.0 }
 0x3a7   :  { %507 = vadd.xlane.f32.xlu0 %v506_v9  ;;  %v511_v10 = vpop.permute.xlu0 %510  ;;  %2935 = vpow2.f32 %v935_v2 }
 0x3a8   :  { %v1134_v11 = vsub.f32 %v1094_v53, %v1133_v8  ;;  %v1137_v12 = vsub.f32 %v1106_v54, %v1133_v8  ;;  %v1140_v13 = vsub.f32 %v1118_v59, %v1133_v8  ;;  %v1143_v15 = vsub.f32 %v1130_v5, %v1133_v8 }
 0x3a9   :  { %v2924_v14 = vpop.eup %2923  ;;  %v513_v16 = vmul.f32 %v511_v10, %v3527_v22  ;;  %2937 = vpow2.f32 %v938_v6 }
 0x3aa   :  { %v2926_v17 = vpop.eup %2925  ;;  %v1135_v18 = vmul.f32 1.442695, %v1134_v11  ;;  %v1138_v19 = vmul.f32 1.442695, %v1137_v12  ;;  %v1141_v23 = vmul.f32 1.442695, %v1140_v13 }
 0x3ab   :  { %v659_v20 = vadd.f32 %v2926_v17, %v2924_v14  ;;  %v514_v24 = vsel %vm496_vm4, %v513_v16, 0.0  ;;  %v2928_v25 = vpop.eup %2927  ;;  %v1144_v26 = vmul.f32 1.442695, %v1143_v15 }
 0x3ac   :  { %2939 = vpow2.f32 %v1135_v18  ;;  %515 = vadd.xlane.f32.xlu0 %v514_v24  ;;  %v2930_v29 = vpop.eup %2929 }
 0x3ad   :  { %v660_v27 = vadd.f32 %v2928_v25, %v659_v20  ;;  %2941 = vpow2.f32 %v1138_v19 }
 0x3ae   :  { %2943 = vpow2.f32 %v1141_v23 }
 0x3af   :  { %v661_v31 = vadd.f32 %v2930_v29, %v660_v27  ;;  %2945 = vpow2.f32 %v1144_v26 }
 0x3b1   :  { %2947 = vrcp.f32 %v661_v31 }
 0x3b2   :  { %v2932_v22 = vpop.eup %2931 }
 0x3b3   :  { %v2934_v32 = vpop.eup %2933 }
 0x3b4   :  { %v940_v33 = vadd.f32 %v2934_v32, %v2932_v22  ;;  %v2936_v35 = vpop.eup %2935 }
 0x3b6   :  { %v941_v36 = vadd.f32 %v2936_v35, %v940_v33  ;;  %v2938_v28 = vpop.eup %2937 }
 0x3b8   :  { %v942_v37 = vadd.f32 %v2938_v28, %v941_v36 }
 0x3b9   :  { %v2940_v38 = vpop.eup %2939 }
 0x3ba   :  { %v2942_v39 = vpop.eup %2941  ;;  %2949 = vrcp.f32 %v942_v37 }
 0x3bb   :  { %v1146_v40 = vadd.f32 %v2942_v39, %v2940_v38  ;;  %v2944_v41 = vpop.eup %2943 }
 0x3bc   :  { %v2946_v42 = vpop.eup %2945 }
 0x3bd   :  { %v1147_v43 = vadd.f32 %v2944_v41, %v1146_v40 }
 0x3be   :  { %v2948_v44 = vpop.eup %2947 }
 0x3bf   :  { %v1148_v45 = vadd.f32 %v2946_v42, %v1147_v43  ;;  %v665_v46 = vmul.f32 %v2948_v44, %v2926_v17  ;;  %v664_v47 = vmul.f32 %v2948_v44, %v2924_v14  ;;  %v666_v49 = vmul.f32 %v2948_v44, %v2928_v25 }
 0x3c0   :  { %v667_v52 = vmul.f32 %v2948_v44, %v2930_v29 }
 0x3c1   :  { %2951 = vrcp.f32 %v1148_v45  ;;  %v669_v48 = vmul.f32 %v665_v46, %v3549_v30  ;;  %v675_v51 = vmul.f32 %v666_v49, %v3549_v30  ;;  %v668_v14 = vmul.f32 %v664_v47, %v3549_v30 }
 0x3c2   :  { %687 = vrot.lane.b32.xlu0 %v3461_v7, %s3256_s27  ;;  %v681_v54 = vmul.f32 %v667_v52, %v3549_v30 }
 0x3c3   :  { %671 = vrot.lane.b32.xlu1 %v669_v48, %s3280_s15 }
 0x3c6   :  { %968 = vrot.lane.b32.xlu0 %v3461_v7, %s3282_s25 }
 0x3c7   :  { %v2950_v50 = vpop.eup %2949 }
 0x3c8   :  { %v945_v53 = vmul.f32 %v2950_v50, %v2932_v22  ;;  %v946_v55 = vmul.f32 %v2950_v50, %v2934_v32  ;;  %v947_v59 = vmul.f32 %v2950_v50, %v2936_v35  ;;  %v948_v61 = vmul.f32 %v2950_v50, %v2938_v28 }
 0x3ca   :  { %677 = vrot.lane.b32.xlu0 %v675_v51, %s3281_s6  ;;  %v950_v58 = vmul.f32 %v946_v55, %v3549_v30  ;;  %v956_v60 = vmul.f32 %v947_v59, %v3549_v30  ;;  %v962_v62 = vmul.f32 %v948_v61, %v3549_v30  ;;  %v949_v24 = vmul.f32 %v945_v53, %v3549_v30 }
 0x3ce   :  { %v2952_v56 = vpop.eup %2951  ;;  %683 = vrot.lane.b32.xlu0 %v681_v54, %s3271_s30 }
 0x3cf   :  { %v1151_v57 = vmul.f32 %v2952_v56, %v2940_v38  ;;  %v1152_v63 = vmul.f32 %v2952_v56, %v2942_v39  ;;  %v1154_v2 = vmul.f32 %v2952_v56, %v2946_v42  ;;  %v1153_v5 = vmul.f32 %v2952_v56, %v2944_v41 }
 0x3d1   :  { %v1156_v1 = vmul.f32 %v1152_v63, %v3549_v30  ;;  %v1168_v3 = vmul.f32 %v1154_v2, %v3549_v30  ;;  %v1162_v6 = vmul.f32 %v1153_v5, %v3549_v30  ;;  %v1155_v41 = vmul.f32 %v1151_v57, %v3549_v30 }
 0x3d2   :  { %952 = vrot.lane.b32.xlu0 %v950_v58, %s3280_s15 }
 0x3d4   :  { %v499_v11 = vpop.xlane.xlu1 %498 }
 0x3d5   :  { %v500_v35 = vmul.f32 0.5, %v499_v11 }
 0x3d6   :  { %958 = vrot.lane.b32.xlu0 %v956_v60, %s3281_s6 }
 0x3da   :  { %964 = vrot.lane.b32.xlu0 %v962_v62, %s3271_s30 }
 0x3de   :  { %1158 = vrot.lane.b32.xlu0 %v1156_v1, %s3280_s15 }
 0x3e2   :  { %1170 = vrot.lane.b32.xlu0 %v1168_v3, %s3271_s30 }
 0x3e6   :  { %1174 = vrot.lane.b32.xlu0 %v3461_v7, %s3283_s7 }
 0x3e7   :  { %523 = vadd.xlane.f32.xlu1 %v522_v4 }
 0x3f8   :  { %1164 = vrot.lane.b32.xlu1 %v1162_v6, %s3281_s6 }
 0x430   :  { %v508_v8 = vpop.xlane.xlu0 %507 }
 0x431   :  { %v509_v33 = vmul.f32 0.5, %v508_v8 }
 0x433   :  { %v526_v37 = vmax.f32 %v500_v35, %v509_v33 }
 0x435   :  { %v516_v9 = vpop.xlane.xlu0 %515  ;;  %v672_v13 = vpop.permute.xlu1 %671 }
 0x436   :  { %v674_v34 = vadd.f32 %v672_v13, %v668_v14  ;;  %v517_v36 = vmul.f32 0.5, %v516_v9 }
 0x438   :  { %v527_v39 = vmax.f32 %v526_v37, %v517_v36 }
 0x439   :  { %v688_v10 = vpop.permute.xlu0 %687 }
 0x43d   :  { %v969_v12 = vpop.permute.xlu0 %968 }
 0x441   :  { %v678_v15 = vpop.permute.xlu0 %677 }
 0x442   :  { %v680_v16 = vadd.f32 %v678_v15, %v674_v34  ;;  %v3667_v34 = vld [vmem:[%s4056_s12] ss:$0 sm:$0xff] }
 0x445   :  { %v684_v17 = vpop.permute.xlu0 %683 }
 0x446   :  { %v686_v18 = vadd.f32 %v684_v17, %v680_v16 }
 0x448   :  { %v3639_v19 = vadd.f32 %v688_v10, %v686_v18 }
 0x449   :  { %v953_v20 = vpop.permute.xlu0 %952 }
 0x44a   :  { %v691_v23 = vmul.f32 %v3639_v19, %v3639_v19  ;;  %v955_v26 = vadd.f32 %v953_v20, %v949_v24 }
 0x44c   :  { %693 = vrot.lane.b32.xlu0 %v691_v23, %s3273_s4 }
 0x44d   :  { %v959_v25 = vpop.permute.xlu0 %958 }
 0x44e   :  { %v961_v27 = vadd.f32 %v959_v25, %v955_v26 }
 0x451   :  { %v965_v29 = vpop.permute.xlu0 %964 }
 0x452   :  { %v967_v31 = vadd.f32 %v965_v29, %v961_v27 }
 0x454   :  { %v3645_v22 = vadd.f32 %v969_v12, %v967_v31 }
 0x455   :  { %v1159_v28 = vpop.permute.xlu0 %1158 }
 0x456   :  { %v972_v32 = vmul.f32 %v3645_v22, %v3645_v22  ;;  %v1161_v44 = vadd.f32 %v1159_v28, %v1155_v41 }
 0x458   :  { %974 = vrot.lane.b32.xlu0 %v972_v32, %s3274_s9 }
 0x459   :  { %v1171_v42 = vpop.permute.xlu0 %1170 }
 0x45d   :  { %v1175_v53 = vpop.permute.xlu0 %1174 }
 0x470   :  { %v524_v38 = vpop.xlane.xlu1 %523 }
 0x471   :  { %v525_v40 = vmul.f32 0.5, %v524_v38 }
 0x473   :  { %v528_v43 = vmax.f32 %v527_v39, %v525_v40 }
 0x474   :  { %v1165_v45 = vpop.permute.xlu1 %1164 }
 0x475   :  { %v529_v46 = vsub.f32 %v500_v35, %v528_v43  ;;  %v532_v47 = vsub.f32 %v509_v33, %v528_v43  ;;  %v535_v48 = vsub.f32 %v517_v36, %v528_v43  ;;  %v538_v49 = vsub.f32 %v525_v40, %v528_v43  ;;  %v2583_v33 = vld [vmem:[%s4087_s1 + $0x4] sm:$0xf] }
 0x476   :  { %v1167_v50 = vadd.f32 %v1165_v45, %v1161_v44  ;;  %2757 = vmatpush3.msk.msra.mxu1 %vm268_vm1, %v2583_v33  ;;  %v1349_v33 = vld [vmem:[%s4052_s8 + $0x8] sm:$0xff] }
 0x477   :  { %v530_v51 = vmul.f32 1.442695, %v529_v46  ;;  %v533_v52 = vmul.f32 1.442695, %v532_v47  ;;  %v536_v54 = vmul.f32 1.442695, %v535_v48  ;;  %2761 = vmatprep.subr.mxu1 %v3268_v0 }
 0x478   :  { %v1173_v55 = vadd.f32 %v1171_v42, %v1167_v50  ;;  %v539_v56 = vmul.f32 1.442695, %v538_v49 }
 0x479   :  { %2953 = vpow2.f32 %v530_v51 }
 0x47a   :  { %2955 = vpow2.f32 %v533_v52  ;;  %v3651_v58 = vadd.f32 %v1175_v53, %v1173_v55  ;;  %v2588_v53 = vld [vmem:[#allocation9 + $0x2] ss:$0 sm:$0xff]  ;;  %v2592_v55 = vld [vmem:[#allocation9 + $0x3] ss:$0 sm:$0xff] }
 0x47b   :  { %2957 = vpow2.f32 %v536_v54 }
 0x47c   :  { %v1178_v57 = vmul.f32 %v3651_v58, %v3651_v58  ;;  %2959 = vpow2.f32 %v539_v56 }
 0x47e   :  { %1180 = vrot.lane.b32.xlu1 %v1178_v57, %s3278_s5 }
 0x486   :  { %v2954_v59 = vpop.eup %2953 }
 0x487   :  { %v2956_v60 = vpop.eup %2955 }
 0x488   :  { %v541_v61 = vadd.f32 %v2956_v60, %v2954_v59  ;;  %v2958_v62 = vpop.eup %2957 }
 0x489   :  { %v2960_v1 = vpop.eup %2959 }
 0x48a   :  { %v542_v63 = vadd.f32 %v2958_v62, %v541_v61  ;;  %v2581_v61 = vld [vmem:[#allocation9] ss:$0 sm:$0xff] }
 0x48c   :  { %v543_v2 = vadd.f32 %v2960_v1, %v542_v63 }
 0x48e   :  { %2961 = vrcp.f32 %v543_v2  ;;  %v599_v2 = vld [vmem:[%s4087_s1] sm:$0xf] }
 0x49b   :  { %v2962_v3 = vpop.eup %2961 }
 0x49c   :  { %v548_v4 = vmul.f32 %v2962_v3, %v2958_v62  ;;  %v547_v5 = vmul.f32 %v2962_v3, %v2956_v60  ;;  %v546_v6 = vmul.f32 %v2962_v3, %v2954_v59  ;;  %v549_v10 = vmul.f32 %v2962_v3, %v2960_v1 }
 0x49e   :  { %v557_v8 = vmul.f32 %v548_v4, %v3549_v30  ;;  %v551_v9 = vmul.f32 %v547_v5, %v3549_v30  ;;  %v563_v11 = vmul.f32 %v549_v10, %v3549_v30  ;;  %v550_v18 = vmul.f32 %v546_v6, %v3549_v30  ;;  %v2589_v4 = vld [vmem:[%s4087_s1 + $0x8] sm:$0xf]  ;;  %v2593_v5 = vld [vmem:[%s4087_s1 + $0xc] sm:$0xf]  ;;  %v1362_v10 = vld [vmem:[%s4052_s8 + $0x70] sm:$0xff] }
 0x4a0   :  { %559 = vrot.lane.b32.xlu1 %v557_v8, %s3281_s6  ;;  %553 = vrot.lane.b32.xlu0 %v551_v9, %s3280_s15  ;;  %v1363_v8 = vld [vmem:[%s4052_s8 + $0x78] sm:$0xff] }
 0x4a4   :  { %565 = vrot.lane.b32.xlu0 %v563_v11, %s3271_s30  ;;  %v1361_v11 = vld [vmem:[%s4052_s8 + $0x68] sm:$0xff] }
 0x4be   :  { %v694_v12 = vpop.permute.xlu0 %693 }
 0x4bf   :  { %v696_v13 = vsel %vm496_vm4, %v694_v12, 0.0 }
 0x4c4   :  { %697 = vadd.xlane.f32.xlu1 %v696_v13 }
 0x4ca   :  { %v975_v14 = vpop.permute.xlu0 %974 }
 0x4cb   :  { %v977_v15 = vsel %vm496_vm4, %v975_v14, 0.0  ;;  %v1360_v14 = vld [vmem:[%s4052_s8 + $0x60] sm:$0xff] }
 0x4cc   :  { %978 = vadd.xlane.f32.xlu0 %v977_v15  ;;  %v1359_v15 = vld [vmem:[%s4052_s8 + $0x58] sm:$0xff] }
 0x4d5   :  { %703 = vrot.lane.b32.xlu1 %v3667_v34, %s3256_s27 }
 0x4d9   :  { %1190 = vrot.lane.b32.xlu1 %v3667_v34, %s3283_s7 }
 0x4f0   :  { %v1181_v16 = vpop.permute.xlu1 %1180 }
 0x4f1   :  { %v1183_v17 = vsel %vm496_vm4, %v1181_v16, 0.0 }
 0x4f2   :  { %1184 = vadd.xlane.f32.xlu0 %v1183_v17  ;;  %v1358_v17 = vld [vmem:[%s4052_s8 + $0x50] sm:$0xff] }
 0x508   :  { %984 = vrot.lane.b32.xlu0 %v3667_v34, %s3282_s25 }
 0x512   :  { %v554_v20 = vpop.permute.xlu0 %553  ;;  %v560_v24 = vpop.permute.xlu1 %559 }
 0x513   :  { %v556_v23 = vadd.f32 %v554_v20, %v550_v18  ;;  %v1357_v18 = vld [vmem:[%s4052_s8 + $0x48] sm:$0xff] }
 0x515   :  { %v562_v25 = vadd.f32 %v560_v24, %v556_v23  ;;  %v1356_v24 = vld [vmem:[%s4052_s8 + $0x40] sm:$0xff] }
 0x516   :  { %v566_v26 = vpop.permute.xlu0 %565 }
 0x517   :  { %v568_v27 = vadd.f32 %v566_v26, %v562_v25  ;;  %v1355_v25 = vld [vmem:[%s4052_s8 + $0x38] sm:$0xff]  ;;  %v1354_v26 = vld [vmem:[%s4052_s8 + $0x30] sm:$0xff] }
 0x519   :  { %v569_v29 = vadd.f32 %v568_v27, %v3461_v7  ;;  %v1353_v27 = vld [vmem:[%s4052_s8 + $0x28] sm:$0xff] }
 0x51b   :  { %v570_v31 = vmul.f32 %v569_v29, %v569_v29 }
 0x51d   :  { %v571_v32 = vsel %vm496_vm4, %v570_v31, 0.0  ;;  %v1351_v31 = vld [vmem:[%s4052_s8 + $0x18] sm:$0xff] }
 0x51e   :  { %572 = vadd.xlane.f32.xlu1 %v571_v32  ;;  %v1350_v32 = vld [vmem:[%s4052_s8 + $0x10] sm:$0xff] }
 0x54d   :  { %v698_v30 = vpop.xlane.xlu1 %697 }
 0x54e   :  { %v699_v35 = vmul.f32 0.25, %v698_v30  ;;  %v1348_v30 = vld [vmem:[%s4052_s8] sm:$0xff] }
 0x550   :  { %v700_v36 = vadd.f32 1e-08, %v699_v35 }
 0x551   :  { %v704_v37 = vpop.permute.xlu1 %703 }
 0x552   :  { %2963 = vrsqrt.f32 %v700_v36 }
 0x555   :  { %v979_v39 = vpop.xlane.xlu0 %978  ;;  %v1191_v50 = vpop.permute.xlu1 %1190 }
 0x556   :  { %v980_v40 = vmul.f32 0.25, %v979_v39 }
 0x558   :  { %v981_v41 = vadd.f32 1e-08, %v980_v40 }
 0x55a   :  { %2965 = vrsqrt.f32 %v981_v41 }
 0x55f   :  { %v2964_v28 = vpop.eup %2963 }
 0x560   :  { %v702_v7 = vmul.f32 %v2964_v28, %v3639_v19  ;;  %v492_v19 = vstv %s4065_s21 }
 0x562   :  { %v3685_v38 = vmul.f32 %v704_v37, %v702_v7 }
 0x564   :  { %729 = vrot.lane.b32.xlu0 %v3685_v38, %s3273_s4 }
 0x567   :  { %v2966_v42 = vpop.eup %2965 }
 0x568   :  { %v983_v46 = vmul.f32 %v2966_v42, %v3645_v22  ;;  %v2582_v22 = vld [vmem:[#allocation9 + $0x1] ss:$0 sm:$0xff] }
 0x57b   :  { %v1185_v43 = vpop.xlane.xlu0 %1184 }
 0x57c   :  { %v1186_v44 = vmul.f32 0.25, %v1185_v43  ;;  %v1472_v43 = vld [vmem:[%s4084_s2 + $0x78] sm:$0xff] }
 0x57d   :  { %2812 = vmatpush3.msra.mxu0 %v1472_v43 }
 0x57e   :  { %v1187_v45 = vadd.f32 1e-08, %v1186_v44  ;;  %v1471_v44 = vld [vmem:[%s4084_s2 + $0x70] sm:$0xff]  ;;  %2813 = vmatprep.subr.mxu0 %v3268_v0 }
 0x57f   :  { %v985_v47 = vpop.permute.xlu0 %984  ;;  %2814 = vmatpush3.msra.mxu0 %v1471_v44 }
 0x580   :  { %2967 = vrsqrt.f32 %v1187_v45  ;;  %v3690_v48 = vmul.f32 %v985_v47, %v983_v46  ;;  %v1470_v45 = vld [vmem:[%s4084_s2 + $0x68] sm:$0xff]  ;;  %2815 = vmatprep.subr.mxu0 %v3268_v0  ;;  %v1469_v46 = vld [vmem:[%s4084_s2 + $0x60] sm:$0xff]  ;;  %v1468_v47 = vld [vmem:[%s4084_s2 + $0x58] sm:$0xff] }
 0x581   :  { %2969 = vrcp.f32 %v492_v19  ;;  %2816 = vmatpush3.msra.mxu0 %v1470_v45 }
 0x582   :  { %1010 = vrot.lane.b32.xlu0 %v3690_v48, %s3274_s9  ;;  %2817 = vmatprep.subr.mxu0 %v3268_v0 }
 0x583   :  { %2818 = vmatpush3.msra.mxu0 %v1469_v46 }
 0x584   :  { %2819 = vmatprep.subr.mxu0 %v3268_v0 }
 0x585   :  { %2820 = vmatpush3.msra.mxu0 %v1468_v47 }
 0x586   :  { %2821 = vmatprep.subr.mxu0 %v3268_v0 }
 0x58d   :  { %v2968_v49 = vpop.eup %2967 }
 0x58e   :  { %v1189_v51 = vmul.f32 %v2968_v49, %v3651_v58  ;;  %v2970_v54 = vpop.eup %2969  ;;  %v1467_v49 = vld [vmem:[%s4084_s2 + $0x50] sm:$0xff] }
 0x58f   :  { %2885 = vpush %v2970_v54  ;;  %2822 = vmatpush3.msra.mxu0 %v1467_v49  ;;  %v1462_v54 = vld [vmem:[%s4084_s2 + $0x28] sm:$0xff] }
 0x590   :  { %v3698_v52 = vmul.f32 %v1191_v50, %v1189_v51  ;;  %v1466_v51 = vld [vmem:[%s4084_s2 + $0x48] sm:$0xff]  ;;  %2823 = vmatprep.subr.mxu0 %v3268_v0 }
 0x591   :  { %2824 = vmatpush3.msra.mxu0 %v1466_v51 }
 0x592   :  { %1216 = vrot.lane.b32.xlu0 %v3698_v52, %s3278_s5  ;;  %2825 = vmatprep.subr.mxu0 %v3268_v0 }
 0x596   :  { %714 = vrot.lane.b32.xlu0 %v2582_v22, %s3256_s27  ;;  %v1464_v22 = vld [vmem:[%s4084_s2 + $0x38] sm:$0xff] }
 0x59a   :  { %995 = vrot.lane.b32.xlu0 %v2588_v53, %s3282_s25  ;;  %v1463_v53 = vld [vmem:[%s4084_s2 + $0x30] sm:$0xff] }
 0x59e   :  { %1201 = vrot.lane.b32.xlu0 %v2592_v55, %s3283_s7  ;;  %v1461_v55 = vld [vmem:[%s4084_s2 + $0x20] sm:$0xff] }
 0x5a7   :  { %v573_v56 = vpop.xlane.xlu1 %572 }
 0x5a8   :  { %v575_v57 = vmul.f32 0.25, %v573_v56  ;;  %v1460_v56 = vld [vmem:[%s4084_s2 + $0x18] sm:$0xff] }
 0x5aa   :  { %v576_v59 = vadd.f32 1e-08, %v575_v57 }
 0x5ac   :  { %2971 = vrsqrt.f32 %v576_v59 }
 0x5b9   :  { %v2972_v58 = vpop.eup %2971 }
 0x5ba   :  { %v578_v60 = vmul.f32 %v2972_v58, %v569_v29  ;;  %v1352_v29 = vld [vmem:[%s4052_s8 + $0x20] sm:$0xff]  ;;  %v1459_v58 = vld [vmem:[%s4084_s2 + $0x10] sm:$0xff]  ;;  %s2559_s8 = sshll.u32 %s3288_s3, 4  ;;  %s2560_s8 = int_to_ptr.vmem [resolvable:$true] %s2559_s8 }
 0x5bb   :  { %s3200_s26 = scalar_lea.vmem %s2560_s8, 32  ;;  %p3205_p13 = scmp.lt.s32.totalorder %s2560_s8, %s2560_s8 }
 0x5bc   :  { %v585_v62 = vmul.f32 %v3667_v34, %v578_v60  ;;  %p3201_p12 = scmp.ne.s32.totalorder %s2560_s8, %s3200_s26  ;;  %p3206_p0 = scmp.lt.s32.totalorder %s3200_s26, %s3200_s26 }
 0x5be   :  { %v593_v63 = vmul.f32 %v2581_v61, %v585_v62  ;;  %v1458_v61 = vld [vmem:[%s4084_s2 + $0x8] sm:$0xff]  ;;  %p3207_p1 = por %p3206_p0, %p3205_p13 }
 0x5c0   :  { %v594_v1 = vsel %vm496_vm4, %v593_v63, 0.0  ;;  %v1544_v63 = vld [vmem:[#allocation14 + $0x8] sm:$0xff]  ;;  %p3208_p2 = pnand %p3207_p1, %p3201_p12 }
 0x5c1   :  { %595 = vadd.xlane.f32.xlu1 %v594_v1  ;;  %v1543_v1 = vld [vmem:[#allocation14] sm:$0xff] }
 0x5d6   :  { %v730_v3 = vpop.permute.xlu0 %729 }
 0x5d7   :  { %2759 = vmatmul.mubr.msk.f32.vlgmr.msra.gmra.mxu1 %vm264_vm2, %v730_v3 }
 0x5d8   :  { %2762 = vmatpush3.msk.msra.mxu1 %vm268_vm1, %v599_v2  ;;  %2763 = vmatprep.mubr.msk.f32.mxu1 %vm3269_vm0, %v3268_v0  ;;  %v2600_v2 = vld [vmem:[#allocation11] ss:$0 sm:$0xff] }
 0x5d9   :  { %2766 = vmatprep.subr.mxu1 %v3268_v0 }
 0x5db   :  { %2764 = vmatmul.mubr.msk.f32.vlgmr.msra.gmra.mxu1 %vm264_vm2, %v585_v62  ;;  %v1457_v62 = vld [vmem:[%s4084_s2] sm:$0xff] }
 0x5dc   :  { %2767 = vmatpush3.msk.msra.mxu1 %vm268_vm1, %v2589_v4  ;;  %2768 = vmatprep.mubr.msk.f32.mxu1 %vm3269_vm0, %v3268_v0  ;;  %v2601_v4 = vld [vmem:[#allocation12] ss:$0 sm:$0xff] }
 0x5dd   :  { %2771 = vmatprep.subr.mxu1 %v3268_v0 }
 0x5f4   :  { %v1011_v6 = vpop.permute.xlu0 %1010 }
 0x5f5   :  { %2769 = vmatmul.mubr.msk.f32.vlgmr.msra.gmra.mxu1 %vm264_vm2, %v1011_v6 }
 0x5f6   :  { %2772 = vmatpush3.msk.msra.mxu1 %vm268_vm1, %v2593_v5  ;;  %2773 = vmatprep.mubr.msk.f32.mxu1 %vm3269_vm0, %v3268_v0 }
 0x5f7   :  { %2776 = vmatprep.subr.mxu1 %v3268_v0 }
 0x604   :  { %v1217_v9 = vpop.permute.xlu0 %1216 }
 0x605   :  { %2774 = vmatmul.mubr.msk.f32.vlgmr.msra.gmra.mxu1 %vm264_vm2, %v1217_v9 }
 0x606   :  { %2777 = vmatpush3.msra.mxu1 %v1363_v8  ;;  %2808 = vmatprep.mubr.msk.f32.mxu1 %vm3269_vm0, %v3268_v0 }
 0x607   :  { %2778 = vmatprep.subr.mxu1 %v3268_v0 }
 0x608   :  { %2779 = vmatpush3.msra.mxu1 %v1362_v10  ;;  %v715_v12 = vpop.permute.xlu0 %714 }
 0x609   :  { %2780 = vmatprep.subr.mxu1 %v3268_v0  ;;  %v717_v13 = vmul.f32 %v715_v12, %v3685_v38 }
 0x60a   :  { %2781 = vmatpush3.msra.mxu1 %v1361_v11 }
 0x60b   :  { %2782 = vmatprep.subr.mxu1 %v3268_v0  ;;  %719 = vrot.lane.b32.xlu0 %v717_v13, %s3273_s4 }
 0x60c   :  { %2783 = vmatpush3.msra.mxu1 %v1360_v14  ;;  %v996_v34 = vpop.permute.xlu0 %995 }
 0x60d   :  { %2784 = vmatprep.subr.mxu1 %v3268_v0  ;;  %v998_v16 = vmul.f32 %v996_v34, %v3690_v48 }
 0x60e   :  { %2785 = vmatpush3.msra.mxu1 %v1359_v15 }
 0x60f   :  { %2786 = vmatprep.subr.mxu1 %v3268_v0  ;;  %1000 = vrot.lane.b32.xlu0 %v998_v16, %s3274_s9 }
 0x610   :  { %2787 = vmatpush3.msra.mxu1 %v1358_v17  ;;  %v1202_v20 = vpop.permute.xlu0 %1201 }
 0x611   :  { %2788 = vmatprep.subr.mxu1 %v3268_v0  ;;  %v1204_v23 = vmul.f32 %v1202_v20, %v3698_v52  ;;  %v1465_v52 = vld [vmem:[%s4084_s2 + $0x40] sm:$0xff]  ;;  %s2886_s2 = spop %2885 }
 0x612   :  { %2789 = vmatpush3.msra.mxu1 %v1357_v18  ;;  %2826 = vmatpush3.msra.mxu0 %v1465_v52  ;;  %v597_v12 = vstv %s2886_s2 }
 0x613   :  { %2790 = vmatprep.subr.mxu1 %v3268_v0  ;;  %1206 = vrot.lane.b32.xlu0 %v1204_v23, %s3278_s5 }
 0x614   :  { %2791 = vmatpush3.msra.mxu1 %v1356_v24  ;;  %2827 = vmatprep.subr.mxu0 %v3268_v0 }
 0x615   :  { %2792 = vmatprep.subr.mxu1 %v3268_v0  ;;  %2828 = vmatpush3.msra.mxu0 %v1464_v22 }
 0x616   :  { %2793 = vmatpush3.msra.mxu1 %v1355_v25  ;;  %2829 = vmatprep.subr.mxu0 %v3268_v0 }
 0x617   :  { %2794 = vmatprep.subr.mxu1 %v3268_v0  ;;  %2830 = vmatpush3.msra.mxu0 %v1463_v53 }
 0x618   :  { %2795 = vmatpush3.msra.mxu1 %v1354_v26  ;;  %2831 = vmatprep.subr.mxu0 %v3268_v0 }
 0x619   :  { %2796 = vmatprep.subr.mxu1 %v3268_v0  ;;  %2832 = vmatpush3.msra.mxu0 %v1462_v54 }
 0x61a   :  { %2797 = vmatpush3.msra.mxu1 %v1353_v27  ;;  %2833 = vmatprep.subr.mxu0 %v3268_v0 }
 0x61b   :  { %2798 = vmatprep.subr.mxu1 %v3268_v0  ;;  %2834 = vmatpush3.msra.mxu0 %v1461_v55 }
 0x61c   :  { %2799 = vmatpush3.msra.mxu1 %v1352_v29  ;;  %2835 = vmatprep.subr.mxu0 %v3268_v0 }
 0x61d   :  { %2800 = vmatprep.subr.mxu1 %v3268_v0  ;;  %2836 = vmatpush3.msra.mxu0 %v1460_v56  ;;  %v3039_v56 = vld [vmem:[#allocation6] sm:$0x3] }
 0x61e   :  { %2801 = vmatpush3.msra.mxu1 %v1351_v31  ;;  %2837 = vmatprep.subr.mxu0 %v3268_v0 }
 0x61f   :  { %2802 = vmatprep.subr.mxu1 %v3268_v0  ;;  %2838 = vmatpush3.msra.mxu0 %v1459_v58 }
 0x620   :  { %2803 = vmatpush3.msra.mxu1 %v1350_v32  ;;  %2839 = vmatprep.subr.mxu0 %v3268_v0 }
 0x621   :  { %2804 = vmatprep.subr.mxu1 %v3268_v0  ;;  %2840 = vmatpush3.msra.mxu0 %v1458_v61 }
 0x622   :  { %2805 = vmatpush3.msra.mxu1 %v1349_v33  ;;  %2841 = vmatprep.subr.mxu0 %v3268_v0 }
 0x623   :  { %2806 = vmatprep.subr.mxu1 %v3268_v0  ;;  %2842 = vmatpush3.msra.mxu0 %v1457_v62 }
 0x624   :  { %2807 = vmatpush3.msra.mxu1 %v1348_v30  ;;  %2858 = vmatprep.subr.mxu0 %v3268_v0 }
 0x625   :  { %2809 = vmatmul.mubr.f32.vlgmr.msra.gmra.mxu1 %v3520_v21  ;;  %2846 = vmatprep.subr.mxu1 %v3268_v0 }
 0x626   :  { %2850 = vmatprep.mubr.msk.f32.mxu1 %vm3269_vm0, %v3268_v0  ;;  %2847 = vmatpush3.msra.mxu1 %v1544_v63 }
 0x627   :  { %2848 = vmatprep.subr.mxu1 %v3268_v0 }
 0x628   :  { %2849 = vmatpush3.msra.mxu1 %v1543_v1 }
 0x629   :  { %2853 = vmatprep.subr.mxu1 %v3268_v0 }
 0x64a   :  { %v596_v10 = vpop.xlane.xlu1 %595 }
 0x64b   :  { %v598_v15 = vmul.f32 %v597_v12, %v596_v10 }
 0x67d   :  { %v720_v35 = vpop.permute.xlu0 %719 }
 0x67e   :  { %v722_v36 = vsel %vm496_vm4, %v720_v35, 0.0 }
 0x67f   :  { %723 = vadd.xlane.f32.xlu0 %v722_v36 }
 0x681   :  { %v1001_v28 = vpop.permute.xlu0 %1000 }
 0x682   :  { %v1003_v37 = vsel %vm496_vm4, %v1001_v28, 0.0 }
 0x683   :  { %1004 = vadd.xlane.f32.xlu1 %v1003_v37 }
 0x685   :  { %v1207_v7 = vpop.permute.xlu0 %1206 }
 0x686   :  { %v1209_v38 = vsel %vm496_vm4, %v1207_v7, 0.0 }
 0x687   :  { %1210 = vadd.xlane.f32.xlu1 %v1209_v38 }
 0x697   :  { %v802_v39 = vpop.f32.mrf.mxu1 }
 0x699   :  { %v2760_v40 = vpop.f32.mrf.mxu1 }
 0x69b   :  { %v878_v21 = vpop.f32.mrf.mxu1 }
 0x69c   :  { %v879_v41 = vadd.f32 %v878_v21, %v802_v39  ;;  %v1318_v39 = vlaneseq }
 0x69d   :  { %v2765_v42 = vpop.f32.mrf.mxu1 }
 0x69e   :  { %v1319_v40 = vand.u32 127, %v1318_v39 }
 0x6a0   :  { %vm1327_vm5 = vcmp.ge.s32.totalorder %v1319_v40, 32  ;;  %vm1328_vm6 = vcmp.lt.s32.totalorder %v1319_v40, 64  ;;  %vm1334_vm7 = vcmp.ge.s32.totalorder %v1319_v40, 64  ;;  %vm1335_vm8 = vcmp.lt.s32.totalorder %v1319_v40, 96 }
 0x6a1   :  { %vm1321_vm9 = vcmp.lt.s32.totalorder %v1319_v40, 32  ;;  %vm1329_vm10 = vmand %vm1327_vm5, %vm1328_vm6  ;;  %vm1341_vm12 = vcmp.ge.s32.totalorder %v1319_v40, 96 }
 0x6a2   :  { %vm1336_vm11 = vmand %vm1334_vm7, %vm1335_vm8  ;;  %v2597_v42 = vsel %vm1329_vm10, 1.0, %v3268_v0  ;;  %v2599_v49 = vsel %vm1341_vm12, 1.0, %v3268_v0 }
 0x6a3   :  { %v2598_v46 = vsel %vm1336_vm11, 1.0, %v3268_v0 }
 0x6b5   :  { %v1083_v48 = vpop.f32.mrf.mxu1 }
 0x6b6   :  { %v1087_v19 = vadd.f32 %v1083_v48, %v879_v41  ;;  %v2596_v41 = vsel %vm1321_vm9, 1.0, %v3268_v0 }
 0x6b7   :  { %v2770_v50 = vpop.f32.mrf.mxu1 }
 0x6c5   :  { %v1289_v57 = vpop.f32.mrf.mxu1 }
 0x6c6   :  { %v1293_v59 = vadd.f32 %v1289_v57, %v1087_v19 }
 0x6c7   :  { %v2775_v60 = vpop.f32.mrf.mxu1 }
 0x6e5   :  { %v1430_v3 = vpop.f32.mrf.mxu1 }
 0x6e6   :  { %v1441_v5 = vmul.f32 %v2600_v2, %v1430_v3 }
 0x6e7   :  { %v2810_v6 = vpop.f32.mrf.mxu1 }
 0x6e8   :  { %v1449_v8 = vadd.f32 %v2601_v4, %v1441_v5 }
 0x6ea   :  { %v1452_v9 = vadd.f32 %v1449_v8, %v1293_v59 }
 0x708   :  { %v724_v11 = vpop.xlane.xlu0 %723 }
 0x709   :  { %v725_v13 = vmul.f32 %v724_v11, %v597_v12 }
 0x70b   :  { %v1294_v16 = vmax.f32 %v598_v15, %v725_v13 }
 0x70c   :  { %v1005_v14 = vpop.xlane.xlu1 %1004 }
 0x70d   :  { %v1006_v34 = vmul.f32 %v1005_v14, %v597_v12 }
 0x70f   :  { %v1295_v18 = vmax.f32 %v1294_v16, %v1006_v34 }
 0x710   :  { %v1211_v17 = vpop.xlane.xlu1 %1210 }
 0x711   :  { %v1212_v20 = vmul.f32 %v1211_v17, %v597_v12 }
 0x713   :  { %v1296_v23 = vmax.f32 %v1295_v18, %v1212_v20 }
 0x715   :  { %v1297_v24 = vsub.f32 %v598_v15, %v1296_v23  ;;  %v1300_v25 = vsub.f32 %v725_v13, %v1296_v23  ;;  %v1303_v26 = vsub.f32 %v1006_v34, %v1296_v23  ;;  %v1306_v27 = vsub.f32 %v1212_v20, %v1296_v23 }
 0x717   :  { %v1298_v29 = vmul.f32 1.442695, %v1297_v24  ;;  %v1301_v31 = vmul.f32 1.442695, %v1300_v25  ;;  %v1304_v32 = vmul.f32 1.442695, %v1303_v26 }
 0x718   :  { %v1307_v33 = vmul.f32 1.442695, %v1306_v27 }
 0x719   :  { %2973 = vpow2.f32 %v1298_v29 }
 0x71a   :  { %2975 = vpow2.f32 %v1301_v31 }
 0x71b   :  { %2977 = vpow2.f32 %v1304_v32 }
 0x71c   :  { %2979 = vpow2.f32 %v1307_v33 }
 0x726   :  { %v2974_v30 = vpop.eup %2973 }
 0x727   :  { %v2976_v35 = vpop.eup %2975 }
 0x728   :  { %v1309_v36 = vadd.f32 %v2976_v35, %v2974_v30  ;;  %v2978_v28 = vpop.eup %2977 }
 0x729   :  { %v2980_v7 = vpop.eup %2979 }
 0x72a   :  { %v1310_v37 = vadd.f32 %v2978_v28, %v1309_v36 }
 0x72c   :  { %v1311_v38 = vadd.f32 %v2980_v7, %v1310_v37 }
 0x72e   :  { %2981 = vrcp.f32 %v1311_v38 }
 0x72f   :  { %2983 = vtanh.f32 %v1452_v9 }
 0x73b   :  { %v2982_v21 = vpop.eup %2981 }
 0x73c   :  { %v1314_v43 = vmul.f32 %v2982_v21, %v2974_v30  ;;  %v1315_v44 = vmul.f32 %v2982_v21, %v2976_v35  ;;  %v1316_v45 = vmul.f32 %v2982_v21, %v2978_v28  ;;  %v1317_v47 = vmul.f32 %v2982_v21, %v2980_v7  ;;  %v2984_v55 = vpop.eup %2983 }
 0x73e   :  { %v1325_v48 = vmul.f32 %v2596_v41, %v1314_v43  ;;  %v1332_v19 = vmul.f32 %v2597_v42, %v1315_v44  ;;  %v1339_v51 = vmul.f32 %v2598_v46, %v1316_v45  ;;  %v1346_v22 = vmul.f32 %v2599_v49, %v1317_v47 }
 0x740   :  { %v1333_v50 = vadd.f32 %v1332_v19, %v1325_v48 }
 0x742   :  { %v1340_v52 = vadd.f32 %v1339_v51, %v1333_v50 }
 0x744   :  { %v1347_v53 = vadd.f32 %v1346_v22, %v1340_v52 }
 0x746   :  { %v1450_v54 = vsub.f32 1.0, %v1347_v53  ;;  %v1454_v59 = vmul.f32 %v2984_v55, %v1347_v53 }
 0x748   :  { %v1451_v57 = vmul.f32 %v3039_v56, %v1450_v54 }
 0x74a   :  { %v1455_v58 = vadd.f32 %v1454_v59, %v1451_v57 }
 0x74c   :  { %2844 = vmatmul.mubr.f32.vlgmr.msra.gmra.mxu0 %v1455_v58  ;;  %1456 = vst [vmem:[#allocation18] sm:$0x3] %v1455_v58 }
 0x74d   :  { %2860 = vmatprep.mubr.msk.f32.mxu0 %vm3269_vm0, %v3268_v0 }
 0x80c   :  { %v3882_v60 = vpop.f32.mrf.mxu0 }
 0x80d   :  { %2851 = vmatmul.mubr.msk.f32.vlgmr.msra.gmra.mxu1 %vm344_vm3, %v3882_v60 }
 0x80e   :  { %v2845_v61 = vpop.f32.mrf.mxu0  ;;  %2855 = vmatprep.mubr.msk.f32.mxu1 %vm3269_vm0, %v3268_v0 }
 0x8cd   :  { %v3888_v62 = vpop.f32.mrf.mxu1 }
 0x8ce   :  { %1984 = vrot.lane.b32.xlu0 %v3888_v62, %s3281_s6  ;;  %1621 = vrot.lane.b32.xlu1 %v3888_v62, %s3273_s4  ;;  %s3286_s4 = smov 20  }
 0x8cf   :  { %v2852_v63 = vpop.f32.mrf.mxu1 }
 0x8d2   :  { %1807 = vrot.lane.b32.xlu1 %v3888_v62, %s3271_s30 }
 0x8d6   :  { %1629 = vrot.lane.b32.xlu1 %v3888_v62, %s3270_s0  ;;  %s3284_s0 = smov 24  }
 0x8da   :  { %1637 = vrot.lane.b32.xlu1 %v3888_v62, %s3272_s10  ;;  %s3285_s10 = smov 28  }
 0x8de   :  { %2158 = vrot.lane.b32.xlu1 %v3888_v62, %s3280_s15 }
 0x8e2   :  { %1645 = vrot.lane.b32.xlu1 %v3888_v62, %s3275_s24 }
 0x940   :  { %v1622_v1 = vpop.permute.xlu1 %1621  ;;  %v1985_v8 = vpop.permute.xlu0 %1984 }
 0x941   :  { %v1624_v5 = vmul.f32 %v1622_v1, %v3888_v62  ;;  %v1987_v10 = vmul.f32 %v1985_v8, %v3888_v62 }
 0x943   :  { %v1625_v14 = vsel %vm496_vm4, %v1624_v5, 0.0 }
 0x944   :  { %v1808_v2 = vpop.permute.xlu1 %1807 }
 0x945   :  { %v1810_v3 = vmul.f32 %v1808_v2, %v3888_v62 }
 0x947   :  { %1812 = vrot.lane.b32.xlu1 %v1810_v3, %s3280_s15 }
 0x948   :  { %v1630_v4 = vpop.permute.xlu1 %1629 }
 0x949   :  { %v1632_v6 = vmul.f32 %v1630_v4, %v3888_v62 }
 0x94b   :  { %1820 = vrot.lane.b32.xlu1 %v1624_v5, %s3280_s15  ;;  %1828 = vrot.lane.b32.xlu0 %v1632_v6, %s3280_s15  ;;  %v1633_v18 = vsel %vm496_vm4, %v1632_v6, 0.0 }
 0x94c   :  { %v1638_v9 = vpop.permute.xlu1 %1637 }
 0x94d   :  { %v1640_v11 = vmul.f32 %v1638_v9, %v3888_v62 }
 0x94f   :  { %1989 = vrot.lane.b32.xlu1 %v1987_v10, %s3281_s6  ;;  %1996 = vrot.lane.b32.xlu0 %v1810_v3, %s3281_s6  ;;  %v1641_v16 = vsel %vm496_vm4, %v1640_v11, 0.0 }
 0x950   :  { %v2159_v12 = vpop.permute.xlu1 %2158 }
 0x951   :  { %v2161_v13 = vmul.f32 %v2159_v12, %v3888_v62 }
 0x953   :  { %2003 = vrot.lane.b32.xlu0 %v1624_v5, %s3281_s6  ;;  %1836 = vrot.lane.b32.xlu1 %v1640_v11, %s3280_s15 }
 0x954   :  { %v1646_v15 = vpop.permute.xlu1 %1645 }
 0x955   :  { %v1648_v34 = vmul.f32 %v1646_v15, %v3888_v62 }
 0x957   :  { %2170 = vrot.lane.b32.xlu0 %v1987_v10, %s3271_s30  ;;  %2163 = vrot.lane.b32.xlu1 %v2161_v13, %s3271_s30  ;;  %v1649_v17 = vsel %vm496_vm4, %v1648_v34, 0.0 }
 0x95b   :  { %2177 = vrot.lane.b32.xlu0 %v1810_v3, %s3271_s30  ;;  %2010 = vrot.lane.b32.xlu1 %v1632_v6, %s3281_s6 }
 0x95f   :  { %2184 = vrot.lane.b32.xlu1 %v1624_v5, %s3271_s30 }
 0x97a   :  { %1626 = vadd.xlane.f32.xlu0 %v1625_v14 }
 0x97e   :  { %1642 = vadd.xlane.f32.xlu0 %v1641_v16 }
 0x982   :  { %1650 = vadd.xlane.f32.xlu0 %v1649_v17 }
 0x983   :  { %1634 = vadd.xlane.f32.xlu1 %v1633_v18 }
 0x9b9   :  { %v1813_v20 = vpop.permute.xlu1 %1812 }
 0x9ba   :  { %v1815_v23 = vsel %vm496_vm4, %v1813_v20, 0.0 }
 0x9bb   :  { %1816 = vadd.xlane.f32.xlu0 %v1815_v23 }
 0x9bd   :  { %v1829_v24 = vpop.permute.xlu0 %1828  ;;  %v1821_v25 = vpop.permute.xlu1 %1820 }
 0x9be   :  { %v1823_v26 = vsel %vm496_vm4, %v1821_v25, 0.0  ;;  %v1831_v32 = vsel %vm496_vm4, %v1829_v24, 0.0 }
 0x9bf   :  { %1824 = vadd.xlane.f32.xlu1 %v1823_v26 }
 0x9c1   :  { %v1997_v27 = vpop.permute.xlu0 %1996  ;;  %v1990_v29 = vpop.permute.xlu1 %1989 }
 0x9c2   :  { %v1992_v31 = vsel %vm496_vm4, %v1990_v29, 0.0  ;;  %v1999_v36 = vsel %vm496_vm4, %v1997_v27, 0.0 }
 0x9c3   :  { %1832 = vadd.xlane.f32.xlu1 %v1831_v32  ;;  %1993 = vadd.xlane.f32.xlu0 %v1992_v31 }
 0x9c5   :  { %v2004_v33 = vpop.permute.xlu0 %2003  ;;  %v1837_v30 = vpop.permute.xlu1 %1836 }
 0x9c6   :  { %v1839_v35 = vsel %vm496_vm4, %v1837_v30, 0.0  ;;  %v2006_v38 = vsel %vm496_vm4, %v2004_v33, 0.0 }
 0x9c7   :  { %2000 = vadd.xlane.f32.xlu1 %v1999_v36  ;;  %1840 = vadd.xlane.f32.xlu0 %v1839_v35 }
 0x9c9   :  { %v2171_v28 = vpop.permute.xlu0 %2170  ;;  %v2164_v37 = vpop.permute.xlu1 %2163 }
 0x9ca   :  { %v2166_v7 = vsel %vm496_vm4, %v2164_v37, 0.0  ;;  %v2173_v21 = vsel %vm496_vm4, %v2171_v28, 0.0 }
 0x9cb   :  { %2007 = vadd.xlane.f32.xlu1 %v2006_v38  ;;  %2167 = vadd.xlane.f32.xlu0 %v2166_v7 }
 0x9cd   :  { %v2011_v39 = vpop.permute.xlu1 %2010  ;;  %v2178_v41 = vpop.permute.xlu0 %2177 }
 0x9ce   :  { %v2013_v40 = vsel %vm496_vm4, %v2011_v39, 0.0  ;;  %v2180_v43 = vsel %vm496_vm4, %v2178_v41, 0.0 }
 0x9cf   :  { %2174 = vadd.xlane.f32.xlu1 %v2173_v21  ;;  %2014 = vadd.xlane.f32.xlu0 %v2013_v40 }
 0x9d1   :  { %v2185_v42 = vpop.permute.xlu1 %2184 }
 0x9d2   :  { %v2187_v44 = vsel %vm496_vm4, %v2185_v42, 0.0 }
 0x9d3   :  { %2181 = vadd.xlane.f32.xlu1 %v2180_v43  ;;  %2188 = vadd.xlane.f32.xlu0 %v2187_v44 }
 0x9e4   :  { %2060 = vrot.lane.b32.xlu1 %v3882_v60, %s3284_s0 }
 0x9e9   :  { %1696 = vrot.lane.b32.xlu0 %v3882_v60, %s3282_s25 }
 0x9ed   :  { %1886 = vrot.lane.b32.xlu0 %v3882_v60, %s3285_s10 }
 0xa03   :  { %v1627_v45 = vpop.xlane.xlu0 %1626 }
 0xa04   :  { %v1628_v48 = vmul.f32 0.5, %v1627_v45 }
 0xa07   :  { %v1643_v46 = vpop.xlane.xlu0 %1642 }
 0xa08   :  { %v1644_v50 = vmul.f32 0.5, %v1643_v46 }
 0xa0b   :  { %v1651_v49 = vpop.xlane.xlu0 %1650 }
 0xa0c   :  { %v1635_v47 = vpop.xlane.xlu1 %1634  ;;  %v1652_v52 = vmul.f32 0.5, %v1651_v49 }
 0xa0d   :  { %v1636_v19 = vmul.f32 0.5, %v1635_v47 }
 0xa0f   :  { %v1653_v51 = vmax.f32 %v1628_v48, %v1636_v19 }
 0xa11   :  { %v1654_v22 = vmax.f32 %v1653_v51, %v1644_v50 }
 0xa13   :  { %v1655_v53 = vmax.f32 %v1654_v22, %v1652_v52 }
 0xa15   :  { %v1656_v54 = vsub.f32 %v1628_v48, %v1655_v53  ;;  %v1659_v55 = vsub.f32 %v1636_v19, %v1655_v53  ;;  %v1662_v56 = vsub.f32 %v1644_v50, %v1655_v53  ;;  %v1665_v57 = vsub.f32 %v1652_v52, %v1655_v53 }
 0xa17   :  { %v1657_v59 = vmul.f32 1.442695, %v1656_v54  ;;  %v1660_v58 = vmul.f32 1.442695, %v1659_v55  ;;  %v1663_v61 = vmul.f32 1.442695, %v1662_v56 }
 0xa18   :  { %v1666_v63 = vmul.f32 1.442695, %v1665_v57 }
 0xa19   :  { %2985 = vpow2.f32 %v1657_v59 }
 0xa1a   :  { %2987 = vpow2.f32 %v1660_v58 }
 0xa1b   :  { %2989 = vpow2.f32 %v1663_v61 }
 0xa1c   :  { %2991 = vpow2.f32 %v1666_v63 }
 0xa26   :  { %v2986_v1 = vpop.eup %2985 }
 0xa27   :  { %v2988_v2 = vpop.eup %2987 }
 0xa28   :  { %v1668_v3 = vadd.f32 %v2988_v2, %v2986_v1  ;;  %v2990_v4 = vpop.eup %2989 }
 0xa29   :  { %v2992_v6 = vpop.eup %2991 }
 0xa2a   :  { %v1669_v5 = vadd.f32 %v2990_v4, %v1668_v3 }
 0xa2c   :  { %v1670_v8 = vadd.f32 %v2992_v6, %v1669_v5 }
 0xa2e   :  { %2993 = vrcp.f32 %v1670_v8 }
 0xa3b   :  { %v2994_v9 = vpop.eup %2993 }
 0xa3c   :  { %v1675_v10 = vmul.f32 %v2994_v9, %v2990_v4  ;;  %v1674_v11 = vmul.f32 %v2994_v9, %v2988_v2  ;;  %v3943_v12 = vmul.f32 %v2994_v9, %v2986_v1  ;;  %v1676_v15 = vmul.f32 %v2994_v9, %v2992_v6 }
 0xa3e   :  { %v1684_v13 = vmul.f32 %v1675_v10, %v3888_v62  ;;  %v1678_v14 = vmul.f32 %v1674_v11, %v3888_v62  ;;  %v1690_v34 = vmul.f32 %v1676_v15, %v3888_v62 }
 0xa40   :  { %1686 = vrot.lane.b32.xlu0 %v1684_v13, %s3281_s6  ;;  %1680 = vrot.lane.b32.xlu1 %v1678_v14, %s3280_s15 }
 0xa44   :  { %1692 = vrot.lane.b32.xlu1 %v1690_v34, %s3271_s30  ;;  %v1817_v16 = vpop.xlane.xlu0 %1816 }
 0xa45   :  { %v1818_v24 = vmul.f32 0.5, %v1817_v16 }
 0xa48   :  { %v1825_v17 = vpop.xlane.xlu1 %1824 }
 0xa49   :  { %v1826_v18 = vmul.f32 0.5, %v1825_v17 }
 0xa4b   :  { %v1843_v26 = vmax.f32 %v1818_v24, %v1826_v18 }
 0xa4c   :  { %v1994_v20 = vpop.xlane.xlu0 %1993  ;;  %v1833_v23 = vpop.xlane.xlu1 %1832 }
 0xa4d   :  { %v1834_v25 = vmul.f32 0.5, %v1833_v23  ;;  %v1995_v28 = vmul.f32 0.5, %v1994_v20 }
 0xa4f   :  { %v1844_v31 = vmax.f32 %v1843_v26, %v1834_v25 }
 0xa50   :  { %v1841_v27 = vpop.xlane.xlu0 %1840  ;;  %v2001_v29 = vpop.xlane.xlu1 %2000 }
 0xa51   :  { %v1842_v32 = vmul.f32 0.5, %v1841_v27  ;;  %v2002_v30 = vmul.f32 0.5, %v2001_v29 }
 0xa53   :  { %v1845_v33 = vmax.f32 %v1844_v31, %v1842_v32  ;;  %v2017_v42 = vmax.f32 %v1995_v28, %v2002_v30 }
 0xa54   :  { %v2168_v35 = vpop.xlane.xlu0 %2167  ;;  %v2008_v36 = vpop.xlane.xlu1 %2007 }
 0xa55   :  { %v1846_v37 = vsub.f32 %v1818_v24, %v1845_v33  ;;  %v1849_v7 = vsub.f32 %v1826_v18, %v1845_v33  ;;  %v1852_v38 = vsub.f32 %v1834_v25, %v1845_v33  ;;  %v1855_v39 = vsub.f32 %v1842_v32, %v1845_v33 }
 0xa56   :  { %v2009_v40 = vmul.f32 0.5, %v2008_v36  ;;  %v2169_v50 = vmul.f32 0.5, %v2168_v35 }
 0xa57   :  { %v1847_v21 = vmul.f32 1.442695, %v1846_v37  ;;  %v1850_v41 = vmul.f32 1.442695, %v1849_v7  ;;  %v1853_v43 = vmul.f32 1.442695, %v1852_v38 }
 0xa58   :  { %v2015_v44 = vpop.xlane.xlu0 %2014  ;;  %v2175_v45 = vpop.xlane.xlu1 %2174  ;;  %v2018_v46 = vmax.f32 %v2017_v42, %v2009_v40  ;;  %v1856_v48 = vmul.f32 1.442695, %v1855_v39 }
 0xa59   :  { %2995 = vpow2.f32 %v1847_v21  ;;  %v2016_v47 = vmul.f32 0.5, %v2015_v44  ;;  %v2176_v19 = vmul.f32 0.5, %v2175_v45 }
 0xa5a   :  { %2997 = vpow2.f32 %v1850_v41 }
 0xa5b   :  { %v2019_v49 = vmax.f32 %v2018_v46, %v2016_v47  ;;  %2999 = vpow2.f32 %v1853_v43  ;;  %v2191_v56 = vmax.f32 %v2169_v50, %v2176_v19 }
 0xa5c   :  { %v2182_v51 = vpop.xlane.xlu1 %2181  ;;  %v2189_v54 = vpop.xlane.xlu0 %2188  ;;  %3001 = vpow2.f32 %v1856_v48 }
 0xa5d   :  { %v2020_v52 = vsub.f32 %v1995_v28, %v2019_v49  ;;  %v2023_v22 = vsub.f32 %v2002_v30, %v2019_v49  ;;  %v2026_v53 = vsub.f32 %v2009_v40, %v2019_v49  ;;  %v2029_v55 = vsub.f32 %v2016_v47, %v2019_v49 }
 0xa5e   :  { %v2183_v57 = vmul.f32 0.5, %v2182_v51  ;;  %v2190_v63 = vmul.f32 0.5, %v2189_v54 }
 0xa5f   :  { %v2021_v59 = vmul.f32 1.442695, %v2020_v52  ;;  %v2024_v58 = vmul.f32 1.442695, %v2023_v22  ;;  %v2027_v61 = vmul.f32 1.442695, %v2026_v53 }
 0xa60   :  { %v2192_v1 = vmax.f32 %v2191_v56, %v2183_v57  ;;  %v2030_v2 = vmul.f32 1.442695, %v2029_v55 }
 0xa61   :  { %3003 = vpow2.f32 %v2021_v59  ;;  %v1697_v59 = vpop.permute.xlu0 %1696 }
 0xa62   :  { %3005 = vpow2.f32 %v2024_v58  ;;  %v2193_v3 = vmax.f32 %v2192_v1, %v2190_v63  ;;  %v2061_v58 = vpop.permute.xlu1 %2060 }
 0xa63   :  { %3007 = vpow2.f32 %v2027_v61 }
 0xa64   :  { %v2194_v4 = vsub.f32 %v2169_v50, %v2193_v3  ;;  %v2197_v5 = vsub.f32 %v2176_v19, %v2193_v3  ;;  %v2200_v6 = vsub.f32 %v2183_v57, %v2193_v3  ;;  %v2203_v8 = vsub.f32 %v2190_v63, %v2193_v3 }
 0xa65   :  { %3009 = vpow2.f32 %v2030_v2  ;;  %v1887_v61 = vpop.permute.xlu0 %1886  ;;  %v1677_v63 = vmul.f32 %v3943_v12, %v3888_v62 }
 0xa66   :  { %v2996_v9 = vpop.eup %2995  ;;  %v2195_v10 = vmul.f32 1.442695, %v2194_v4  ;;  %v2198_v11 = vmul.f32 1.442695, %v2197_v5  ;;  %v2201_v14 = vmul.f32 1.442695, %v2200_v6 }
 0xa67   :  { %v2998_v13 = vpop.eup %2997  ;;  %v2204_v16 = vmul.f32 1.442695, %v2203_v8 }
 0xa68   :  { %v1858_v15 = vadd.f32 %v2998_v13, %v2996_v9  ;;  %3011 = vpow2.f32 %v2195_v10  ;;  %v3000_v34 = vpop.eup %2999 }
 0xa69   :  { %3013 = vpow2.f32 %v2198_v11  ;;  %v3002_v18 = vpop.eup %3001 }
 0xa6a   :  { %v1859_v17 = vadd.f32 %v3000_v34, %v1858_v15  ;;  %3015 = vpow2.f32 %v2201_v14 }
 0xa6b   :  { %3017 = vpow2.f32 %v2204_v16 }
 0xa6c   :  { %v1860_v20 = vadd.f32 %v3002_v18, %v1859_v17 }
 0xa6e   :  { %v3004_v23 = vpop.eup %3003  ;;  %3019 = vrcp.f32 %v1860_v20 }
 0xa6f   :  { %v3006_v24 = vpop.eup %3005 }
 0xa70   :  { %v2032_v25 = vadd.f32 %v3006_v24, %v3004_v23  ;;  %v3008_v26 = vpop.eup %3007 }
 0xa72   :  { %v2033_v27 = vadd.f32 %v3008_v26, %v2032_v25  ;;  %v3010_v29 = vpop.eup %3009 }
 0xa74   :  { %v2034_v31 = vadd.f32 %v3010_v29, %v2033_v27 }
 0xa75   :  { %v3012_v32 = vpop.eup %3011 }
 0xa76   :  { %v3014_v33 = vpop.eup %3013  ;;  %3021 = vrcp.f32 %v2034_v31 }
 0xa77   :  { %v2206_v30 = vadd.f32 %v3014_v33, %v3012_v32  ;;  %v3016_v35 = vpop.eup %3015 }
 0xa78   :  { %v3018_v28 = vpop.eup %3017 }
 0xa79   :  { %v2207_v36 = vadd.f32 %v3016_v35, %v2206_v30 }
 0xa7b   :  { %v3020_v37 = vpop.eup %3019  ;;  %v2208_v7 = vadd.f32 %v3018_v28, %v2207_v36 }
 0xa7c   :  { %v1865_v38 = vmul.f32 %v3020_v37, %v3000_v34  ;;  %v1864_v39 = vmul.f32 %v3020_v37, %v2998_v13  ;;  %v1863_v40 = vmul.f32 %v3020_v37, %v2996_v9  ;;  %v1866_v48 = vmul.f32 %v3020_v37, %v3002_v18 }
 0xa7d   :  { %3023 = vrcp.f32 %v2208_v7 }
 0xa7e   :  { %v1874_v21 = vmul.f32 %v1865_v38, %v3888_v62  ;;  %v1868_v41 = vmul.f32 %v1864_v39, %v3888_v62  ;;  %v1880_v49 = vmul.f32 %v1866_v48, %v3888_v62  ;;  %v1867_v11 = vmul.f32 %v1863_v40, %v3888_v62 }
 0xa80   :  { %1876 = vrot.lane.b32.xlu0 %v1874_v21, %s3281_s6  ;;  %1870 = vrot.lane.b32.xlu1 %v1868_v41, %s3280_s15 }
 0xa83   :  { %v3022_v42 = vpop.eup %3021 }
 0xa84   :  { %v2039_v43 = vmul.f32 %v3022_v42, %v3008_v26  ;;  %v2038_v44 = vmul.f32 %v3022_v42, %v3006_v24  ;;  %v2037_v45 = vmul.f32 %v3022_v42, %v3004_v23  ;;  %v2040_v55 = vmul.f32 %v3022_v42, %v3010_v29 }
 0xa86   :  { %v2048_v46 = vmul.f32 %v2039_v43, %v3888_v62  ;;  %v2042_v47 = vmul.f32 %v2038_v44, %v3888_v62  ;;  %v2054_v57 = vmul.f32 %v2040_v55, %v3888_v62  ;;  %v2041_v12 = vmul.f32 %v2037_v45, %v3888_v62  ;;  %v2603_v45 = vld [vmem:[%s4057_s13] ss:$0 sm:$0xff] }
 0xa88   :  { %2050 = vrot.lane.b32.xlu0 %v2048_v46, %s3281_s6  ;;  %2044 = vrot.lane.b32.xlu1 %v2042_v47, %s3280_s15  ;;  %v1721_v46 = vld [vmem:[#allocation15] sm:$0xf] }
 0xa89   :  { %2854 = vmatpush3.msk.msra.mxu1 %vm268_vm1, %v1721_v46 }
 0xa8a   :  { %v3024_v19 = vpop.eup %3023  ;;  %2863 = vmatprep.subr.mxu1 %v3268_v0 }
 0xa8b   :  { %v2213_v50 = vmul.f32 %v3024_v19, %v3016_v35  ;;  %v2212_v51 = vmul.f32 %v3024_v19, %v3014_v33  ;;  %v2211_v52 = vmul.f32 %v3024_v19, %v3012_v32  ;;  %v2214_v53 = vmul.f32 %v3024_v19, %v3018_v28 }
 0xa8c   :  { %1882 = vrot.lane.b32.xlu1 %v1880_v49, %s3271_s30  ;;  %v1904_v49 = vld [vmem:[#allocation15 + $0x4] sm:$0xf] }
 0xa8d   :  { %v2222_v22 = vmul.f32 %v2213_v50, %v3888_v62  ;;  %v2216_v54 = vmul.f32 %v2212_v51, %v3888_v62  ;;  %v2228_v56 = vmul.f32 %v2214_v53, %v3888_v62  ;;  %v2215_v23 = vmul.f32 %v2211_v52, %v3888_v62  ;;  %2859 = vmatpush3.msk.msra.mxu0 %vm268_vm1, %v1904_v49 }
 0xa8e   :  { %2868 = vmatprep.subr.mxu0 %v3268_v0 }
 0xa8f   :  { %2224 = vrot.lane.b32.xlu0 %v2222_v22, %s3281_s6 }
 0xa90   :  { %2218 = vrot.lane.b32.xlu1 %v2216_v54, %s3280_s15 }
 0xa93   :  { %2230 = vrot.lane.b32.xlu0 %v2228_v56, %s3271_s30 }
 0xa94   :  { %2056 = vrot.lane.b32.xlu1 %v2054_v57, %s3271_s30 }
 0xa98   :  { %2234 = vrot.lane.b32.xlu1 %v3882_v60, %s3286_s4 }
 0xab2   :  { %v1681_v1 = vpop.permute.xlu1 %1680  ;;  %v1687_v3 = vpop.permute.xlu0 %1686 }
 0xab3   :  { %v1683_v2 = vadd.f32 %v1681_v1, %v1677_v63 }
 0xab5   :  { %v1689_v4 = vadd.f32 %v1687_v3, %v1683_v2 }
 0xab6   :  { %v1693_v5 = vpop.permute.xlu1 %1692 }
 0xab7   :  { %v1695_v6 = vadd.f32 %v1693_v5, %v1689_v4 }
 0xab9   :  { %v1699_v8 = vadd.f32 %v1697_v59, %v1695_v6 }
 0xabb   :  { %v1700_v9 = vmul.f32 %v1699_v8, %v1699_v8 }
 0xabd   :  { %1702 = vrot.lane.b32.xlu0 %v1700_v9, %s3274_s9 }
 0xaf2   :  { %v1871_v10 = vpop.permute.xlu1 %1870  ;;  %v1877_v13 = vpop.permute.xlu0 %1876 }
 0xaf3   :  { %v1873_v60 = vadd.f32 %v1871_v10, %v1867_v11  ;;  %v2078_v11 = vld [vmem:[#allocation15 + $0x8] sm:$0xf] }
 0xaf5   :  { %v1879_v15 = vadd.f32 %v1877_v13, %v1873_v60  ;;  %v2252_v13 = vld [vmem:[#allocation15 + $0xc] sm:$0xf] }
 0xafa   :  { %v2045_v14 = vpop.permute.xlu1 %2044  ;;  %v2051_v34 = vpop.permute.xlu0 %2050 }
 0xafb   :  { %v2047_v18 = vadd.f32 %v2045_v14, %v2041_v12 }
 0xafd   :  { %v2053_v31 = vadd.f32 %v2051_v34, %v2047_v18 }
 0xafe   :  { %v1883_v16 = vpop.permute.xlu1 %1882 }
 0xaff   :  { %v1885_v17 = vadd.f32 %v1883_v16, %v1879_v15  ;;  %v2332_v16 = vld [vmem:[%s4061_s17] sm:$0xf] }
 0xb01   :  { %v1889_v20 = vadd.f32 %v1887_v61, %v1885_v17  ;;  %v2225_v24 = vpop.permute.xlu0 %2224 }
 0xb02   :  { %v2219_v25 = vpop.permute.xlu1 %2218 }
 0xb03   :  { %v1890_v26 = vmul.f32 %v1889_v20, %v1889_v20  ;;  %v2221_v27 = vadd.f32 %v2219_v25, %v2215_v23  ;;  %v2606_v23 = vld [vmem:[%s4060_s16] ss:$0 sm:$0xff] }
 0xb05   :  { %v2227_v29 = vadd.f32 %v2225_v24, %v2221_v27  ;;  %1892 = vrot.lane.b32.xlu1 %v1890_v26, %s3274_s9  ;;  %v2231_v30 = vpop.permute.xlu0 %2230 }
 0xb06   :  { %v2057_v32 = vpop.permute.xlu1 %2056 }
 0xb07   :  { %v2059_v33 = vadd.f32 %v2057_v32, %v2053_v31  ;;  %v2233_v35 = vadd.f32 %v2231_v30, %v2227_v29  ;;  %v2444_v30 = vld [vmem:[%s4063_s19 + $0x8] sm:$0xff] }
 0xb09   :  { %v2063_v36 = vadd.f32 %v2061_v58, %v2059_v33 }
 0xb0a   :  { %v2235_v28 = vpop.permute.xlu1 %2234 }
 0xb0b   :  { %v2064_v37 = vmul.f32 %v2063_v36, %v2063_v36  ;;  %v2237_v7 = vadd.f32 %v2235_v28, %v2233_v35  ;;  %v2443_v35 = vld [vmem:[%s4063_s19] sm:$0xff] }
 0xb0d   :  { %v2238_v38 = vmul.f32 %v2237_v7, %v2237_v7  ;;  %2066 = vrot.lane.b32.xlu0 %v2064_v37, %s3274_s9 }
 0xb0f   :  { %2240 = vrot.lane.b32.xlu1 %v2238_v38, %s3274_s9 }
 0xb2f   :  { %v1703_v62 = vpop.permute.xlu0 %1702 }
 0xb30   :  { %v1705_v39 = vsel %vm496_vm4, %v1703_v62, 0.0 }
 0xb31   :  { %1706 = vadd.xlane.f32.xlu0 %v1705_v39 }
 0xb77   :  { %v1893_v40 = vpop.permute.xlu1 %1892 }
 0xb78   :  { %v1895_v21 = vsel %vm496_vm4, %v1893_v40, 0.0 }
 0xb79   :  { %1896 = vadd.xlane.f32.xlu1 %v1895_v21 }
 0xb7f   :  { %v2067_v41 = vpop.permute.xlu0 %2066 }
 0xb80   :  { %v2069_v42 = vsel %vm496_vm4, %v2067_v41, 0.0 }
 0xb81   :  { %2070 = vadd.xlane.f32.xlu0 %v2069_v42  ;;  %v2241_v43 = vpop.permute.xlu1 %2240 }
 0xb82   :  { %v2243_v44 = vsel %vm496_vm4, %v2241_v43, 0.0 }
 0xb85   :  { %2244 = vadd.xlane.f32.xlu0 %v2243_v44 }
 0xb8a   :  { %1717 = vrot.lane.b32.xlu1 %v2603_v45, %s3282_s25 }
 0xbba   :  { %v1707_v47 = vpop.xlane.xlu0 %1706 }
 0xbbb   :  { %v1708_v48 = vmul.f32 0.25, %v1707_v47 }
 0xbbd   :  { %v1709_v19 = vadd.f32 1e-08, %v1708_v48 }
 0xbbf   :  { %3025 = vrsqrt.f32 %v1709_v19 }
 0xbcc   :  { %v3026_v50 = vpop.eup %3025 }
 0xbcd   :  { %v1711_v53 = vmul.f32 %v3026_v50, %v1699_v8 }
 0xc02   :  { %v1897_v51 = vpop.xlane.xlu1 %1896 }
 0xc03   :  { %v1898_v52 = vmul.f32 0.25, %v1897_v51 }
 0xc05   :  { %v1899_v22 = vadd.f32 1e-08, %v1898_v52 }
 0xc06   :  { %v1718_v54 = vpop.permute.xlu1 %1717 }
 0xc07   :  { %3027 = vrsqrt.f32 %v1899_v22  ;;  %v1720_v55 = vmul.f32 %v1718_v54, %v1711_v53  ;;  %v3287_v53 = vmov -1.0  }
 0xc09   :  { %1723 = vrot.lane.b32.xlu0 %v1720_v55, %s3274_s9 }
 0xc0a   :  { %v2071_v56 = vpop.xlane.xlu0 %2070 }
 0xc0b   :  { %v2072_v57 = vmul.f32 0.25, %v2071_v56 }
 0xc0d   :  { %v2073_v59 = vadd.f32 1e-08, %v2072_v57 }
 0xc0e   :  { %v2245_v58 = vpop.xlane.xlu0 %2244 }
 0xc0f   :  { %3029 = vrsqrt.f32 %v2073_v59  ;;  %v2246_v61 = vmul.f32 0.25, %v2245_v58  ;;  %v2616_v58 = vld [vmem:[%s4064_s20] ss:$0 sm:$0xff] }
 0xc11   :  { %v2247_v63 = vadd.f32 1e-08, %v2246_v61 }
 0xc13   :  { %3031 = vrsqrt.f32 %v2247_v63 }
 0xc14   :  { %v3028_v1 = vpop.eup %3027 }
 0xc15   :  { %v1901_v2 = vmul.f32 %v3028_v1, %v1889_v20 }
 0xc17   :  { %v1902_v3 = vmul.f32 %v1901_v2, %v1718_v54 }
 0xc19   :  { %1906 = vrot.lane.b32.xlu1 %v1902_v3, %s3274_s9 }
 0xc1c   :  { %v3030_v4 = vpop.eup %3029 }
 0xc1d   :  { %v2075_v5 = vmul.f32 %v3030_v4, %v2063_v36  ;;  %v2613_v36 = vld [vmem:[%s4062_s18] ss:$0 sm:$0xff] }
 0xc1f   :  { %v2076_v6 = vmul.f32 %v2075_v5, %v1718_v54 }
 0xc20   :  { %v3032_v8 = vpop.eup %3031 }
 0xc21   :  { %2080 = vrot.lane.b32.xlu1 %v2076_v6, %s3274_s9  ;;  %v2249_v9 = vmul.f32 %v3032_v8, %v2237_v7 }
 0xc23   :  { %v2250_v10 = vmul.f32 %v2249_v9, %v1718_v54 }
 0xc25   :  { %2254 = vrot.lane.b32.xlu0 %v2250_v10, %s3274_s9 }
 0xc7b   :  { %v1724_v60 = vpop.permute.xlu0 %1723 }
 0xc7c   :  { %2856 = vmatmul.mubr.msk.f32.vlgmr.msra.gmra.mxu1 %vm264_vm2, %v1724_v60 }
 0xc7d   :  { %2864 = vmatpush3.msk.msra.mxu1 %vm268_vm1, %v2078_v11  ;;  %2865 = vmatprep.mubr.msk.f32.mxu1 %vm3269_vm0, %v3268_v0 }
 0xc7e   :  { %2873 = vmatprep.subr.mxu1 %v3268_v0 }
 0xc8b   :  { %v1907_v14 = vpop.permute.xlu1 %1906 }
 0xc8c   :  { %2861 = vmatmul.mubr.msk.f32.vlgmr.msra.gmra.mxu0 %vm264_vm2, %v1907_v14 }
 0xc8d   :  { %2869 = vmatpush3.msk.msra.mxu0 %vm268_vm1, %v2252_v13  ;;  %2870 = vmatprep.mubr.msk.f32.mxu0 %vm3269_vm0, %v3268_v0 }
 0xc8e   :  { %2878 = vmatprep.subr.mxu0 %v3268_v0 }
 0xc93   :  { %v2081_v15 = vpop.permute.xlu1 %2080 }
 0xc94   :  { %2866 = vmatmul.mubr.msk.f32.vlgmr.msra.gmra.mxu1 %vm264_vm2, %v2081_v15 }
 0xc95   :  { %2875 = vmatprep.mubr.msk.f32.mxu1 %vm3269_vm0, %v3268_v0  ;;  %2874 = vmatpush3.msk.msra.mxu1 %vm268_vm1, %v2332_v16 }
 0xc97   :  { %v2255_v34 = vpop.permute.xlu0 %2254 }
 0xc98   :  { %2871 = vmatmul.mubr.msk.f32.vlgmr.msra.gmra.mxu0 %vm264_vm2, %v2255_v34 }
 0xc99   :  { %2882 = vmatprep.mubr.msk.f32.mxu0 %vm3269_vm0, %v3268_v0  ;;  %2879 = vmatpush3.msra.mxu0 %v2444_v30 }
 0xc9a   :  { %2880 = vmatprep.subr.mxu0 %v3268_v0 }
 0xc9b   :  { %2881 = vmatpush3.msra.mxu0 %v2443_v35 }
 0xd3c   :  { %v1796_v12 = vpop.f32.mrf.mxu1 }
 0xd3d   :  { %v1806_v24 = vadd.f32 %v2606_v23, %v1796_v12 }
 0xd3e   :  { %v2857_v17 = vpop.f32.mrf.mxu1 }
 0xd4c   :  { %v1979_v18 = vpop.f32.mrf.mxu0 }
 0xd4d   :  { %v1983_v26 = vadd.f32 %v1979_v18, %v1806_v24 }
 0xd4e   :  { %v2862_v20 = vpop.f32.mrf.mxu0 }
 0xd54   :  { %v2153_v25 = vpop.f32.mrf.mxu1 }
 0xd55   :  { %v2157_v29 = vadd.f32 %v2153_v25, %v1983_v26 }
 0xd56   :  { %v2867_v27 = vpop.f32.mrf.mxu1 }
 0xd58   :  { %v2327_v31 = vpop.f32.mrf.mxu0 }
 0xd59   :  { %v2331_v32 = vadd.f32 %v2327_v31, %v2157_v29 }
 0xd5a   :  { %v2872_v33 = vpop.f32.mrf.mxu0 }
 0xd5b   :  { %2876 = vmatmul.mubr.msk.f32.vlgmr.msra.gmra.mxu1 %vm264_vm2, %v2331_v32 }
 0xe1b   :  { %v2412_v28 = vpop.f32.mrf.mxu1 }
 0xe1c   :  { %v2413_v37 = vadd.f32 %v2613_v36, %v2412_v28 }
 0xe1d   :  { %v2877_v7 = vpop.f32.mrf.mxu1 }
 0xe1e   :  { %v2417_v38 = vmul.f32 0.70710677, %v2413_v37  ;;  %v2416_v56 = vmul.f32 0.5, %v2413_v37 }
 0xe20   :  { %v2420_v62 = vand.u32 2147483647, %v2417_v38  ;;  %vm2418_vm13 = vcmp.ge.f32.partialorder %v2417_v38, 0.0 }
 0xe21   :  { %v2419_v54 = vsel %vm2418_vm13, 1.0, %v3287_v53 }
 0xe22   :  { %v2421_v39 = vmul.f32 0.3275911, %v2420_v62  ;;  %v2434_v21 = vsub.f32 0.0, %v2420_v62 }
 0xe24   :  { %v2422_v40 = vadd.f32 1.0, %v2421_v39  ;;  %v2435_v41 = vmul.f32 %v2434_v21, %v2420_v62 }
 0xe26   :  { %3033 = vrcp.f32 %v2422_v40  ;;  %v2436_v44 = vmul.f32 1.442695, %v2435_v41 }
 0xe28   :  { %3035 = vpow2.f32 %v2436_v44 }
 0xe33   :  { %v3034_v42 = vpop.eup %3033 }
 0xe34   :  { %v2425_v43 = vmul.f32 1.0614054, %v3034_v42 }
 0xe35   :  { %v3036_v51 = vpop.eup %3035 }
 0xe36   :  { %v2426_v45 = vadd.f32 -1.4531521, %v2425_v43 }
 0xe38   :  { %v2427_v0 = vmul.f32 %v3034_v42, %v2426_v45 }
 0xe3a   :  { %v2428_v46 = vadd.f32 1.4214138, %v2427_v0 }
 0xe3c   :  { %v2429_v47 = vmul.f32 %v3034_v42, %v2428_v46 }
 0xe3e   :  { %v2430_v48 = vadd.f32 -0.28449672, %v2429_v47 }
 0xe40   :  { %v2431_v19 = vmul.f32 %v3034_v42, %v2430_v48 }
 0xe42   :  { %v2432_v49 = vadd.f32 0.2548296, %v2431_v19 }
 0xe44   :  { %v2433_v50 = vmul.f32 %v3034_v42, %v2432_v49 }
 0xe46   :  { %v2438_v52 = vmul.f32 %v3036_v51, %v2433_v50 }
 0xe48   :  { %v2439_v22 = vsub.f32 1.0, %v2438_v52 }
 0xe4a   :  { %v2440_v55 = vmul.f32 %v2439_v22, %v2419_v54 }
 0xe4c   :  { %v2441_v57 = vadd.f32 1.0, %v2440_v55 }
 0xe4e   :  { %v2442_v59 = vmul.f32 %v2441_v57, %v2416_v56 }
 0xe50   :  { %2883 = vmatmul.mubr.msk.f32.vlgmr.msra.gmra.mxu0 %vm344_vm3, %v2442_v59 }
 0xf10   :  { %v2521_v61 = vpop.f32.mrf.mxu0 }
 0xf11   :  { %v2522_v63 = vadd.f32 %v2616_v58, %v2521_v61 }
 0xf12   :  { %v2884_v1 = vpop.f32.mrf.mxu0 }
 0xf13   :  { %v2525_v2 = vadd.f32 %v2522_v63, %v2331_v32 }
 0xf15   :  { %v2527_v3 = vmul.f32 %v2525_v2, %v2525_v2 }
 0xf17   :  { %v2528_v4 = vsel %vm496_vm4, %v2527_v3, 0.0 }
 0xf18   :  { %2529 = vadd.xlane.f32.xlu1 %v2528_v4 }
 0xf19   :  { %3211 = shalt.err (!%p3208_p2)
}
 0xf1a   :  { %2562 = dma.vmem_to_hbm [thread:$0]  %s2560_s8, 32, %s4067_s23, [#allocation19]   ;;  %v2618_v10 = vld [vmem:[%s4058_s14] ss:$0 sm:$0xff] }
 0xf1b   :  { %s3289_s1 = smov [#allocation17]  }
 0xf1c   :  { %s2549_s27 = sshll.u32 %s3289_s1, 4  ;;  %s2550_s27 = int_to_ptr.vmem [resolvable:$true] %s2549_s27 }
 0xf1d   :  { %s3220_s7 = scalar_lea.vmem %s2550_s27, 32  ;;  %p3225_p4 = scmp.lt.s32.totalorder %s2550_s27, %s2550_s27 }
 0xf1e   :  { %p3221_p3 = scmp.ne.s32.totalorder %s2550_s27, %s3220_s7  ;;  %p3226_p5 = scmp.lt.s32.totalorder %s3220_s7, %s3220_s7 }
 0xf20   :  { %p3227_p6 = por %p3226_p5, %p3225_p4 }
 0xf22   :  { %p3228_p7 = pnand %p3227_p6, %p3221_p3 }
 0xfa1   :  { %v2530_v5 = vpop.xlane.xlu1 %2529 }
 0xfa2   :  { %v2531_v6 = vmul.f32 0.25, %v2530_v5 }
 0xfa4   :  { %v2532_v8 = vadd.f32 1e-08, %v2531_v6 }
 0xfa6   :  { %3037 = vrsqrt.f32 %v2532_v8 }
 0xfb3   :  { %v3038_v9 = vpop.eup %3037 }
 0xfb4   :  { %v2534_v11 = vmul.f32 %v3038_v9, %v2525_v2 }
 0xfb6   :  { %v2541_v60 = vmul.f32 %v2618_v10, %v2534_v11 }
 0xfb8   :  { %2542 = vst.msk [vmem:[#allocation17] sm:$0x3] %vm496_vm4, %v2541_v60 }
 0xfb9   :  { %3231 = shalt.err (!%p3228_p7)
}
 0xfba   :  { %2552 = dma.vmem_to_hbm [thread:$0]  %s2550_s27, 32, %s4066_s22, [#allocation5]  }
 0xfbb   :  { %3250 = dma.done.wait [#allocation5], 32  }
 0xfbc   :  { %3251 = vsyncadd [#allocation5], 4294967264 }
 0xfbd   :  { %3252 = dma.done.wait [#allocation19], 32  }
 0xfbe   :  { %3253 = vsyncadd [#allocation19], 4294967264 }
 0xfbf   :  { %2569 = vsyncpa [#allocation4], 1 }
 0xfc0   :  { %2570 = vsyncpa [#allocation7], 1 }
 0xfc1   :  { %2571 = vsyncpa [#allocation10], 1 }
 0xfc2   :  { %2572 = vsyncpa [#allocation13], 1 }
 0xfc3   :  { %2573 = vsyncpa [#allocation16], 1 }
 0xfc4   :  { %2574 = vsyncpa [#allocation5], 1 }
 0xfc5   :  { %2575 = vsyncpa [#allocation19], 1 }

</bundles_post_ra>
